<compile_context>
chip_gen: v7x
topology: tpu7x:2x2x1
jax: 0.10.0
libtpu: 0.0.40
codegen_flags: <defaults>
</compile_context>

<pallas_src>
import functools

import jax
import jax.numpy as jnp
from jax.experimental import pallas as pl
from jax.experimental.pallas import tpu as pltpu


def _lstm_ae_kernel(x_ref,                         # (T*B, F)      time-major, flattened
                    wih_e_ref, whh_e_ref, b_e_ref,  # (F,4Hp), (Hp,4Hp), (1,4Hp)
                    wefc_ref, befc_ref,             # (Hp,L), (1,L)
                    wdfc_ref, bdfc_ref,             # (L,H), (1,H)
                    wih_d_ref, whh_d_ref, b_d_ref,  # (H,4Fp), (Fp,4Fp), (1,4Fp)
                    out_ref,                        # (T, B, Fp)    pre-slice decoder output
                    latent_ref,                     # (B, L)
                    acc_ref):                       # VMEM scratch (T, B, Fp)
    T, B, Fp = out_ref.shape
    Hp = whh_e_ref.shape[0]
    f32 = jnp.float32

    # ---------------- Encoder LSTM (PyTorch gate order: i, f, g, o) ----------------
    # Hoisted input projection + bias: one matmul for all T steps.
    xw = jnp.dot(x_ref[...], wih_e_ref[...], preferred_element_type=f32) + b_e_ref[...]  # (T*B, 4Hp)
    whh_e = whh_e_ref[...]

    h = jnp.zeros((B, Hp), f32)
    c = jnp.zeros((B, Hp), f32)
    for t in range(T):  # fully unrolled; only h @ W_hh is on the recurrence critical path
        gates = xw[t * B:(t + 1) * B] + jnp.dot(h, whh_e, preferred_element_type=f32)
        i = jax.nn.sigmoid(gates[:, 0 * Hp:1 * Hp])
        f = jax.nn.sigmoid(gates[:, 1 * Hp:2 * Hp])
        g = jnp.tanh(gates[:, 2 * Hp:3 * Hp])
        o = jax.nn.sigmoid(gates[:, 3 * Hp:4 * Hp])
        c = f * c + i * g
        h = o * jnp.tanh(c)

    # Encoder FC -> latent (padded h columns are zero and wefc rows are zero-padded,
    # so no slice of h is needed).
    latent = jnp.dot(h, wefc_ref[...], preferred_element_type=f32) + befc_ref[...]
    latent_ref[...] = latent.astype(latent_ref.dtype)

    # ---------------- Decoder ----------------
    # FC latent -> hidden; the same vector feeds every time step, so the input-to-gate
    # projection (+ bias) is constant and computed once.
    dec = jnp.dot(latent, wdfc_ref[...], preferred_element_type=f32) + bdfc_ref[...]   # (B, H)
    xg = jnp.dot(dec, wih_d_ref[...], preferred_element_type=f32) + b_d_ref[...]       # (B, 4Fp)
    whh_d = whh_d_ref[...]

    hd = jnp.zeros((B, Fp), f32)
    cd = jnp.zeros((B, Fp), f32)
    for t in range(T):  # fully unrolled
        gates = xg + jnp.dot(hd, whh_d, preferred_element_type=f32)
        i = jax.nn.sigmoid(gates[:, 0 * Fp:1 * Fp])
        f = jax.nn.sigmoid(gates[:, 1 * Fp:2 * Fp])
        g = jnp.tanh(gates[:, 2 * Fp:3 * Fp])
        o = jax.nn.sigmoid(gates[:, 3 * Fp:4 * Fp])
        cd = f * cd + i * g
        hd = o * jnp.tanh(cd)
        acc_ref[t] = hd  # lane-dense (B, 128) store to scratch; sigmoid deferred

    # One bulk sigmoid + one lane-dense store instead of T masked 8-lane stores.
    out_ref[...] = jax.nn.sigmoid(acc_ref[...]).astype(out_ref.dtype)


def _pad_gate_w(w_t, gdim, gpad, rows_to=None):
    """w_t: (in_dim, 4*gdim) pre-transposed weight (gate order i,f,g,o).
    Zero-pads each gate block to gpad columns and optionally the input rows."""
    in_dim = w_t.shape[0]
    rows_to = in_dim if rows_to is None else rows_to
    w4 = w_t.reshape(in_dim, 4, gdim)
    w4 = jnp.pad(w4, ((0, rows_to - in_dim), (0, 0), (0, gpad - gdim)))
    return w4.reshape(rows_to, 4 * gpad)


def _pad_gate_b(b, gdim, gpad):
    b4 = jnp.pad(b.reshape(4, gdim), ((0, 0), (0, gpad - gdim)))
    return b4.reshape(1, 4 * gpad)


def lstm_autoencoder_forward(x, params):
    """x: (B, T, n_mfcc) float32.  Returns (out (B,T,n_mfcc), latent (B,latent_dim))."""
    B, T, F = x.shape
    H = params["w_hh_e"].shape[1]
    L = params["w_efc"].shape[0]

    LANE = 128
    Hp = ((H + LANE - 1) // LANE) * LANE   # per-gate padded width, encoder
    Fp = ((F + LANE - 1) // LANE) * LANE   # per-gate padded width, decoder

    # Time-major, flattened rows: row (t*B + b) == x[b, t, :].
    x_tm = jnp.transpose(x, (1, 0, 2)).reshape(T * B, F)

    # Pre-transpose weights to (in, out), fold the two LSTM biases (PyTorch adds both),
    # and zero-pad each gate block to 128 lanes so all gate slices are vreg-aligned.
    wih_e = _pad_gate_w(params["w_ih_e"].T, H, Hp)                               # (F, 4Hp)
    whh_e = _pad_gate_w(params["w_hh_e"].T, H, Hp, rows_to=Hp)                   # (Hp, 4Hp)
    b_e = _pad_gate_b(params["b_ih_e"] + params["b_hh_e"], H, Hp)                # (1, 4Hp)
    wefc = jnp.pad(params["w_efc"].T, ((0, Hp - H), (0, 0)))                     # (Hp, L)
    befc = params["b_efc"].reshape(1, -1)
    wdfc = params["w_dfc"].T                                                     # (L, H)
    bdfc = params["b_dfc"].reshape(1, -1)
    wih_d = _pad_gate_w(params["w_ih_d"].T, F, Fp)                               # (H, 4Fp)
    whh_d = _pad_gate_w(params["w_hh_d"].T, F, Fp, rows_to=Fp)                   # (Fp, 4Fp)
    b_d = _pad_gate_b(params["b_ih_d"] + params["b_hh_d"], F, Fp)                # (1, 4Fp)

    args = (x_tm, wih_e, whh_e, b_e, wefc, befc, wdfc, bdfc, wih_d, whh_d, b_d)

    vmem_spec = pl.BlockSpec(memory_space=pltpu.MemorySpace.VMEM)
    out_tm_pad, latent = pl.pallas_call(
        _lstm_ae_kernel,
        out_shape=(
            jax.ShapeDtypeStruct((T, B, Fp), jnp.float32),   # lane-dense (128-wide) output slab
            jax.ShapeDtypeStruct((B, L), jnp.float32),
        ),
        in_specs=[vmem_spec] * len(args),
        out_specs=(vmem_spec, vmem_spec),
        scratch_shapes=[pltpu.VMEM((T, B, Fp), jnp.float32)],
    )(*args)

    # Slice off the zero-dynamics padded columns and return batch-first.
    out = jnp.transpose(out_tm_pad[:, :, :F], (1, 0, 2))
    return out, latent


# ---------------- pure-JAX reference (mirrors PyTorch semantics) ----------------
def _reference_forward(x, p):
    B, T, F = x.shape
    H = p["w_hh_e"].shape[1]

    def lstm(seq, w_ih, w_hh, b_ih, b_hh, hid):
        h = jnp.zeros((B, hid), jnp.float32)
        c = jnp.zeros((B, hid), jnp.float32)
        outs = []
        for t in range(seq.shape[1]):
            g = seq[:, t] @ w_ih.T + b_ih + h @ w_hh.T + b_hh
            i, f, gg, o = jnp.split(g, 4, axis=-1)
            c = jax.nn.sigmoid(f) * c + jax.nn.sigmoid(i) * jnp.tanh(gg)
            h = jax.nn.sigmoid(o) * jnp.tanh(c)
            outs.append(h)
        return jnp.stack(outs, axis=1), h

    _, h_last = lstm(x, p["w_ih_e"], p["w_hh_e"], p["b_ih_e"], p["b_hh_e"], H)
    latent = h_last @ p["w_efc"].T + p["b_efc"]
    dec = latent @ p["w_dfc"].T + p["b_dfc"]
    dec_rep = jnp.repeat(dec[:, None, :], T, axis=1)
    dec_out, _ = lstm(dec_rep, p["w_ih_d"], p["w_hh_d"], p["b_ih_d"], p["b_hh_d"], F)
    return jax.nn.sigmoid(dec_out), latent


def _init_params(key, n_mfcc, hidden_dim, latent_dim):
    ks = jax.random.split(key, 12)
    u = lambda k, shape, s: jax.random.uniform(k, shape, jnp.float32, -s, s)
    se = 1.0 / jnp.sqrt(hidden_dim)
    sd = 1.0 / jnp.sqrt(n_mfcc)
    sl = 1.0 / jnp.sqrt(latent_dim)
    return {
        # encoder LSTM (PyTorch shapes: W_ih (4H, F), W_hh (4H, H))
        "w_ih_e": u(ks[0], (4 * hidden_dim, n_mfcc), se),
        "w_hh_e": u(ks[1], (4 * hidden_dim, hidden_dim), se),
        "b_ih_e": u(ks[2], (4 * hidden_dim,), se),
        "b_hh_e": u(ks[3], (4 * hidden_dim,), se),
        # encoder FC (latent, hidden)
        "w_efc": u(ks[4], (latent_dim, hidden_dim), se),
        "b_efc": u(ks[5], (latent_dim,), se),
        # decoder FC (hidden, latent)
        "w_dfc": u(ks[6], (hidden_dim, latent_dim), sl),
        "b_dfc": u(ks[7], (hidden_dim,), sl),
        # decoder LSTM: input hidden_dim -> hidden n_mfcc
        "w_ih_d": u(ks[8], (4 * n_mfcc, hidden_dim), sd),
        "w_hh_d": u(ks[9], (4 * n_mfcc, n_mfcc), sd),
        "b_ih_d": u(ks[10], (4 * n_mfcc,), sd),
        "b_hh_d": u(ks[11], (4 * n_mfcc,), sd),
    }


if __name__ == "__main__":
    B, T, n_mfcc, hidden_dim, latent_dim = 2, 8, 8, 32, 16

    key = jax.random.PRNGKey(0)
    kx, kp = jax.random.split(key)
    x = jax.random.normal(kx, (B, T, n_mfcc), jnp.float32)
    params = _init_params(kp, n_mfcc, hidden_dim, latent_dim)

    fwd = jax.jit(functools.partial(lstm_autoencoder_forward))
    out, latent = fwd(x, params)
    jax.block_until_ready((out, latent))

    ref_out, ref_latent = _reference_forward(x, params)
    assert out.shape == (B, T, n_mfcc) and latent.shape == (B, latent_dim)
    assert jnp.allclose(out, ref_out, atol=1e-5, rtol=1e-5)
    assert jnp.allclose(latent, ref_latent, atol=1e-5, rtol=1e-5)

    print("KERNEL_OK")
</pallas_src>

<mosaic_0001>
module attributes {stable_mosaic.version = 11 : i64} {
  func.func @_lstm_ae_kernel(%arg0: memref<16x8xf32, #tpu.memory_space<vmem>>, %arg1: memref<8x512xf32, #tpu.memory_space<vmem>>, %arg2: memref<128x512xf32, #tpu.memory_space<vmem>>, %arg3: memref<1x512xf32, #tpu.memory_space<vmem>>, %arg4: memref<128x16xf32, #tpu.memory_space<vmem>>, %arg5: memref<1x16xf32, #tpu.memory_space<vmem>>, %arg6: memref<16x32xf32, #tpu.memory_space<vmem>>, %arg7: memref<1x32xf32, #tpu.memory_space<vmem>>, %arg8: memref<32x512xf32, #tpu.memory_space<vmem>>, %arg9: memref<128x512xf32, #tpu.memory_space<vmem>>, %arg10: memref<1x512xf32, #tpu.memory_space<vmem>>, %arg11: memref<8x2x128xf32, #tpu.memory_space<vmem>>, %arg12: memref<2x16xf32, #tpu.memory_space<vmem>>, %arg13: memref<8x2x128xf32, #tpu.memory_space<vmem>>) attributes {dimension_semantics = [], scalar_prefetch = 0 : i64, scratch_operands = 1 : i64, tpu.core_type = #tpu.core_type<tc>} {
    %c0 = arith.constant 0 : index
    %c0_0 = arith.constant 0 : index
    %0 = vector.load %arg0[%c0, %c0_0] : memref<16x8xf32, #tpu.memory_space<vmem>>, vector<16x8xf32>
    %c0_1 = arith.constant 0 : index
    %c0_2 = arith.constant 0 : index
    %1 = vector.load %arg1[%c0_1, %c0_2] : memref<8x512xf32, #tpu.memory_space<vmem>>, vector<8x512xf32>
    %cst = arith.constant dense<0.000000e+00> : vector<16x512xf32>
    %2 = tpu.matmul %0, %1, %cst {dimension_numbers = #tpu.dot_dimension_numbers<[1], [0], [0], [1], [0, 0, 1, 1], [], []>} : vector<16x8xf32>, vector<8x512xf32>, vector<16x512xf32> -> vector<16x512xf32>
    %c0_3 = arith.constant 0 : index
    %c0_4 = arith.constant 0 : index
    %3 = vector.load %arg3[%c0_3, %c0_4] : memref<1x512xf32, #tpu.memory_space<vmem>>, vector<1x512xf32>
    %4 = vector.broadcast %3 : vector<1x512xf32> to vector<16x512xf32>
    %5 = arith.addf %2, %4 : vector<16x512xf32>
    %c0_5 = arith.constant 0 : index
    %c0_6 = arith.constant 0 : index
    %6 = vector.load %arg2[%c0_5, %c0_6] : memref<128x512xf32, #tpu.memory_space<vmem>>, vector<128x512xf32>
    %cst_7 = arith.constant 0.000000e+00 : f32
    %7 = vector.broadcast %cst_7 : f32 to vector<2x128xf32>
    %cst_8 = arith.constant 0.000000e+00 : f32
    %8 = vector.broadcast %cst_8 : f32 to vector<2x128xf32>
    %9 = vector.extract_strided_slice %5 {offsets = [0, 0], sizes = [2, 512], strides = [1, 1]} : vector<16x512xf32> to vector<2x512xf32>
    %cst_9 = arith.constant dense<0.000000e+00> : vector<2x512xf32>
    %10 = tpu.matmul %7, %6, %cst_9 {dimension_numbers = #tpu.dot_dimension_numbers<[1], [0], [0], [1], [0, 0, 1, 1], [], []>} : vector<2x128xf32>, vector<128x512xf32>, vector<2x512xf32> -> vector<2x512xf32>
    %11 = arith.addf %9, %10 : vector<2x512xf32>
    %12 = vector.extract_strided_slice %11 {offsets = [0, 0], sizes = [2, 128], strides = [1, 1]} : vector<2x512xf32> to vector<2x128xf32>
    %13 = arith.negf %12 : vector<2x128xf32>
    %14 = math.exp %13 : vector<2x128xf32>
    %cst_10 = arith.constant 1.000000e+00 : f32
    %15 = vector.broadcast %cst_10 : f32 to vector<2x128xf32>
    %16 = arith.addf %15, %14 : vector<2x128xf32>
    %17 = arith.divf %15, %16 : vector<2x128xf32>
    %18 = vector.extract_strided_slice %11 {offsets = [0, 128], sizes = [2, 128], strides = [1, 1]} : vector<2x512xf32> to vector<2x128xf32>
    %19 = arith.negf %18 : vector<2x128xf32>
    %20 = math.exp %19 : vector<2x128xf32>
    %cst_11 = arith.constant 1.000000e+00 : f32
    %21 = vector.broadcast %cst_11 : f32 to vector<2x128xf32>
    %22 = arith.addf %21, %20 : vector<2x128xf32>
    %23 = arith.divf %21, %22 : vector<2x128xf32>
    %24 = vector.extract_strided_slice %11 {offsets = [0, 256], sizes = [2, 128], strides = [1, 1]} : vector<2x512xf32> to vector<2x128xf32>
    %25 = math.tanh %24 : vector<2x128xf32>
    %26 = vector.extract_strided_slice %11 {offsets = [0, 384], sizes = [2, 128], strides = [1, 1]} : vector<2x512xf32> to vector<2x128xf32>
    %27 = arith.negf %26 : vector<2x128xf32>
    %28 = math.exp %27 : vector<2x128xf32>
    %cst_12 = arith.constant 1.000000e+00 : f32
    %29 = vector.broadcast %cst_12 : f32 to vector<2x128xf32>
    %30 = arith.addf %29, %28 : vector<2x128xf32>
    %31 = arith.divf %29, %30 : vector<2x128xf32>
    %32 = arith.mulf %23, %8 : vector<2x128xf32>
    %33 = arith.mulf %17, %25 : vector<2x128xf32>
    %34 = arith.addf %32, %33 : vector<2x128xf32>
    %35 = math.tanh %34 : vector<2x128xf32>
    %36 = arith.mulf %31, %35 : vector<2x128xf32>
    %37 = vector.extract_strided_slice %5 {offsets = [2, 0], sizes = [2, 512], strides = [1, 1]} : vector<16x512xf32> to vector<2x512xf32>
    %cst_13 = arith.constant dense<0.000000e+00> : vector<2x512xf32>
    %38 = tpu.matmul %36, %6, %cst_13 {dimension_numbers = #tpu.dot_dimension_numbers<[1], [0], [0], [1], [0, 0, 1, 1], [], []>} : vector<2x128xf32>, vector<128x512xf32>, vector<2x512xf32> -> vector<2x512xf32>
    %39 = arith.addf %37, %38 : vector<2x512xf32>
    %40 = vector.extract_strided_slice %39 {offsets = [0, 0], sizes = [2, 128], strides = [1, 1]} : vector<2x512xf32> to vector<2x128xf32>
    %41 = arith.negf %40 : vector<2x128xf32>
    %42 = math.exp %41 : vector<2x128xf32>
    %cst_14 = arith.constant 1.000000e+00 : f32
    %43 = vector.broadcast %cst_14 : f32 to vector<2x128xf32>
    %44 = arith.addf %43, %42 : vector<2x128xf32>
    %45 = arith.divf %43, %44 : vector<2x128xf32>
    %46 = vector.extract_strided_slice %39 {offsets = [0, 128], sizes = [2, 128], strides = [1, 1]} : vector<2x512xf32> to vector<2x128xf32>
    %47 = arith.negf %46 : vector<2x128xf32>
    %48 = math.exp %47 : vector<2x128xf32>
    %cst_15 = arith.constant 1.000000e+00 : f32
    %49 = vector.broadcast %cst_15 : f32 to vector<2x128xf32>
    %50 = arith.addf %49, %48 : vector<2x128xf32>
    %51 = arith.divf %49, %50 : vector<2x128xf32>
    %52 = vector.extract_strided_slice %39 {offsets = [0, 256], sizes = [2, 128], strides = [1, 1]} : vector<2x512xf32> to vector<2x128xf32>
    %53 = math.tanh %52 : vector<2x128xf32>
    %54 = vector.extract_strided_slice %39 {offsets = [0, 384], sizes = [2, 128], strides = [1, 1]} : vector<2x512xf32> to vector<2x128xf32>
    %55 = arith.negf %54 : vector<2x128xf32>
    %56 = math.exp %55 : vector<2x128xf32>
    %cst_16 = arith.constant 1.000000e+00 : f32
    %57 = vector.broadcast %cst_16 : f32 to vector<2x128xf32>
    %58 = arith.addf %57, %56 : vector<2x128xf32>
    %59 = arith.divf %57, %58 : vector<2x128xf32>
    %60 = arith.mulf %51, %34 : vector<2x128xf32>
    %61 = arith.mulf %45, %53 : vector<2x128xf32>
    %62 = arith.addf %60, %61 : vector<2x128xf32>
    %63 = math.tanh %62 : vector<2x128xf32>
    %64 = arith.mulf %59, %63 : vector<2x128xf32>
    %65 = vector.extract_strided_slice %5 {offsets = [4, 0], sizes = [2, 512], strides = [1, 1]} : vector<16x512xf32> to vector<2x512xf32>
    %cst_17 = arith.constant dense<0.000000e+00> : vector<2x512xf32>
    %66 = tpu.matmul %64, %6, %cst_17 {dimension_numbers = #tpu.dot_dimension_numbers<[1], [0], [0], [1], [0, 0, 1, 1], [], []>} : vector<2x128xf32>, vector<128x512xf32>, vector<2x512xf32> -> vector<2x512xf32>
    %67 = arith.addf %65, %66 : vector<2x512xf32>
    %68 = vector.extract_strided_slice %67 {offsets = [0, 0], sizes = [2, 128], strides = [1, 1]} : vector<2x512xf32> to vector<2x128xf32>
    %69 = arith.negf %68 : vector<2x128xf32>
    %70 = math.exp %69 : vector<2x128xf32>
    %cst_18 = arith.constant 1.000000e+00 : f32
    %71 = vector.broadcast %cst_18 : f32 to vector<2x128xf32>
    %72 = arith.addf %71, %70 : vector<2x128xf32>
    %73 = arith.divf %71, %72 : vector<2x128xf32>
    %74 = vector.extract_strided_slice %67 {offsets = [0, 128], sizes = [2, 128], strides = [1, 1]} : vector<2x512xf32> to vector<2x128xf32>
    %75 = arith.negf %74 : vector<2x128xf32>
    %76 = math.exp %75 : vector<2x128xf32>
    %cst_19 = arith.constant 1.000000e+00 : f32
    %77 = vector.broadcast %cst_19 : f32 to vector<2x128xf32>
    %78 = arith.addf %77, %76 : vector<2x128xf32>
    %79 = arith.divf %77, %78 : vector<2x128xf32>
    %80 = vector.extract_strided_slice %67 {offsets = [0, 256], sizes = [2, 128], strides = [1, 1]} : vector<2x512xf32> to vector<2x128xf32>
    %81 = math.tanh %80 : vector<2x128xf32>
    %82 = vector.extract_strided_slice %67 {offsets = [0, 384], sizes = [2, 128], strides = [1, 1]} : vector<2x512xf32> to vector<2x128xf32>
    %83 = arith.negf %82 : vector<2x128xf32>
    %84 = math.exp %83 : vector<2x128xf32>
    %cst_20 = arith.constant 1.000000e+00 : f32
    %85 = vector.broadcast %cst_20 : f32 to vector<2x128xf32>
    %86 = arith.addf %85, %84 : vector<2x128xf32>
    %87 = arith.divf %85, %86 : vector<2x128xf32>
    %88 = arith.mulf %79, %62 : vector<2x128xf32>
    %89 = arith.mulf %73, %81 : vector<2x128xf32>
    %90 = arith.addf %88, %89 : vector<2x128xf32>
    %91 = math.tanh %90 : vector<2x128xf32>
    %92 = arith.mulf %87, %91 : vector<2x128xf32>
    %93 = vector.extract_strided_slice %5 {offsets = [6, 0], sizes = [2, 512], strides = [1, 1]} : vector<16x512xf32> to vector<2x512xf32>
    %cst_21 = arith.constant dense<0.000000e+00> : vector<2x512xf32>
    %94 = tpu.matmul %92, %6, %cst_21 {dimension_numbers = #tpu.dot_dimension_numbers<[1], [0], [0], [1], [0, 0, 1, 1], [], []>} : vector<2x128xf32>, vector<128x512xf32>, vector<2x512xf32> -> vector<2x512xf32>
    %95 = arith.addf %93, %94 : vector<2x512xf32>
    %96 = vector.extract_strided_slice %95 {offsets = [0, 0], sizes = [2, 128], strides = [1, 1]} : vector<2x512xf32> to vector<2x128xf32>
    %97 = arith.negf %96 : vector<2x128xf32>
    %98 = math.exp %97 : vector<2x128xf32>
    %cst_22 = arith.constant 1.000000e+00 : f32
    %99 = vector.broadcast %cst_22 : f32 to vector<2x128xf32>
    %100 = arith.addf %99, %98 : vector<2x128xf32>
    %101 = arith.divf %99, %100 : vector<2x128xf32>
    %102 = vector.extract_strided_slice %95 {offsets = [0, 128], sizes = [2, 128], strides = [1, 1]} : vector<2x512xf32> to vector<2x128xf32>
    %103 = arith.negf %102 : vector<2x128xf32>
    %104 = math.exp %103 : vector<2x128xf32>
    %cst_23 = arith.constant 1.000000e+00 : f32
    %105 = vector.broadcast %cst_23 : f32 to vector<2x128xf32>
    %106 = arith.addf %105, %104 : vector<2x128xf32>
    %107 = arith.divf %105, %106 : vector<2x128xf32>
    %108 = vector.extract_strided_slice %95 {offsets = [0, 256], sizes = [2, 128], strides = [1, 1]} : vector<2x512xf32> to vector<2x128xf32>
    %109 = math.tanh %108 : vector<2x128xf32>
    %110 = vector.extract_strided_slice %95 {offsets = [0, 384], sizes = [2, 128], strides = [1, 1]} : vector<2x512xf32> to vector<2x128xf32>
    %111 = arith.negf %110 : vector<2x128xf32>
    %112 = math.exp %111 : vector<2x128xf32>
    %cst_24 = arith.constant 1.000000e+00 : f32
    %113 = vector.broadcast %cst_24 : f32 to vector<2x128xf32>
    %114 = arith.addf %113, %112 : vector<2x128xf32>
    %115 = arith.divf %113, %114 : vector<2x128xf32>
    %116 = arith.mulf %107, %90 : vector<2x128xf32>
    %117 = arith.mulf %101, %109 : vector<2x128xf32>
    %118 = arith.addf %116, %117 : vector<2x128xf32>
    %119 = math.tanh %118 : vector<2x128xf32>
    %120 = arith.mulf %115, %119 : vector<2x128xf32>
    %121 = vector.extract_strided_slice %5 {offsets = [8, 0], sizes = [2, 512], strides = [1, 1]} : vector<16x512xf32> to vector<2x512xf32>
    %cst_25 = arith.constant dense<0.000000e+00> : vector<2x512xf32>
    %122 = tpu.matmul %120, %6, %cst_25 {dimension_numbers = #tpu.dot_dimension_numbers<[1], [0], [0], [1], [0, 0, 1, 1], [], []>} : vector<2x128xf32>, vector<128x512xf32>, vector<2x512xf32> -> vector<2x512xf32>
    %123 = arith.addf %121, %122 : vector<2x512xf32>
    %124 = vector.extract_strided_slice %123 {offsets = [0, 0], sizes = [2, 128], strides = [1, 1]} : vector<2x512xf32> to vector<2x128xf32>
    %125 = arith.negf %124 : vector<2x128xf32>
    %126 = math.exp %125 : vector<2x128xf32>
    %cst_26 = arith.constant 1.000000e+00 : f32
    %127 = vector.broadcast %cst_26 : f32 to vector<2x128xf32>
    %128 = arith.addf %127, %126 : vector<2x128xf32>
    %129 = arith.divf %127, %128 : vector<2x128xf32>
    %130 = vector.extract_strided_slice %123 {offsets = [0, 128], sizes = [2, 128], strides = [1, 1]} : vector<2x512xf32> to vector<2x128xf32>
    %131 = arith.negf %130 : vector<2x128xf32>
    %132 = math.exp %131 : vector<2x128xf32>
    %cst_27 = arith.constant 1.000000e+00 : f32
    %133 = vector.broadcast %cst_27 : f32 to vector<2x128xf32>
    %134 = arith.addf %133, %132 : vector<2x128xf32>
    %135 = arith.divf %133, %134 : vector<2x128xf32>
    %136 = vector.extract_strided_slice %123 {offsets = [0, 256], sizes = [2, 128], strides = [1, 1]} : vector<2x512xf32> to vector<2x128xf32>
    %137 = math.tanh %136 : vector<2x128xf32>
    %138 = vector.extract_strided_slice %123 {offsets = [0, 384], sizes = [2, 128], strides = [1, 1]} : vector<2x512xf32> to vector<2x128xf32>
    %139 = arith.negf %138 : vector<2x128xf32>
    %140 = math.exp %139 : vector<2x128xf32>
    %cst_28 = arith.constant 1.000000e+00 : f32
    %141 = vector.broadcast %cst_28 : f32 to vector<2x128xf32>
    %142 = arith.addf %141, %140 : vector<2x128xf32>
    %143 = arith.divf %141, %142 : vector<2x128xf32>
    %144 = arith.mulf %135, %118 : vector<2x128xf32>
    %145 = arith.mulf %129, %137 : vector<2x128xf32>
    %146 = arith.addf %144, %145 : vector<2x128xf32>
    %147 = math.tanh %146 : vector<2x128xf32>
    %148 = arith.mulf %143, %147 : vector<2x128xf32>
    %149 = vector.extract_strided_slice %5 {offsets = [10, 0], sizes = [2, 512], strides = [1, 1]} : vector<16x512xf32> to vector<2x512xf32>
    %cst_29 = arith.constant dense<0.000000e+00> : vector<2x512xf32>
    %150 = tpu.matmul %148, %6, %cst_29 {dimension_numbers = #tpu.dot_dimension_numbers<[1], [0], [0], [1], [0, 0, 1, 1], [], []>} : vector<2x128xf32>, vector<128x512xf32>, vector<2x512xf32> -> vector<2x512xf32>
    %151 = arith.addf %149, %150 : vector<2x512xf32>
    %152 = vector.extract_strided_slice %151 {offsets = [0, 0], sizes = [2, 128], strides = [1, 1]} : vector<2x512xf32> to vector<2x128xf32>
    %153 = arith.negf %152 : vector<2x128xf32>
    %154 = math.exp %153 : vector<2x128xf32>
    %cst_30 = arith.constant 1.000000e+00 : f32
    %155 = vector.broadcast %cst_30 : f32 to vector<2x128xf32>
    %156 = arith.addf %155, %154 : vector<2x128xf32>
    %157 = arith.divf %155, %156 : vector<2x128xf32>
    %158 = vector.extract_strided_slice %151 {offsets = [0, 128], sizes = [2, 128], strides = [1, 1]} : vector<2x512xf32> to vector<2x128xf32>
    %159 = arith.negf %158 : vector<2x128xf32>
    %160 = math.exp %159 : vector<2x128xf32>
    %cst_31 = arith.constant 1.000000e+00 : f32
    %161 = vector.broadcast %cst_31 : f32 to vector<2x128xf32>
    %162 = arith.addf %161, %160 : vector<2x128xf32>
    %163 = arith.divf %161, %162 : vector<2x128xf32>
    %164 = vector.extract_strided_slice %151 {offsets = [0, 256], sizes = [2, 128], strides = [1, 1]} : vector<2x512xf32> to vector<2x128xf32>
    %165 = math.tanh %164 : vector<2x128xf32>
    %166 = vector.extract_strided_slice %151 {offsets = [0, 384], sizes = [2, 128], strides = [1, 1]} : vector<2x512xf32> to vector<2x128xf32>
    %167 = arith.negf %166 : vector<2x128xf32>
    %168 = math.exp %167 : vector<2x128xf32>
    %cst_32 = arith.constant 1.000000e+00 : f32
    %169 = vector.broadcast %cst_32 : f32 to vector<2x128xf32>
    %170 = arith.addf %169, %168 : vector<2x128xf32>
    %171 = arith.divf %169, %170 : vector<2x128xf32>
    %172 = arith.mulf %163, %146 : vector<2x128xf32>
    %173 = arith.mulf %157, %165 : vector<2x128xf32>
    %174 = arith.addf %172, %173 : vector<2x128xf32>
    %175 = math.tanh %174 : vector<2x128xf32>
    %176 = arith.mulf %171, %175 : vector<2x128xf32>
    %177 = vector.extract_strided_slice %5 {offsets = [12, 0], sizes = [2, 512], strides = [1, 1]} : vector<16x512xf32> to vector<2x512xf32>
    %cst_33 = arith.constant dense<0.000000e+00> : vector<2x512xf32>
    %178 = tpu.matmul %176, %6, %cst_33 {dimension_numbers = #tpu.dot_dimension_numbers<[1], [0], [0], [1], [0, 0, 1, 1], [], []>} : vector<2x128xf32>, vector<128x512xf32>, vector<2x512xf32> -> vector<2x512xf32>
    %179 = arith.addf %177, %178 : vector<2x512xf32>
    %180 = vector.extract_strided_slice %179 {offsets = [0, 0], sizes = [2, 128], strides = [1, 1]} : vector<2x512xf32> to vector<2x128xf32>
    %181 = arith.negf %180 : vector<2x128xf32>
    %182 = math.exp %181 : vector<2x128xf32>
    %cst_34 = arith.constant 1.000000e+00 : f32
    %183 = vector.broadcast %cst_34 : f32 to vector<2x128xf32>
    %184 = arith.addf %183, %182 : vector<2x128xf32>
    %185 = arith.divf %183, %184 : vector<2x128xf32>
    %186 = vector.extract_strided_slice %179 {offsets = [0, 128], sizes = [2, 128], strides = [1, 1]} : vector<2x512xf32> to vector<2x128xf32>
    %187 = arith.negf %186 : vector<2x128xf32>
    %188 = math.exp %187 : vector<2x128xf32>
    %cst_35 = arith.constant 1.000000e+00 : f32
    %189 = vector.broadcast %cst_35 : f32 to vector<2x128xf32>
    %190 = arith.addf %189, %188 : vector<2x128xf32>
    %191 = arith.divf %189, %190 : vector<2x128xf32>
    %192 = vector.extract_strided_slice %179 {offsets = [0, 256], sizes = [2, 128], strides = [1, 1]} : vector<2x512xf32> to vector<2x128xf32>
    %193 = math.tanh %192 : vector<2x128xf32>
    %194 = vector.extract_strided_slice %179 {offsets = [0, 384], sizes = [2, 128], strides = [1, 1]} : vector<2x512xf32> to vector<2x128xf32>
    %195 = arith.negf %194 : vector<2x128xf32>
    %196 = math.exp %195 : vector<2x128xf32>
    %cst_36 = arith.constant 1.000000e+00 : f32
    %197 = vector.broadcast %cst_36 : f32 to vector<2x128xf32>
    %198 = arith.addf %197, %196 : vector<2x128xf32>
    %199 = arith.divf %197, %198 : vector<2x128xf32>
    %200 = arith.mulf %191, %174 : vector<2x128xf32>
    %201 = arith.mulf %185, %193 : vector<2x128xf32>
    %202 = arith.addf %200, %201 : vector<2x128xf32>
    %203 = math.tanh %202 : vector<2x128xf32>
    %204 = arith.mulf %199, %203 : vector<2x128xf32>
    %205 = vector.extract_strided_slice %5 {offsets = [14, 0], sizes = [2, 512], strides = [1, 1]} : vector<16x512xf32> to vector<2x512xf32>
    %cst_37 = arith.constant dense<0.000000e+00> : vector<2x512xf32>
    %206 = tpu.matmul %204, %6, %cst_37 {dimension_numbers = #tpu.dot_dimension_numbers<[1], [0], [0], [1], [0, 0, 1, 1], [], []>} : vector<2x128xf32>, vector<128x512xf32>, vector<2x512xf32> -> vector<2x512xf32>
    %207 = arith.addf %205, %206 : vector<2x512xf32>
    %208 = vector.extract_strided_slice %207 {offsets = [0, 0], sizes = [2, 128], strides = [1, 1]} : vector<2x512xf32> to vector<2x128xf32>
    %209 = arith.negf %208 : vector<2x128xf32>
    %210 = math.exp %209 : vector<2x128xf32>
    %cst_38 = arith.constant 1.000000e+00 : f32
    %211 = vector.broadcast %cst_38 : f32 to vector<2x128xf32>
    %212 = arith.addf %211, %210 : vector<2x128xf32>
    %213 = arith.divf %211, %212 : vector<2x128xf32>
    %214 = vector.extract_strided_slice %207 {offsets = [0, 128], sizes = [2, 128], strides = [1, 1]} : vector<2x512xf32> to vector<2x128xf32>
    %215 = arith.negf %214 : vector<2x128xf32>
    %216 = math.exp %215 : vector<2x128xf32>
    %cst_39 = arith.constant 1.000000e+00 : f32
    %217 = vector.broadcast %cst_39 : f32 to vector<2x128xf32>
    %218 = arith.addf %217, %216 : vector<2x128xf32>
    %219 = arith.divf %217, %218 : vector<2x128xf32>
    %220 = vector.extract_strided_slice %207 {offsets = [0, 256], sizes = [2, 128], strides = [1, 1]} : vector<2x512xf32> to vector<2x128xf32>
    %221 = math.tanh %220 : vector<2x128xf32>
    %222 = vector.extract_strided_slice %207 {offsets = [0, 384], sizes = [2, 128], strides = [1, 1]} : vector<2x512xf32> to vector<2x128xf32>
    %223 = arith.negf %222 : vector<2x128xf32>
    %224 = math.exp %223 : vector<2x128xf32>
    %cst_40 = arith.constant 1.000000e+00 : f32
    %225 = vector.broadcast %cst_40 : f32 to vector<2x128xf32>
    %226 = arith.addf %225, %224 : vector<2x128xf32>
    %227 = arith.divf %225, %226 : vector<2x128xf32>
    %228 = arith.mulf %219, %202 : vector<2x128xf32>
    %229 = arith.mulf %213, %221 : vector<2x128xf32>
    %230 = arith.addf %228, %229 : vector<2x128xf32>
    %231 = math.tanh %230 : vector<2x128xf32>
    %232 = arith.mulf %227, %231 : vector<2x128xf32>
    %c0_41 = arith.constant 0 : index
    %c0_42 = arith.constant 0 : index
    %233 = vector.load %arg4[%c0_41, %c0_42] : memref<128x16xf32, #tpu.memory_space<vmem>>, vector<128x16xf32>
    %cst_43 = arith.constant dense<0.000000e+00> : vector<2x16xf32>
    %234 = tpu.matmul %232, %233, %cst_43 {dimension_numbers = #tpu.dot_dimension_numbers<[1], [0], [0], [1], [0, 0, 1, 1], [], []>} : vector<2x128xf32>, vector<128x16xf32>, vector<2x16xf32> -> vector<2x16xf32>
    %c0_44 = arith.constant 0 : index
    %c0_45 = arith.constant 0 : index
    %235 = vector.load %arg5[%c0_44, %c0_45] : memref<1x16xf32, #tpu.memory_space<vmem>>, vector<1x16xf32>
    %236 = vector.broadcast %235 : vector<1x16xf32> to vector<2x16xf32>
    %237 = arith.addf %234, %236 : vector<2x16xf32>
    %c0_46 = arith.constant 0 : index
    %c0_47 = arith.constant 0 : index
    %238 = vector.load %arg12[%c0_46, %c0_47] : memref<2x16xf32, #tpu.memory_space<vmem>>, vector<2x16xf32>
    tpu.vector_store %arg12[%c0_46, %c0_47], %237 {strides = array<i32>} : memref<2x16xf32, #tpu.memory_space<vmem>>, vector<2x16xf32>,
    %c0_48 = arith.constant 0 : index
    %c0_49 = arith.constant 0 : index
    %239 = vector.load %arg6[%c0_48, %c0_49] : memref<16x32xf32, #tpu.memory_space<vmem>>, vector<16x32xf32>
    %cst_50 = arith.constant dense<0.000000e+00> : vector<2x32xf32>
    %240 = tpu.matmul %237, %239, %cst_50 {dimension_numbers = #tpu.dot_dimension_numbers<[1], [0], [0], [1], [0, 0, 1, 1], [], []>} : vector<2x16xf32>, vector<16x32xf32>, vector<2x32xf32> -> vector<2x32xf32>
    %c0_51 = arith.constant 0 : index
    %c0_52 = arith.constant 0 : index
    %241 = vector.load %arg7[%c0_51, %c0_52] : memref<1x32xf32, #tpu.memory_space<vmem>>, vector<1x32xf32>
    %242 = vector.broadcast %241 : vector<1x32xf32> to vector<2x32xf32>
    %243 = arith.addf %240, %242 : vector<2x32xf32>
    %c0_53 = arith.constant 0 : index
    %c0_54 = arith.constant 0 : index
    %244 = vector.load %arg8[%c0_53, %c0_54] : memref<32x512xf32, #tpu.memory_space<vmem>>, vector<32x512xf32>
    %cst_55 = arith.constant dense<0.000000e+00> : vector<2x512xf32>
    %245 = tpu.matmul %243, %244, %cst_55 {dimension_numbers = #tpu.dot_dimension_numbers<[1], [0], [0], [1], [0, 0, 1, 1], [], []>} : vector<2x32xf32>, vector<32x512xf32>, vector<2x512xf32> -> vector<2x512xf32>
    %c0_56 = arith.constant 0 : index
    %c0_57 = arith.constant 0 : index
    %246 = vector.load %arg10[%c0_56, %c0_57] : memref<1x512xf32, #tpu.memory_space<vmem>>, vector<1x512xf32>
    %247 = vector.broadcast %246 : vector<1x512xf32> to vector<2x512xf32>
    %248 = arith.addf %245, %247 : vector<2x512xf32>
    %c0_58 = arith.constant 0 : index
    %c0_59 = arith.constant 0 : index
    %249 = vector.load %arg9[%c0_58, %c0_59] : memref<128x512xf32, #tpu.memory_space<vmem>>, vector<128x512xf32>
    %cst_60 = arith.constant 0.000000e+00 : f32
    %250 = vector.broadcast %cst_60 : f32 to vector<2x128xf32>
    %cst_61 = arith.constant 0.000000e+00 : f32
    %251 = vector.broadcast %cst_61 : f32 to vector<2x128xf32>
    %cst_62 = arith.constant dense<0.000000e+00> : vector<2x512xf32>
    %252 = tpu.matmul %250, %249, %cst_62 {dimension_numbers = #tpu.dot_dimension_numbers<[1], [0], [0], [1], [0, 0, 1, 1], [], []>} : vector<2x128xf32>, vector<128x512xf32>, vector<2x512xf32> -> vector<2x512xf32>
    %253 = arith.addf %248, %252 : vector<2x512xf32>
    %254 = vector.extract_strided_slice %253 {offsets = [0, 0], sizes = [2, 128], strides = [1, 1]} : vector<2x512xf32> to vector<2x128xf32>
    %255 = arith.negf %254 : vector<2x128xf32>
    %256 = math.exp %255 : vector<2x128xf32>
    %cst_63 = arith.constant 1.000000e+00 : f32
    %257 = vector.broadcast %cst_63 : f32 to vector<2x128xf32>
    %258 = arith.addf %257, %256 : vector<2x128xf32>
    %259 = arith.divf %257, %258 : vector<2x128xf32>
    %260 = vector.extract_strided_slice %253 {offsets = [0, 128], sizes = [2, 128], strides = [1, 1]} : vector<2x512xf32> to vector<2x128xf32>
    %261 = arith.negf %260 : vector<2x128xf32>
    %262 = math.exp %261 : vector<2x128xf32>
    %cst_64 = arith.constant 1.000000e+00 : f32
    %263 = vector.broadcast %cst_64 : f32 to vector<2x128xf32>
    %264 = arith.addf %263, %262 : vector<2x128xf32>
    %265 = arith.divf %263, %264 : vector<2x128xf32>
    %266 = vector.extract_strided_slice %253 {offsets = [0, 256], sizes = [2, 128], strides = [1, 1]} : vector<2x512xf32> to vector<2x128xf32>
    %267 = math.tanh %266 : vector<2x128xf32>
    %268 = vector.extract_strided_slice %253 {offsets = [0, 384], sizes = [2, 128], strides = [1, 1]} : vector<2x512xf32> to vector<2x128xf32>
    %269 = arith.negf %268 : vector<2x128xf32>
    %270 = math.exp %269 : vector<2x128xf32>
    %cst_65 = arith.constant 1.000000e+00 : f32
    %271 = vector.broadcast %cst_65 : f32 to vector<2x128xf32>
    %272 = arith.addf %271, %270 : vector<2x128xf32>
    %273 = arith.divf %271, %272 : vector<2x128xf32>
    %274 = arith.mulf %265, %251 : vector<2x128xf32>
    %275 = arith.mulf %259, %267 : vector<2x128xf32>
    %276 = arith.addf %274, %275 : vector<2x128xf32>
    %277 = math.tanh %276 : vector<2x128xf32>
    %278 = arith.mulf %273, %277 : vector<2x128xf32>
    %c0_66 = arith.constant 0 : index
    %c0_67 = arith.constant 0 : index
    %c0_68 = arith.constant 0 : index
    %279 = vector.load %arg13[%c0_66, %c0_67, %c0_68] : memref<8x2x128xf32, #tpu.memory_space<vmem>>, vector<1x2x128xf32>
    %280 = vector.shape_cast %279 : vector<1x2x128xf32> to vector<2x128xf32>
    %281 = vector.shape_cast %278 : vector<2x128xf32> to vector<1x2x128xf32>
    tpu.vector_store %arg13[%c0_66, %c0_67, %c0_68], %281 {strides = array<i32>} : memref<8x2x128xf32, #tpu.memory_space<vmem>>, vector<1x2x128xf32>,
    %cst_69 = arith.constant dense<0.000000e+00> : vector<2x512xf32>
    %282 = tpu.matmul %278, %249, %cst_69 {dimension_numbers = #tpu.dot_dimension_numbers<[1], [0], [0], [1], [0, 0, 1, 1], [], []>} : vector<2x128xf32>, vector<128x512xf32>, vector<2x512xf32> -> vector<2x512xf32>
    %283 = arith.addf %248, %282 : vector<2x512xf32>
    %284 = vector.extract_strided_slice %283 {offsets = [0, 0], sizes = [2, 128], strides = [1, 1]} : vector<2x512xf32> to vector<2x128xf32>
    %285 = arith.negf %284 : vector<2x128xf32>
    %286 = math.exp %285 : vector<2x128xf32>
    %cst_70 = arith.constant 1.000000e+00 : f32
    %287 = vector.broadcast %cst_70 : f32 to vector<2x128xf32>
    %288 = arith.addf %287, %286 : vector<2x128xf32>
    %289 = arith.divf %287, %288 : vector<2x128xf32>
    %290 = vector.extract_strided_slice %283 {offsets = [0, 128], sizes = [2, 128], strides = [1, 1]} : vector<2x512xf32> to vector<2x128xf32>
    %291 = arith.negf %290 : vector<2x128xf32>
    %292 = math.exp %291 : vector<2x128xf32>
    %cst_71 = arith.constant 1.000000e+00 : f32
    %293 = vector.broadcast %cst_71 : f32 to vector<2x128xf32>
    %294 = arith.addf %293, %292 : vector<2x128xf32>
    %295 = arith.divf %293, %294 : vector<2x128xf32>
    %296 = vector.extract_strided_slice %283 {offsets = [0, 256], sizes = [2, 128], strides = [1, 1]} : vector<2x512xf32> to vector<2x128xf32>
    %297 = math.tanh %296 : vector<2x128xf32>
    %298 = vector.extract_strided_slice %283 {offsets = [0, 384], sizes = [2, 128], strides = [1, 1]} : vector<2x512xf32> to vector<2x128xf32>
    %299 = arith.negf %298 : vector<2x128xf32>
    %300 = math.exp %299 : vector<2x128xf32>
    %cst_72 = arith.constant 1.000000e+00 : f32
    %301 = vector.broadcast %cst_72 : f32 to vector<2x128xf32>
    %302 = arith.addf %301, %300 : vector<2x128xf32>
    %303 = arith.divf %301, %302 : vector<2x128xf32>
    %304 = arith.mulf %295, %276 : vector<2x128xf32>
    %305 = arith.mulf %289, %297 : vector<2x128xf32>
    %306 = arith.addf %304, %305 : vector<2x128xf32>
    %307 = math.tanh %306 : vector<2x128xf32>
    %308 = arith.mulf %303, %307 : vector<2x128xf32>
    %c1 = arith.constant 1 : index
    %c0_73 = arith.constant 0 : index
    %c0_74 = arith.constant 0 : index
    %309 = vector.load %arg13[%c1, %c0_73, %c0_74] : memref<8x2x128xf32, #tpu.memory_space<vmem>>, vector<1x2x128xf32>
    %310 = vector.shape_cast %309 : vector<1x2x128xf32> to vector<2x128xf32>
    %311 = vector.shape_cast %308 : vector<2x128xf32> to vector<1x2x128xf32>
    tpu.vector_store %arg13[%c1, %c0_73, %c0_74], %311 {strides = array<i32>} : memref<8x2x128xf32, #tpu.memory_space<vmem>>, vector<1x2x128xf32>,
    %cst_75 = arith.constant dense<0.000000e+00> : vector<2x512xf32>
    %312 = tpu.matmul %308, %249, %cst_75 {dimension_numbers = #tpu.dot_dimension_numbers<[1], [0], [0], [1], [0, 0, 1, 1], [], []>} : vector<2x128xf32>, vector<128x512xf32>, vector<2x512xf32> -> vector<2x512xf32>
    %313 = arith.addf %248, %312 : vector<2x512xf32>
    %314 = vector.extract_strided_slice %313 {offsets = [0, 0], sizes = [2, 128], strides = [1, 1]} : vector<2x512xf32> to vector<2x128xf32>
    %315 = arith.negf %314 : vector<2x128xf32>
    %316 = math.exp %315 : vector<2x128xf32>
    %cst_76 = arith.constant 1.000000e+00 : f32
    %317 = vector.broadcast %cst_76 : f32 to vector<2x128xf32>
    %318 = arith.addf %317, %316 : vector<2x128xf32>
    %319 = arith.divf %317, %318 : vector<2x128xf32>
    %320 = vector.extract_strided_slice %313 {offsets = [0, 128], sizes = [2, 128], strides = [1, 1]} : vector<2x512xf32> to vector<2x128xf32>
    %321 = arith.negf %320 : vector<2x128xf32>
    %322 = math.exp %321 : vector<2x128xf32>
    %cst_77 = arith.constant 1.000000e+00 : f32
    %323 = vector.broadcast %cst_77 : f32 to vector<2x128xf32>
    %324 = arith.addf %323, %322 : vector<2x128xf32>
    %325 = arith.divf %323, %324 : vector<2x128xf32>
    %326 = vector.extract_strided_slice %313 {offsets = [0, 256], sizes = [2, 128], strides = [1, 1]} : vector<2x512xf32> to vector<2x128xf32>
    %327 = math.tanh %326 : vector<2x128xf32>
    %328 = vector.extract_strided_slice %313 {offsets = [0, 384], sizes = [2, 128], strides = [1, 1]} : vector<2x512xf32> to vector<2x128xf32>
    %329 = arith.negf %328 : vector<2x128xf32>
    %330 = math.exp %329 : vector<2x128xf32>
    %cst_78 = arith.constant 1.000000e+00 : f32
    %331 = vector.broadcast %cst_78 : f32 to vector<2x128xf32>
    %332 = arith.addf %331, %330 : vector<2x128xf32>
    %333 = arith.divf %331, %332 : vector<2x128xf32>
    %334 = arith.mulf %325, %306 : vector<2x128xf32>
    %335 = arith.mulf %319, %327 : vector<2x128xf32>
    %336 = arith.addf %334, %335 : vector<2x128xf32>
    %337 = math.tanh %336 : vector<2x128xf32>
    %338 = arith.mulf %333, %337 : vector<2x128xf32>
    %c2 = arith.constant 2 : index
    %c0_79 = arith.constant 0 : index
    %c0_80 = arith.constant 0 : index
    %339 = vector.load %arg13[%c2, %c0_79, %c0_80] : memref<8x2x128xf32, #tpu.memory_space<vmem>>, vector<1x2x128xf32>
    %340 = vector.shape_cast %339 : vector<1x2x128xf32> to vector<2x128xf32>
    %341 = vector.shape_cast %338 : vector<2x128xf32> to vector<1x2x128xf32>
    tpu.vector_store %arg13[%c2, %c0_79, %c0_80], %341 {strides = array<i32>} : memref<8x2x128xf32, #tpu.memory_space<vmem>>, vector<1x2x128xf32>,
    %cst_81 = arith.constant dense<0.000000e+00> : vector<2x512xf32>
    %342 = tpu.matmul %338, %249, %cst_81 {dimension_numbers = #tpu.dot_dimension_numbers<[1], [0], [0], [1], [0, 0, 1, 1], [], []>} : vector<2x128xf32>, vector<128x512xf32>, vector<2x512xf32> -> vector<2x512xf32>
    %343 = arith.addf %248, %342 : vector<2x512xf32>
    %344 = vector.extract_strided_slice %343 {offsets = [0, 0], sizes = [2, 128], strides = [1, 1]} : vector<2x512xf32> to vector<2x128xf32>
    %345 = arith.negf %344 : vector<2x128xf32>
    %346 = math.exp %345 : vector<2x128xf32>
    %cst_82 = arith.constant 1.000000e+00 : f32
    %347 = vector.broadcast %cst_82 : f32 to vector<2x128xf32>
    %348 = arith.addf %347, %346 : vector<2x128xf32>
    %349 = arith.divf %347, %348 : vector<2x128xf32>
    %350 = vector.extract_strided_slice %343 {offsets = [0, 128], sizes = [2, 128], strides = [1, 1]} : vector<2x512xf32> to vector<2x128xf32>
    %351 = arith.negf %350 : vector<2x128xf32>
    %352 = math.exp %351 : vector<2x128xf32>
    %cst_83 = arith.constant 1.000000e+00 : f32
    %353 = vector.broadcast %cst_83 : f32 to vector<2x128xf32>
    %354 = arith.addf %353, %352 : vector<2x128xf32>
    %355 = arith.divf %353, %354 : vector<2x128xf32>
    %356 = vector.extract_strided_slice %343 {offsets = [0, 256], sizes = [2, 128], strides = [1, 1]} : vector<2x512xf32> to vector<2x128xf32>
    %357 = math.tanh %356 : vector<2x128xf32>
    %358 = vector.extract_strided_slice %343 {offsets = [0, 384], sizes = [2, 128], strides = [1, 1]} : vector<2x512xf32> to vector<2x128xf32>
    %359 = arith.negf %358 : vector<2x128xf32>
    %360 = math.exp %359 : vector<2x128xf32>
    %cst_84 = arith.constant 1.000000e+00 : f32
    %361 = vector.broadcast %cst_84 : f32 to vector<2x128xf32>
    %362 = arith.addf %361, %360 : vector<2x128xf32>
    %363 = arith.divf %361, %362 : vector<2x128xf32>
    %364 = arith.mulf %355, %336 : vector<2x128xf32>
    %365 = arith.mulf %349, %357 : vector<2x128xf32>
    %366 = arith.addf %364, %365 : vector<2x128xf32>
    %367 = math.tanh %366 : vector<2x128xf32>
    %368 = arith.mulf %363, %367 : vector<2x128xf32>
    %c3 = arith.constant 3 : index
    %c0_85 = arith.constant 0 : index
    %c0_86 = arith.constant 0 : index
    %369 = vector.load %arg13[%c3, %c0_85, %c0_86] : memref<8x2x128xf32, #tpu.memory_space<vmem>>, vector<1x2x128xf32>
    %370 = vector.shape_cast %369 : vector<1x2x128xf32> to vector<2x128xf32>
    %371 = vector.shape_cast %368 : vector<2x128xf32> to vector<1x2x128xf32>
    tpu.vector_store %arg13[%c3, %c0_85, %c0_86], %371 {strides = array<i32>} : memref<8x2x128xf32, #tpu.memory_space<vmem>>, vector<1x2x128xf32>,
    %cst_87 = arith.constant dense<0.000000e+00> : vector<2x512xf32>
    %372 = tpu.matmul %368, %249, %cst_87 {dimension_numbers = #tpu.dot_dimension_numbers<[1], [0], [0], [1], [0, 0, 1, 1], [], []>} : vector<2x128xf32>, vector<128x512xf32>, vector<2x512xf32> -> vector<2x512xf32>
    %373 = arith.addf %248, %372 : vector<2x512xf32>
    %374 = vector.extract_strided_slice %373 {offsets = [0, 0], sizes = [2, 128], strides = [1, 1]} : vector<2x512xf32> to vector<2x128xf32>
    %375 = arith.negf %374 : vector<2x128xf32>
    %376 = math.exp %375 : vector<2x128xf32>
    %cst_88 = arith.constant 1.000000e+00 : f32
    %377 = vector.broadcast %cst_88 : f32 to vector<2x128xf32>
    %378 = arith.addf %377, %376 : vector<2x128xf32>
    %379 = arith.divf %377, %378 : vector<2x128xf32>
    %380 = vector.extract_strided_slice %373 {offsets = [0, 128], sizes = [2, 128], strides = [1, 1]} : vector<2x512xf32> to vector<2x128xf32>
    %381 = arith.negf %380 : vector<2x128xf32>
    %382 = math.exp %381 : vector<2x128xf32>
    %cst_89 = arith.constant 1.000000e+00 : f32
    %383 = vector.broadcast %cst_89 : f32 to vector<2x128xf32>
    %384 = arith.addf %383, %382 : vector<2x128xf32>
    %385 = arith.divf %383, %384 : vector<2x128xf32>
    %386 = vector.extract_strided_slice %373 {offsets = [0, 256], sizes = [2, 128], strides = [1, 1]} : vector<2x512xf32> to vector<2x128xf32>
    %387 = math.tanh %386 : vector<2x128xf32>
    %388 = vector.extract_strided_slice %373 {offsets = [0, 384], sizes = [2, 128], strides = [1, 1]} : vector<2x512xf32> to vector<2x128xf32>
    %389 = arith.negf %388 : vector<2x128xf32>
    %390 = math.exp %389 : vector<2x128xf32>
    %cst_90 = arith.constant 1.000000e+00 : f32
    %391 = vector.broadcast %cst_90 : f32 to vector<2x128xf32>
    %392 = arith.addf %391, %390 : vector<2x128xf32>
    %393 = arith.divf %391, %392 : vector<2x128xf32>
    %394 = arith.mulf %385, %366 : vector<2x128xf32>
    %395 = arith.mulf %379, %387 : vector<2x128xf32>
    %396 = arith.addf %394, %395 : vector<2x128xf32>
    %397 = math.tanh %396 : vector<2x128xf32>
    %398 = arith.mulf %393, %397 : vector<2x128xf32>
    %c4 = arith.constant 4 : index
    %c0_91 = arith.constant 0 : index
    %c0_92 = arith.constant 0 : index
    %399 = vector.load %arg13[%c4, %c0_91, %c0_92] : memref<8x2x128xf32, #tpu.memory_space<vmem>>, vector<1x2x128xf32>
    %400 = vector.shape_cast %399 : vector<1x2x128xf32> to vector<2x128xf32>
    %401 = vector.shape_cast %398 : vector<2x128xf32> to vector<1x2x128xf32>
    tpu.vector_store %arg13[%c4, %c0_91, %c0_92], %401 {strides = array<i32>} : memref<8x2x128xf32, #tpu.memory_space<vmem>>, vector<1x2x128xf32>,
    %cst_93 = arith.constant dense<0.000000e+00> : vector<2x512xf32>
    %402 = tpu.matmul %398, %249, %cst_93 {dimension_numbers = #tpu.dot_dimension_numbers<[1], [0], [0], [1], [0, 0, 1, 1], [], []>} : vector<2x128xf32>, vector<128x512xf32>, vector<2x512xf32> -> vector<2x512xf32>
    %403 = arith.addf %248, %402 : vector<2x512xf32>
    %404 = vector.extract_strided_slice %403 {offsets = [0, 0], sizes = [2, 128], strides = [1, 1]} : vector<2x512xf32> to vector<2x128xf32>
    %405 = arith.negf %404 : vector<2x128xf32>
    %406 = math.exp %405 : vector<2x128xf32>
    %cst_94 = arith.constant 1.000000e+00 : f32
    %407 = vector.broadcast %cst_94 : f32 to vector<2x128xf32>
    %408 = arith.addf %407, %406 : vector<2x128xf32>
    %409 = arith.divf %407, %408 : vector<2x128xf32>
    %410 = vector.extract_strided_slice %403 {offsets = [0, 128], sizes = [2, 128], strides = [1, 1]} : vector<2x512xf32> to vector<2x128xf32>
    %411 = arith.negf %410 : vector<2x128xf32>
    %412 = math.exp %411 : vector<2x128xf32>
    %cst_95 = arith.constant 1.000000e+00 : f32
    %413 = vector.broadcast %cst_95 : f32 to vector<2x128xf32>
    %414 = arith.addf %413, %412 : vector<2x128xf32>
    %415 = arith.divf %413, %414 : vector<2x128xf32>
    %416 = vector.extract_strided_slice %403 {offsets = [0, 256], sizes = [2, 128], strides = [1, 1]} : vector<2x512xf32> to vector<2x128xf32>
    %417 = math.tanh %416 : vector<2x128xf32>
    %418 = vector.extract_strided_slice %403 {offsets = [0, 384], sizes = [2, 128], strides = [1, 1]} : vector<2x512xf32> to vector<2x128xf32>
    %419 = arith.negf %418 : vector<2x128xf32>
    %420 = math.exp %419 : vector<2x128xf32>
    %cst_96 = arith.constant 1.000000e+00 : f32
    %421 = vector.broadcast %cst_96 : f32 to vector<2x128xf32>
    %422 = arith.addf %421, %420 : vector<2x128xf32>
    %423 = arith.divf %421, %422 : vector<2x128xf32>
    %424 = arith.mulf %415, %396 : vector<2x128xf32>
    %425 = arith.mulf %409, %417 : vector<2x128xf32>
    %426 = arith.addf %424, %425 : vector<2x128xf32>
    %427 = math.tanh %426 : vector<2x128xf32>
    %428 = arith.mulf %423, %427 : vector<2x128xf32>
    %c5 = arith.constant 5 : index
    %c0_97 = arith.constant 0 : index
    %c0_98 = arith.constant 0 : index
    %429 = vector.load %arg13[%c5, %c0_97, %c0_98] : memref<8x2x128xf32, #tpu.memory_space<vmem>>, vector<1x2x128xf32>
    %430 = vector.shape_cast %429 : vector<1x2x128xf32> to vector<2x128xf32>
    %431 = vector.shape_cast %428 : vector<2x128xf32> to vector<1x2x128xf32>
    tpu.vector_store %arg13[%c5, %c0_97, %c0_98], %431 {strides = array<i32>} : memref<8x2x128xf32, #tpu.memory_space<vmem>>, vector<1x2x128xf32>,
    %cst_99 = arith.constant dense<0.000000e+00> : vector<2x512xf32>
    %432 = tpu.matmul %428, %249, %cst_99 {dimension_numbers = #tpu.dot_dimension_numbers<[1], [0], [0], [1], [0, 0, 1, 1], [], []>} : vector<2x128xf32>, vector<128x512xf32>, vector<2x512xf32> -> vector<2x512xf32>
    %433 = arith.addf %248, %432 : vector<2x512xf32>
    %434 = vector.extract_strided_slice %433 {offsets = [0, 0], sizes = [2, 128], strides = [1, 1]} : vector<2x512xf32> to vector<2x128xf32>
    %435 = arith.negf %434 : vector<2x128xf32>
    %436 = math.exp %435 : vector<2x128xf32>
    %cst_100 = arith.constant 1.000000e+00 : f32
    %437 = vector.broadcast %cst_100 : f32 to vector<2x128xf32>
    %438 = arith.addf %437, %436 : vector<2x128xf32>
    %439 = arith.divf %437, %438 : vector<2x128xf32>
    %440 = vector.extract_strided_slice %433 {offsets = [0, 128], sizes = [2, 128], strides = [1, 1]} : vector<2x512xf32> to vector<2x128xf32>
    %441 = arith.negf %440 : vector<2x128xf32>
    %442 = math.exp %441 : vector<2x128xf32>
    %cst_101 = arith.constant 1.000000e+00 : f32
    %443 = vector.broadcast %cst_101 : f32 to vector<2x128xf32>
    %444 = arith.addf %443, %442 : vector<2x128xf32>
    %445 = arith.divf %443, %444 : vector<2x128xf32>
    %446 = vector.extract_strided_slice %433 {offsets = [0, 256], sizes = [2, 128], strides = [1, 1]} : vector<2x512xf32> to vector<2x128xf32>
    %447 = math.tanh %446 : vector<2x128xf32>
    %448 = vector.extract_strided_slice %433 {offsets = [0, 384], sizes = [2, 128], strides = [1, 1]} : vector<2x512xf32> to vector<2x128xf32>
    %449 = arith.negf %448 : vector<2x128xf32>
    %450 = math.exp %449 : vector<2x128xf32>
    %cst_102 = arith.constant 1.000000e+00 : f32
    %451 = vector.broadcast %cst_102 : f32 to vector<2x128xf32>
    %452 = arith.addf %451, %450 : vector<2x128xf32>
    %453 = arith.divf %451, %452 : vector<2x128xf32>
    %454 = arith.mulf %445, %426 : vector<2x128xf32>
    %455 = arith.mulf %439, %447 : vector<2x128xf32>
    %456 = arith.addf %454, %455 : vector<2x128xf32>
    %457 = math.tanh %456 : vector<2x128xf32>
    %458 = arith.mulf %453, %457 : vector<2x128xf32>
    %c6 = arith.constant 6 : index
    %c0_103 = arith.constant 0 : index
    %c0_104 = arith.constant 0 : index
    %459 = vector.load %arg13[%c6, %c0_103, %c0_104] : memref<8x2x128xf32, #tpu.memory_space<vmem>>, vector<1x2x128xf32>
    %460 = vector.shape_cast %459 : vector<1x2x128xf32> to vector<2x128xf32>
    %461 = vector.shape_cast %458 : vector<2x128xf32> to vector<1x2x128xf32>
    tpu.vector_store %arg13[%c6, %c0_103, %c0_104], %461 {strides = array<i32>} : memref<8x2x128xf32, #tpu.memory_space<vmem>>, vector<1x2x128xf32>,
    %cst_105 = arith.constant dense<0.000000e+00> : vector<2x512xf32>
    %462 = tpu.matmul %458, %249, %cst_105 {dimension_numbers = #tpu.dot_dimension_numbers<[1], [0], [0], [1], [0, 0, 1, 1], [], []>} : vector<2x128xf32>, vector<128x512xf32>, vector<2x512xf32> -> vector<2x512xf32>
    %463 = arith.addf %248, %462 : vector<2x512xf32>
    %464 = vector.extract_strided_slice %463 {offsets = [0, 0], sizes = [2, 128], strides = [1, 1]} : vector<2x512xf32> to vector<2x128xf32>
    %465 = arith.negf %464 : vector<2x128xf32>
    %466 = math.exp %465 : vector<2x128xf32>
    %cst_106 = arith.constant 1.000000e+00 : f32
    %467 = vector.broadcast %cst_106 : f32 to vector<2x128xf32>
    %468 = arith.addf %467, %466 : vector<2x128xf32>
    %469 = arith.divf %467, %468 : vector<2x128xf32>
    %470 = vector.extract_strided_slice %463 {offsets = [0, 128], sizes = [2, 128], strides = [1, 1]} : vector<2x512xf32> to vector<2x128xf32>
    %471 = arith.negf %470 : vector<2x128xf32>
    %472 = math.exp %471 : vector<2x128xf32>
    %cst_107 = arith.constant 1.000000e+00 : f32
    %473 = vector.broadcast %cst_107 : f32 to vector<2x128xf32>
    %474 = arith.addf %473, %472 : vector<2x128xf32>
    %475 = arith.divf %473, %474 : vector<2x128xf32>
    %476 = vector.extract_strided_slice %463 {offsets = [0, 256], sizes = [2, 128], strides = [1, 1]} : vector<2x512xf32> to vector<2x128xf32>
    %477 = math.tanh %476 : vector<2x128xf32>
    %478 = vector.extract_strided_slice %463 {offsets = [0, 384], sizes = [2, 128], strides = [1, 1]} : vector<2x512xf32> to vector<2x128xf32>
    %479 = arith.negf %478 : vector<2x128xf32>
    %480 = math.exp %479 : vector<2x128xf32>
    %cst_108 = arith.constant 1.000000e+00 : f32
    %481 = vector.broadcast %cst_108 : f32 to vector<2x128xf32>
    %482 = arith.addf %481, %480 : vector<2x128xf32>
    %483 = arith.divf %481, %482 : vector<2x128xf32>
    %484 = arith.mulf %475, %456 : vector<2x128xf32>
    %485 = arith.mulf %469, %477 : vector<2x128xf32>
    %486 = arith.addf %484, %485 : vector<2x128xf32>
    %487 = math.tanh %486 : vector<2x128xf32>
    %488 = arith.mulf %483, %487 : vector<2x128xf32>
    %c7 = arith.constant 7 : index
    %c0_109 = arith.constant 0 : index
    %c0_110 = arith.constant 0 : index
    %489 = vector.load %arg13[%c7, %c0_109, %c0_110] : memref<8x2x128xf32, #tpu.memory_space<vmem>>, vector<1x2x128xf32>
    %490 = vector.shape_cast %489 : vector<1x2x128xf32> to vector<2x128xf32>
    %491 = vector.shape_cast %488 : vector<2x128xf32> to vector<1x2x128xf32>
    tpu.vector_store %arg13[%c7, %c0_109, %c0_110], %491 {strides = array<i32>} : memref<8x2x128xf32, #tpu.memory_space<vmem>>, vector<1x2x128xf32>,
    %c0_111 = arith.constant 0 : index
    %c0_112 = arith.constant 0 : index
    %c0_113 = arith.constant 0 : index
    %492 = vector.load %arg13[%c0_111, %c0_112, %c0_113] : memref<8x2x128xf32, #tpu.memory_space<vmem>>, vector<8x2x128xf32>
    %493 = arith.negf %492 : vector<8x2x128xf32>
    %494 = math.exp %493 : vector<8x2x128xf32>
    %cst_114 = arith.constant 1.000000e+00 : f32
    %495 = vector.broadcast %cst_114 : f32 to vector<8x2x128xf32>
    %496 = arith.addf %495, %494 : vector<8x2x128xf32>
    %497 = arith.divf %495, %496 : vector<8x2x128xf32>
    %c0_115 = arith.constant 0 : index
    %c0_116 = arith.constant 0 : index
    %c0_117 = arith.constant 0 : index
    %498 = vector.load %arg11[%c0_115, %c0_116, %c0_117] : memref<8x2x128xf32, #tpu.memory_space<vmem>>, vector<8x2x128xf32>
    tpu.vector_store %arg11[%c0_115, %c0_116, %c0_117], %497 {strides = array<i32>} : memref<8x2x128xf32, #tpu.memory_space<vmem>>, vector<8x2x128xf32>,
    return
  }
}

</mosaic_0001>

<bundles_post_ra>
// kernel: lstm_autoencoder_forward.1
= control target key start
LH: loop header
LB: loop body
LE: loop exit
PB: predicated region body
PF: predicated region fallthrough
CT: control target
= control target key end

     0   :  { %vm69_vm0 = vcmask 64512   ;;  %v5158_v3 = vmov 0.0   ;;  %s6635_s0 = inlined_call_operand.vmem [shape: f32[16,8], index: 0, kind: input, shape index: {}]   ;;  %s6636_s1 = inlined_call_operand.vmem [shape: f32[8,512], index: 1, kind: input, shape index: {}]   ;;  %s6637_s2 = inlined_call_operand.vmem [shape: f32[128,512], index: 2, kind: input, shape index: {}]   ;;  %s6638_s3 = inlined_call_operand.vmem [shape: f32[1,512], index: 3, kind: input, shape index: {}]   ;;  %s6639_s4 = inlined_call_operand.vmem [shape: f32[128,16], index: 4, kind: input, shape index: {}]   ;;  %s6640_s5 = inlined_call_operand.vmem [shape: f32[1,16], index: 5, kind: input, shape index: {}]   ;;  %s6641_s6 = inlined_call_operand.vmem [shape: f32[16,32], index: 6, kind: input, shape index: {}]   ;;  %s6642_s7 = inlined_call_operand.vmem [shape: f32[1,32], index: 7, kind: input, shape index: {}]   ;;  %s6643_s8 = inlined_call_operand.vmem [shape: f32[32,512], index: 8, kind: input, shape index: {}]   ;;  %s6644_s9 = inlined_call_operand.vmem [shape: f32[128,512], index: 9, kind: input, shape index: {}]   ;;  %s6645_s10 = inlined_call_operand.vmem [shape: f32[1,512], index: 10, kind: input, shape index: {}]   ;;  %s6646_s11 = inlined_call_operand.vmem [shape: f32[8,2,128], index: 11, kind: output, shape index: {0}]   ;;  %s6647_s12 = inlined_call_operand.hbm [shape: f32[2,16], index: 12, kind: output, shape index: {1}]  }
   0x1   :  { %v44_v0 = vld [vmem:[%s6636_s1 + $0x8] sm:$0xff]  ;;  %v43_v1 = vld [vmem:[%s6636_s1] sm:$0xff]  ;;  %140 = vmatprep.mubr.f32.mxu1 %v5158_v3  ;;  %358 = vmatprep.mubr.f32.mxu0 %v5158_v3  ;;  %v46_v13 = vld [vmem:[%s6636_s1 + $0x18] sm:$0xff] }
   0x2   :  { %v41_v2 = vld [vmem:[%s6635_s0] sm:$0xff]  ;;  %76 = vmatprep.subr.mxu1 %v44_v0  ;;  %v231_v4 = vld [vmem:[%s6637_s2 + $0x8] sm:$0xff]  ;;  %v45_v17 = vld [vmem:[%s6636_s1 + $0x10] sm:$0xff] }
   0x3   :  { %v235_v5 = vld [vmem:[%s6637_s2 + $0x28] sm:$0xff]  ;;  %v230_v6 = vld [vmem:[%s6637_s2] sm:$0xff]  ;;  %77 = vmatpush1.msra.mxu1 %v43_v1  ;;  %v233_v18 = vld [vmem:[%s6637_s2 + $0x18] sm:$0xff] }
   0x4   :  { %v5246_v7 = vpack.c.bf16 %v235_v5, %v231_v4  ;;  %v234_v8 = vld [vmem:[%s6637_s2 + $0x20] sm:$0xff]  ;;  %v5254_v9 = vld [vmem:[%s6635_s0 + $0x8] sm:$0xff]  ;;  %3648 = vmatmul.mubr.msk.f32.vlgmr.msra.gmra.mrb[0].mxu1 %vm69_vm0, %v41_v2  ;;  %153 = vmatprep.subr.mxu1 %v46_v13  ;;  %v237_v20 = vld [vmem:[%s6637_s2 + $0x38] sm:$0xff] }
   0x5   :  { %v239_v10 = vld [vmem:[%s6637_s2 + $0x48] sm:$0xff]  ;;  %v5261_v11 = vpack.c.bf16 %v234_v8, %v230_v6  ;;  %v238_v14 = vld [vmem:[%s6637_s2 + $0x40] sm:$0xff]  ;;  %146 = vmatprep.mubr.f32.mxu1 %v5158_v3  ;;  %154 = vmatpush1.msra.mxu1 %v45_v17  ;;  %v5298_v23 = vpack.c.bf16 %v237_v20, %v233_v18  ;;  %v232_v25 = vld [vmem:[%s6637_s2 + $0x10] sm:$0xff] }
   0x6   :  { %v243_v12 = vld [vmem:[%s6637_s2 + $0x68] sm:$0xff]  ;;  %3776 = vmatprep.subr.bf16.mxu0 %v5246_v7  ;;  %v242_v16 = vld [vmem:[%s6637_s2 + $0x60] sm:$0xff]  ;;  %v236_v26 = vld [vmem:[%s6637_s2 + $0x30] sm:$0xff] }
   0x7   :  { %v5274_v15 = vpack.c.bf16 %v243_v12, %v239_v10  ;;  %3778 = vmatpush1.bf16.msra.mxu0 %v5261_v11  ;;  %v5286_v19 = vpack.c.bf16 %v242_v16, %v238_v14  ;;  %v247_v21 = vld [vmem:[%s6637_s2 + $0x88] sm:$0xff]  ;;  %v246_v27 = vld [vmem:[%s6637_s2 + $0x80] sm:$0xff]  ;;  %v241_v29 = vld [vmem:[%s6637_s2 + $0x58] sm:$0xff]  ;;  %3808 = vmatprep.subr.bf16.mxu1 %v5298_v23  ;;  %v5324_v31 = vpack.c.bf16 %v236_v26, %v232_v25 }
   0x8   :  { %v251_v22 = vld [vmem:[%s6637_s2 + $0xa8] sm:$0xff]  ;;  %3649 = vmatmul.mubr.msk.f32.gmra.mrb[2].mxu1 %vm69_vm0, %v5254_v9  ;;  %v250_v28 = vld [vmem:[%s6637_s2 + $0xa0] sm:$0xff]  ;;  %v245_v30 = vld [vmem:[%s6637_s2 + $0x78] sm:$0xff] }
   0x9   :  { %3780 = vmatprep.subr.bf16.mxu0 %v5274_v15  ;;  %v5300_v24 = vpack.c.bf16 %v251_v22, %v247_v21  ;;  %217 = vmatprep.mubr.f32.mxu1 %v5158_v3  ;;  %v255_v32 = vld [vmem:[%s6637_s2 + $0xc8] sm:$0xff]  ;;  %v5333_v34 = vpack.c.bf16 %v250_v28, %v246_v27  ;;  %v5335_v35 = vpack.c.bf16 %v245_v30, %v241_v29  ;;  %v240_v36 = vld [vmem:[%s6637_s2 + $0x50] sm:$0xff]  ;;  %v254_v38 = vld [vmem:[%s6637_s2 + $0xc0] sm:$0xff] }
   0xa   :  { %v259_v33 = vld [vmem:[%s6637_s2 + $0xe8] sm:$0xff]  ;;  %v244_v37 = vld [vmem:[%s6637_s2 + $0x70] sm:$0xff]  ;;  %v258_v40 = vld [vmem:[%s6637_s2 + $0xe0] sm:$0xff] }
   0xb   :  { %3782 = vmatpush1.bf16.msra.mxu0 %v5286_v19  ;;  %v5347_v39 = vpack.c.bf16 %v259_v33, %v255_v32  ;;  %v249_v41 = vld [vmem:[%s6637_s2 + $0x98] sm:$0xff]  ;;  %v263_v43 = vld [vmem:[%s6637_s2 + $0x108] sm:$0xff]  ;;  %v5366_v45 = vpack.c.bf16 %v244_v37, %v240_v36  ;;  %v5371_v46 = vpack.c.bf16 %v258_v40, %v254_v38  ;;  %v248_v48 = vld [vmem:[%s6637_s2 + $0x90] sm:$0xff] }
   0xc   :  { %3784 = vmatprep.subr.bf16.mxu0 %v5300_v24  ;;  %v253_v42 = vld [vmem:[%s6637_s2 + $0xb8] sm:$0xff]  ;;  %3650 = vmatmul.mubr.msk.f32.vlgmr.msra.gmra.mrb[4].mxu1 %vm69_vm0, %v41_v2  ;;  %v267_v44 = vld [vmem:[%s6637_s2 + $0x128] sm:$0xff]  ;;  %v252_v49 = vld [vmem:[%s6637_s2 + $0xb0] sm:$0xff] }
   0xd   :  { %3810 = vmatpush1.bf16.msra.mxu1 %v5324_v31  ;;  %223 = vmatprep.mubr.f32.mxu1 %v5158_v3  ;;  %v5373_v47 = vpack.c.bf16 %v253_v42, %v249_v41  ;;  %v262_v50 = vld [vmem:[%s6637_s2 + $0x100] sm:$0xff]  ;;  %v5385_v51 = vpack.c.bf16 %v267_v44, %v263_v43  ;;  %v257_v53 = vld [vmem:[%s6637_s2 + $0xd8] sm:$0xff]  ;;  %v271_v55 = vld [vmem:[%s6637_s2 + $0x148] sm:$0xff]  ;;  %v5405_v57 = vpack.c.bf16 %v252_v49, %v248_v48 }
   0xe   :  { %3812 = vmatprep.subr.bf16.mxu1 %v5335_v35  ;;  %v266_v52 = vld [vmem:[%s6637_s2 + $0x120] sm:$0xff]  ;;  %v261_v54 = vld [vmem:[%s6637_s2 + $0xf8] sm:$0xff]  ;;  %v275_v56 = vld [vmem:[%s6637_s2 + $0x168] sm:$0xff] }
   0xf   :  { %3786 = vmatpush1.bf16.msra.mxu0 %v5333_v34  ;;  %v5410_v58 = vpack.c.bf16 %v266_v52, %v262_v50  ;;  %v5412_v59 = vpack.c.bf16 %v261_v54, %v257_v53  ;;  %v256_v60 = vld [vmem:[%s6637_s2 + $0xd0] sm:$0xff]  ;;  %v270_v62 = vld [vmem:[%s6637_s2 + $0x140] sm:$0xff]  ;;  %v5424_v63 = vpack.c.bf16 %v275_v56, %v271_v55  ;;  %v265_v1 = vld [vmem:[%s6637_s2 + $0x118] sm:$0xff] }
  0x10   :  { %3788 = vmatprep.subr.bf16.mxu0 %v5347_v39  ;;  %3651 = vmatmul.mubr.msk.f32.gmra.mrb[6].mxu1 %vm69_vm0, %v5254_v9  ;;  %v260_v61 = vld [vmem:[%s6637_s2 + $0xf0] sm:$0xff]  ;;  %v274_v0 = vld [vmem:[%s6637_s2 + $0x160] sm:$0xff]  ;;  %v269_v2 = vld [vmem:[%s6637_s2 + $0x138] sm:$0xff] }
  0x11   :  { %3814 = vmatpush1.bf16.msra.mxu1 %v5366_v45  ;;  %429 = vmatprep.mubr.f32.mxu1 %v5158_v3  ;;  %v279_v4 = vld [vmem:[%s6637_s2 + $0x188] sm:$0xff]  ;;  %v5442_v6 = vpack.c.bf16 %v260_v61, %v256_v60  ;;  %v5446_v8 = vpack.c.bf16 %v274_v0, %v270_v62  ;;  %v5448_v9 = vpack.c.bf16 %v269_v2, %v265_v1  ;;  %v264_v10 = vld [vmem:[%s6637_s2 + $0x110] sm:$0xff]  ;;  %v278_v13 = vld [vmem:[%s6637_s2 + $0x180] sm:$0xff] }
  0x12   :  { %3816 = vmatprep.subr.bf16.mxu1 %v5373_v47  ;;  %v283_v5 = vld [vmem:[%s6637_s2 + $0x1a8] sm:$0xff]  ;;  %v268_v12 = vld [vmem:[%s6637_s2 + $0x130] sm:$0xff]  ;;  %v282_v16 = vld [vmem:[%s6637_s2 + $0x1a0] sm:$0xff] }
  0x13   :  { %3790 = vmatpush1.bf16.msra.mxu0 %v5371_v46  ;;  %v5460_v14 = vpack.c.bf16 %v283_v5, %v279_v4  ;;  %v273_v17 = vld [vmem:[%s6637_s2 + $0x158] sm:$0xff]  ;;  %v287_v20 = vld [vmem:[%s6637_s2 + $0x1c8] sm:$0xff] }
  0x14   :  { %3792 = vmatprep.subr.bf16.mxu0 %v5385_v51  ;;  %v277_v18 = vld [vmem:[%s6637_s2 + $0x178] sm:$0xff]  ;;  %v291_v21 = vld [vmem:[%s6637_s2 + $0x1e8] sm:$0xff] }
  0x15   :  { %3818 = vmatpush1.bf16.msra.mxu1 %v5405_v57 }
  0x16   :  { %3820 = vmatprep.subr.bf16.mxu1 %v5412_v59 }
  0x17   :  { %3794 = vmatpush1.bf16.msra.mxu0 %v5410_v58 }
  0x18   :  { %3796 = vmatprep.subr.bf16.mxu0 %v5424_v63 }
  0x19   :  { %18 = vsyncpa [#allocation4], 0  ;;  %3822 = vmatpush1.bf16.msra.mxu1 %v5442_v6  ;;  %v5478_v22 = vpack.c.bf16 %v268_v12, %v264_v10  ;;  %v5482_v25 = vpack.c.bf16 %v282_v16, %v278_v13  ;;  %v5484_v26 = vpack.c.bf16 %v277_v18, %v273_v17  ;;  %v272_v27 = vld [vmem:[%s6637_s2 + $0x150] sm:$0xff]  ;;  %v286_v29 = vld [vmem:[%s6637_s2 + $0x1c0] sm:$0xff]  ;;  %v5496_v30 = vpack.c.bf16 %v291_v21, %v287_v20  ;;  %s5161_s17 = smov [#allocation3]  }
  0x1a   :  { %3824 = vmatprep.subr.bf16.mxu1 %v5448_v9  ;;  %v276_v28 = vld [vmem:[%s6637_s2 + $0x170] sm:$0xff]  ;;  %v290_v32 = vld [vmem:[%s6637_s2 + $0x1e0] sm:$0xff]  ;;  %v281_v33 = vld [vmem:[%s6637_s2 + $0x198] sm:$0xff]  ;;  %v49_v54 = vlaneseq  ;;  %vm5160_vm1 = vmmov 0   ;;  %vm1869_vm2 = vcmask 130048   ;;  %vm1858_vm3 = vcmask 123904  }
  0x1b   :  { %3798 = vmatpush1.bf16.msra.mxu0 %v5446_v8  ;;  %v285_v36 = vld [vmem:[%s6637_s2 + $0x1b8] sm:$0xff]  ;;  %v5508_v37 = vpack.c.bf16 %v276_v28, %v272_v27  ;;  %v5512_v38 = vpack.c.bf16 %v290_v32, %v286_v29  ;;  %v280_v41 = vld [vmem:[%s6637_s2 + $0x190] sm:$0xff]  ;;  %v47_v60 = vld [vmem:[%s6638_s3] sm:$0xf]  ;;  %vm1981_vm4 = vcmask 261120  }
  0x1c   :  { %3800 = vmatprep.subr.bf16.mxu0 %v5460_v14  ;;  %v5514_v40 = vpack.c.bf16 %v285_v36, %v281_v33  ;;  %v284_v42 = vld [vmem:[%s6637_s2 + $0x1b0] sm:$0xff]  ;;  %v289_v43 = vld [vmem:[%s6637_s2 + $0x1d8] sm:$0xff]  ;;  %v5585_v55 = vshrl.u32 %v49_v54, 7 }
  0x1d   :  { %3826 = vmatpush1.bf16.msra.mxu1 %v5478_v22  ;;  %v293_v44 = vld [vmem:[%s6637_s2 + $0x1f8] sm:$0xff]  ;;  %v5530_v48 = vpack.c.bf16 %v284_v42, %v280_v41  ;;  %v288_v50 = vld [vmem:[%s6637_s2 + $0x1d0] sm:$0xff] }
  0x1e   :  { %3828 = vmatprep.subr.bf16.mxu1 %v5484_v26  ;;  %v5534_v49 = vpack.c.bf16 %v293_v44, %v289_v43  ;;  %v292_v52 = vld [vmem:[%s6637_s2 + $0x1f0] sm:$0xff]  ;;  %v51_v56 = vsub.s32 0, %v5585_v55  ;;  %v55_v62 = vsub.s32 1, %v5585_v55  ;;  %v59_v13 = vsub.s32 2, %v5585_v55 }
  0x1f   :  { %3802 = vmatpush1.bf16.msra.mxu0 %v5482_v25  ;;  %v5545_v53 = vpack.c.bf16 %v292_v52, %v288_v50  ;;  %v63_v17 = vsub.s32 3, %v5585_v55 }
  0x20   :  { %3804 = vmatprep.subr.bf16.mxu0 %v5496_v30  ;;  %v52_v1 = vrot.slane %v47_v60, %v51_v56  ;;  %v56_v2 = vrot.slane %v47_v60, %v55_v62  ;;  %v60_v20 = vrot.slane %v47_v60, %v59_v13 }
  0x21   :  { %3830 = vmatpush1.bf16.msra.mxu1 %v5508_v37  ;;  %v64_v21 = vrot.slane %v47_v60, %v63_v17 }
  0x22   :  { %3832 = vmatprep.subr.bf16.mxu1 %v5514_v40 }
  0x23   :  { %3806 = vmatpush1.bf16.msra.mxu0 %v5512_v38 }
  0x24   :  { %3840 = vmatprep.subr.bf16.mxu0 %v5246_v7 }
  0x25   :  { %3834 = vmatpush1.bf16.msra.mxu1 %v5530_v48 }
  0x26   :  { %359 = vmatmul.mubr.f32.vlgmr.msra.gmra.mrb[0].mxu0 %v5158_v3  ;;  %3836 = vmatprep.subr.bf16.mxu1 %v5534_v49 }
  0x27   :  { %3842 = vmatpush1.bf16.msra.mxu0 %v5261_v11  ;;  %528 = vmatprep.mubr.f32.mxu0 %v5158_v3 }
  0x28   :  { %3844 = vmatprep.subr.bf16.mxu0 %v5274_v15 }
  0x29   :  { %3838 = vmatpush1.bf16.msra.mxu1 %v5545_v53 }
  0x2a   :  { %3872 = vmatprep.subr.bf16.mxu1 %v5298_v23 }
  0x2b   :  { %3846 = vmatpush1.bf16.msra.mxu0 %v5286_v19 }
  0x2c   :  { %3848 = vmatprep.subr.bf16.mxu0 %v5300_v24  ;;  %430 = vmatmul.mubr.f32.vlgmr.msra.gmra.mrb[8].mxu1 %v5158_v3 }
  0x2d   :  { %3874 = vmatpush1.bf16.msra.mxu1 %v5324_v31  ;;  %599 = vmatprep.mubr.f32.mxu1 %v5158_v3 }
  0x2e   :  { %3876 = vmatprep.subr.bf16.mxu1 %v5335_v35 }
  0x2f   :  { %3850 = vmatpush1.bf16.msra.mxu0 %v5333_v34 }
  0x30   :  { %3852 = vmatprep.subr.bf16.mxu0 %v5347_v39 }
  0x31   :  { %3878 = vmatpush1.bf16.msra.mxu1 %v5366_v45 }
  0x32   :  { %3880 = vmatprep.subr.bf16.mxu1 %v5373_v47 }
  0x33   :  { %3854 = vmatpush1.bf16.msra.mxu0 %v5371_v46 }
  0x34   :  { %3856 = vmatprep.subr.bf16.mxu0 %v5385_v51 }
  0x35   :  { %3882 = vmatpush1.bf16.msra.mxu1 %v5405_v57 }
  0x36   :  { %3884 = vmatprep.subr.bf16.mxu1 %v5412_v59 }
  0x37   :  { %3858 = vmatpush1.bf16.msra.mxu0 %v5410_v58 }
  0x38   :  { %3860 = vmatprep.subr.bf16.mxu0 %v5424_v63 }
  0x39   :  { %3886 = vmatpush1.bf16.msra.mxu1 %v5442_v6 }
  0x3a   :  { %3888 = vmatprep.subr.bf16.mxu1 %v5448_v9 }
  0x3b   :  { %3862 = vmatpush1.bf16.msra.mxu0 %v5446_v8 }
  0x3c   :  { %3864 = vmatprep.subr.bf16.mxu0 %v5460_v14 }
  0x3d   :  { %3890 = vmatpush1.bf16.msra.mxu1 %v5478_v22 }
  0x3e   :  { %3892 = vmatprep.subr.bf16.mxu1 %v5484_v26 }
  0x3f   :  { %3866 = vmatpush1.bf16.msra.mxu0 %v5482_v25 }
  0x40   :  { %3868 = vmatprep.subr.bf16.mxu0 %v5496_v30 }
  0x41   :  { %3894 = vmatpush1.bf16.msra.mxu1 %v5508_v37 }
  0x42   :  { %3896 = vmatprep.subr.bf16.mxu1 %v5514_v40 }
  0x43   :  { %3870 = vmatpush1.bf16.msra.mxu0 %v5512_v38 }
  0x44   :  { %3904 = vmatprep.subr.bf16.mxu0 %v5246_v7 }
  0x45   :  { %3898 = vmatpush1.bf16.msra.mxu1 %v5530_v48 }
  0x46   :  { %3900 = vmatprep.subr.bf16.mxu1 %v5534_v49 }
  0x49   :  { %3902 = vmatpush1.bf16.msra.mxu1 %v5545_v53 }
  0x4a   :  { %3936 = vmatprep.subr.bf16.mxu1 %v5298_v23 }
  0xd7   :  { %v142_v61 = vpop.f32.mrb[0].mxu1 }
  0xd8   :  { %v144_v0 = vpop.f32.mrb[1].mxu1  ;;  %v5610_v33 = vadd.f32 %v142_v61, %v52_v1 }
  0xd9   :  { %v5612_v36 = vadd.f32 %v144_v0, %v56_v2 }
  0xdb   :  { %v148_v4 = vpop.f32.mrb[2].mxu1 }
  0xdc   :  { %v5596_v5 = vadd.f32 %v148_v4, %v52_v1  ;;  %v150_v10 = vpop.f32.mrb[3].mxu1 }
  0xdd   :  { %v5598_v12 = vadd.f32 %v150_v10, %v56_v2 }
  0xdf   :  { %v219_v16 = vpop.f32.mrb[4].mxu1 }
  0xe0   :  { %v221_v18 = vpop.f32.mrb[5].mxu1  ;;  %v5619_v61 = vadd.f32 %v219_v16, %v60_v20 }
  0xe1   :  { %v5616_v54 = vadd.f32 %v221_v18, %v64_v21 }
  0xe3   :  { %v225_v27 = vpop.f32.mrb[6].mxu1 }
  0xe4   :  { %v5606_v28 = vadd.f32 %v225_v27, %v60_v20  ;;  %v227_v29 = vpop.f32.mrb[7].mxu1 }
  0xe5   :  { %v5608_v32 = vadd.f32 %v227_v29, %v64_v21 }
  0xf9   :  { %v360_v41 = vpop.f32.mrb[0].mxu0 }
  0xfa   :  { %v436_v42 = vadd.f32 %v360_v41, %v5610_v33  ;;  %v362_v43 = vpop.f32.mrb[1].mxu0 }
  0xfb   :  { %v437_v44 = vadd.f32 %v362_v43, %v5612_v36 }
  0xfc   :  { %v3652_v50 = vmul.f32 -1.442695, %v436_v42 }
  0xfd   :  { %v3653_v52 = vmul.f32 -1.442695, %v437_v44 }
  0xfe   :  { %4846 = vpow2.f32 %v3652_v50 }
  0xff   :  { %4848 = vpow2.f32 %v3653_v52  ;;  %v431_v60 = vpop.f32.mrb[8].mxu1 }
 0x100   :  { %v433_v4 = vpop.f32.mrb[9].mxu1  ;;  %v438_v1 = vadd.f32 %v431_v60, %v5619_v61 }
 0x101   :  { %v439_v10 = vadd.f32 %v433_v4, %v5616_v54 }
 0x103   :  { %v3654_v0 = vmul.f32 -1.442695, %v439_v10 }
 0x105   :  { %4850 = vpow2.f32 %v3654_v0 }
 0x106   :  { %4852 = vtanh.f32 %v438_v1 }
 0x108   :  { %v4847_v2 = vpop.eup %4846 }
 0x109   :  { %v4849_v27 = vpop.eup %4848  ;;  %v443_v29 = vadd.f32 1.0, %v4847_v2 }
 0x10a   :  { %v449_v41 = vadd.f32 1.0, %v4849_v27 }
 0x10b   :  { %4854 = vrcp.f32 %v443_v29 }
 0x10c   :  { %4856 = vrcp.f32 %v449_v41 }
 0x10f   :  { %v4851_v42 = vpop.eup %4850 }
 0x110   :  { %v4853_v18 = vpop.eup %4852  ;;  %v456_v50 = vadd.f32 1.0, %v4851_v42 }
 0x112   :  { %4858 = vrcp.f32 %v456_v50 }
 0x115   :  { %v4855_v21 = vpop.eup %4854 }
 0x116   :  { %v4857_v43 = vpop.eup %4856  ;;  %v460_v44 = vmul.f32 %v4855_v21, %v4853_v18 }
 0x117   :  { %v459_v52 = vmul.f32 0.0, %v4857_v43 }
 0x119   :  { %v5622_v16 = vadd.f32 %v460_v44, %v459_v52 }
 0x11b   :  { %4860 = vtanh.f32 %v5622_v16 }
 0x11c   :  { %v4859_v20 = vpop.eup %4858 }
 0x125   :  { %v4861_v60 = vpop.eup %4860 }
 0x126   :  { %v463_v4 = vmul.f32 %v4861_v60, %v4859_v20 }
 0x128   :  { %529 = vmatmul.mubr.f32.vlgmr.msra.gmra.mrb[2].mxu0 %v463_v4  ;;  %600 = vmatmul.mubr.f32.vlgmr.msra.gmra.mrb[10].mxu1 %v463_v4 }
 0x129   :  { %3906 = vmatpush1.bf16.msra.mxu0 %v5261_v11  ;;  %3938 = vmatpush1.bf16.msra.mxu1 %v5324_v31 }
 0x12a   :  { %3908 = vmatprep.subr.bf16.mxu0 %v5274_v15  ;;  %3940 = vmatprep.subr.bf16.mxu1 %v5335_v35 }
 0x12b   :  { %716 = vmatprep.mubr.f32.mxu0 %v5158_v3  ;;  %787 = vmatprep.mubr.f32.mxu1 %v5158_v3 }
 0x12d   :  { %3910 = vmatpush1.bf16.msra.mxu0 %v5286_v19  ;;  %3942 = vmatpush1.bf16.msra.mxu1 %v5366_v45 }
 0x12e   :  { %3912 = vmatprep.subr.bf16.mxu0 %v5300_v24  ;;  %3944 = vmatprep.subr.bf16.mxu1 %v5373_v47 }
 0x131   :  { %3914 = vmatpush1.bf16.msra.mxu0 %v5333_v34  ;;  %3946 = vmatpush1.bf16.msra.mxu1 %v5405_v57 }
 0x132   :  { %3916 = vmatprep.subr.bf16.mxu0 %v5347_v39  ;;  %3948 = vmatprep.subr.bf16.mxu1 %v5412_v59 }
 0x135   :  { %3918 = vmatpush1.bf16.msra.mxu0 %v5371_v46  ;;  %3950 = vmatpush1.bf16.msra.mxu1 %v5442_v6 }
 0x136   :  { %3920 = vmatprep.subr.bf16.mxu0 %v5385_v51  ;;  %3952 = vmatprep.subr.bf16.mxu1 %v5448_v9 }
 0x139   :  { %3922 = vmatpush1.bf16.msra.mxu0 %v5410_v58  ;;  %3954 = vmatpush1.bf16.msra.mxu1 %v5478_v22 }
 0x13a   :  { %3924 = vmatprep.subr.bf16.mxu0 %v5424_v63  ;;  %3956 = vmatprep.subr.bf16.mxu1 %v5484_v26 }
 0x13d   :  { %3926 = vmatpush1.bf16.msra.mxu0 %v5446_v8  ;;  %3958 = vmatpush1.bf16.msra.mxu1 %v5508_v37 }
 0x13e   :  { %3928 = vmatprep.subr.bf16.mxu0 %v5460_v14  ;;  %3960 = vmatprep.subr.bf16.mxu1 %v5514_v40 }
 0x141   :  { %3930 = vmatpush1.bf16.msra.mxu0 %v5482_v25  ;;  %3962 = vmatpush1.bf16.msra.mxu1 %v5530_v48 }
 0x142   :  { %3932 = vmatprep.subr.bf16.mxu0 %v5496_v30  ;;  %3964 = vmatprep.subr.bf16.mxu1 %v5534_v49 }
 0x145   :  { %3934 = vmatpush1.bf16.msra.mxu0 %v5512_v38  ;;  %3966 = vmatpush1.bf16.msra.mxu1 %v5545_v53 }
 0x146   :  { %3968 = vmatprep.subr.bf16.mxu0 %v5246_v7  ;;  %4000 = vmatprep.subr.bf16.mxu1 %v5298_v23 }
 0x1fb   :  { %v530_v10 = vpop.f32.mrb[2].mxu0  ;;  %v601_v0 = vpop.f32.mrb[10].mxu1 }
 0x1fc   :  { %v610_v1 = vrot.slane %v530_v10, 6  ;;  %v532_v2 = vpop.f32.mrb[3].mxu0  ;;  %v603_v27 = vpop.f32.mrb[11].mxu1  ;;  %v612_v50 = vrot.slane %v601_v0, 6 }
 0x1fd   :  { %v611_v29 = vrot.slane %v532_v2, 6  ;;  %v613_v43 = vrot.slane %v603_v27, 6  ;;  %v642_v27 = vrot.slane %v5622_v16, 6 }
 0x1fe   :  { %v618_v41 = vadd.f32 %v610_v1, %v5610_v33  ;;  %v620_v20 = vadd.f32 %v612_v50, %v5619_v61 }
 0x1ff   :  { %v619_v42 = vadd.f32 %v611_v29, %v5612_v36  ;;  %v621_v44 = vadd.f32 %v613_v43, %v5616_v54 }
 0x200   :  { %v3655_v18 = vmul.f32 -1.442695, %v618_v41 }
 0x201   :  { %v3656_v21 = vmul.f32 -1.442695, %v619_v42  ;;  %v3657_v52 = vmul.f32 -1.442695, %v621_v44 }
 0x202   :  { %4862 = vpow2.f32 %v3655_v18 }
 0x203   :  { %4864 = vpow2.f32 %v3656_v21 }
 0x204   :  { %4866 = vpow2.f32 %v3657_v52 }
 0x205   :  { %4868 = vtanh.f32 %v620_v20 }
 0x20c   :  { %v4863_v60 = vpop.eup %4862 }
 0x20d   :  { %v4865_v4 = vpop.eup %4864  ;;  %v625_v10 = vadd.f32 1.0, %v4863_v60 }
 0x20e   :  { %v631_v2 = vadd.f32 1.0, %v4865_v4  ;;  %v4867_v1 = vpop.eup %4866 }
 0x20f   :  { %4870 = vrcp.f32 %v625_v10  ;;  %v4869_v29 = vpop.eup %4868  ;;  %v638_v21 = vadd.f32 1.0, %v4867_v1 }
 0x210   :  { %4872 = vrcp.f32 %v631_v2 }
 0x211   :  { %4874 = vrcp.f32 %v638_v21 }
 0x219   :  { %v4871_v41 = vpop.eup %4870 }
 0x21a   :  { %v4873_v42 = vpop.eup %4872  ;;  %v645_v18 = vmul.f32 %v4871_v41, %v4869_v29 }
 0x21b   :  { %v644_v0 = vmul.f32 %v4873_v42, %v642_v27  ;;  %v4875_v44 = vpop.eup %4874 }
 0x21d   :  { %v5664_v43 = vadd.f32 %v645_v18, %v644_v0 }
 0x21f   :  { %4876 = vtanh.f32 %v5664_v43 }
 0x229   :  { %v4877_v50 = vpop.eup %4876 }
 0x22a   :  { %v648_v52 = vmul.f32 %v4877_v50, %v4875_v44 }
 0x22c   :  { %v650_v20 = vrot.slane %v648_v52, 2 }
 0x22e   :  { %717 = vmatmul.mubr.f32.vlgmr.msra.gmra.mrb[4].mxu0 %v650_v20  ;;  %788 = vmatmul.mubr.f32.vlgmr.msra.gmra.mrb[12].mxu1 %v650_v20 }
 0x22f   :  { %3970 = vmatpush1.bf16.msra.mxu0 %v5261_v11  ;;  %4002 = vmatpush1.bf16.msra.mxu1 %v5324_v31 }
 0x230   :  { %3972 = vmatprep.subr.bf16.mxu0 %v5274_v15  ;;  %4004 = vmatprep.subr.bf16.mxu1 %v5335_v35 }
 0x231   :  { %904 = vmatprep.mubr.f32.mxu0 %v5158_v3  ;;  %975 = vmatprep.mubr.f32.mxu1 %v5158_v3 }
 0x233   :  { %3974 = vmatpush1.bf16.msra.mxu0 %v5286_v19  ;;  %4006 = vmatpush1.bf16.msra.mxu1 %v5366_v45 }
 0x234   :  { %3976 = vmatprep.subr.bf16.mxu0 %v5300_v24  ;;  %4008 = vmatprep.subr.bf16.mxu1 %v5373_v47 }
 0x237   :  { %3978 = vmatpush1.bf16.msra.mxu0 %v5333_v34  ;;  %4010 = vmatpush1.bf16.msra.mxu1 %v5405_v57 }
 0x238   :  { %3980 = vmatprep.subr.bf16.mxu0 %v5347_v39  ;;  %4012 = vmatprep.subr.bf16.mxu1 %v5412_v59 }
 0x23b   :  { %3982 = vmatpush1.bf16.msra.mxu0 %v5371_v46  ;;  %4014 = vmatpush1.bf16.msra.mxu1 %v5442_v6 }
 0x23c   :  { %3984 = vmatprep.subr.bf16.mxu0 %v5385_v51  ;;  %4016 = vmatprep.subr.bf16.mxu1 %v5448_v9 }
 0x23f   :  { %3986 = vmatpush1.bf16.msra.mxu0 %v5410_v58  ;;  %4018 = vmatpush1.bf16.msra.mxu1 %v5478_v22 }
 0x240   :  { %3988 = vmatprep.subr.bf16.mxu0 %v5424_v63  ;;  %4020 = vmatprep.subr.bf16.mxu1 %v5484_v26 }
 0x243   :  { %3990 = vmatpush1.bf16.msra.mxu0 %v5446_v8  ;;  %4022 = vmatpush1.bf16.msra.mxu1 %v5508_v37 }
 0x244   :  { %3992 = vmatprep.subr.bf16.mxu0 %v5460_v14  ;;  %4024 = vmatprep.subr.bf16.mxu1 %v5514_v40 }
 0x247   :  { %3994 = vmatpush1.bf16.msra.mxu0 %v5482_v25  ;;  %4026 = vmatpush1.bf16.msra.mxu1 %v5530_v48 }
 0x248   :  { %3996 = vmatprep.subr.bf16.mxu0 %v5496_v30  ;;  %4028 = vmatprep.subr.bf16.mxu1 %v5534_v49 }
 0x24b   :  { %3998 = vmatpush1.bf16.msra.mxu0 %v5512_v38  ;;  %4030 = vmatpush1.bf16.msra.mxu1 %v5545_v53 }
 0x24c   :  { %4032 = vmatprep.subr.bf16.mxu0 %v5246_v7  ;;  %4064 = vmatprep.subr.bf16.mxu1 %v5298_v23 }
 0x301   :  { %v718_v16 = vpop.f32.mrb[4].mxu0  ;;  %v789_v60 = vpop.f32.mrb[12].mxu1 }
 0x302   :  { %v798_v4 = vrot.slane %v718_v16, 4  ;;  %v720_v10 = vpop.f32.mrb[5].mxu0  ;;  %v791_v2 = vpop.f32.mrb[13].mxu1  ;;  %v800_v0 = vrot.slane %v789_v60, 4 }
 0x303   :  { %v799_v1 = vrot.slane %v720_v10, 4  ;;  %v801_v18 = vrot.slane %v791_v2, 4  ;;  %v830_v2 = vrot.slane %v5664_v43, 6 }
 0x304   :  { %v806_v29 = vadd.f32 %v798_v4, %v5610_v33  ;;  %v808_v50 = vadd.f32 %v800_v0, %v5619_v61 }
 0x305   :  { %v807_v41 = vadd.f32 %v799_v1, %v5612_v36  ;;  %v809_v21 = vadd.f32 %v801_v18, %v5616_v54 }
 0x306   :  { %v3658_v27 = vmul.f32 -1.442695, %v806_v29 }
 0x307   :  { %v3659_v42 = vmul.f32 -1.442695, %v807_v41  ;;  %v3660_v44 = vmul.f32 -1.442695, %v809_v21 }
 0x308   :  { %4878 = vpow2.f32 %v3658_v27 }
 0x309   :  { %4880 = vpow2.f32 %v3659_v42 }
 0x30a   :  { %4882 = vpow2.f32 %v3660_v44 }
 0x30b   :  { %4884 = vtanh.f32 %v808_v50 }
 0x312   :  { %v4879_v52 = vpop.eup %4878 }
 0x313   :  { %v4881_v20 = vpop.eup %4880  ;;  %v813_v16 = vadd.f32 1.0, %v4879_v52 }
 0x314   :  { %v819_v10 = vadd.f32 1.0, %v4881_v20  ;;  %v4883_v4 = vpop.eup %4882 }
 0x315   :  { %4886 = vrcp.f32 %v813_v16  ;;  %v4885_v1 = vpop.eup %4884  ;;  %v826_v42 = vadd.f32 1.0, %v4883_v4 }
 0x316   :  { %4888 = vrcp.f32 %v819_v10 }
 0x317   :  { %4890 = vrcp.f32 %v826_v42 }
 0x31f   :  { %v4887_v29 = vpop.eup %4886 }
 0x320   :  { %v4889_v41 = vpop.eup %4888  ;;  %v833_v27 = vmul.f32 %v4887_v29, %v4885_v1 }
 0x321   :  { %v832_v60 = vmul.f32 %v4889_v41, %v830_v2  ;;  %v4891_v21 = vpop.eup %4890 }
 0x323   :  { %v5706_v18 = vadd.f32 %v833_v27, %v832_v60 }
 0x325   :  { %4892 = vtanh.f32 %v5706_v18 }
 0x32f   :  { %v4893_v0 = vpop.eup %4892 }
 0x330   :  { %v836_v44 = vmul.f32 %v4893_v0, %v4891_v21 }
 0x332   :  { %v838_v50 = vrot.slane %v836_v44, 4 }
 0x334   :  { %905 = vmatmul.mubr.f32.vlgmr.msra.gmra.mrb[6].mxu0 %v838_v50  ;;  %976 = vmatmul.mubr.f32.vlgmr.msra.gmra.mrb[14].mxu1 %v838_v50 }
 0x335   :  { %4034 = vmatpush1.bf16.msra.mxu0 %v5261_v11  ;;  %4066 = vmatpush1.bf16.msra.mxu1 %v5324_v31 }
 0x336   :  { %4036 = vmatprep.subr.bf16.mxu0 %v5274_v15  ;;  %4068 = vmatprep.subr.bf16.mxu1 %v5335_v35 }
 0x337   :  { %1092 = vmatprep.mubr.f32.mxu0 %v5158_v3  ;;  %1163 = vmatprep.mubr.f32.mxu1 %v5158_v3 }
 0x339   :  { %4038 = vmatpush1.bf16.msra.mxu0 %v5286_v19  ;;  %4070 = vmatpush1.bf16.msra.mxu1 %v5366_v45 }
 0x33a   :  { %4040 = vmatprep.subr.bf16.mxu0 %v5300_v24  ;;  %4072 = vmatprep.subr.bf16.mxu1 %v5373_v47 }
 0x33d   :  { %4042 = vmatpush1.bf16.msra.mxu0 %v5333_v34  ;;  %4074 = vmatpush1.bf16.msra.mxu1 %v5405_v57 }
 0x33e   :  { %4044 = vmatprep.subr.bf16.mxu0 %v5347_v39  ;;  %4076 = vmatprep.subr.bf16.mxu1 %v5412_v59 }
 0x341   :  { %4046 = vmatpush1.bf16.msra.mxu0 %v5371_v46  ;;  %4078 = vmatpush1.bf16.msra.mxu1 %v5442_v6 }
 0x342   :  { %4048 = vmatprep.subr.bf16.mxu0 %v5385_v51  ;;  %4080 = vmatprep.subr.bf16.mxu1 %v5448_v9 }
 0x345   :  { %4050 = vmatpush1.bf16.msra.mxu0 %v5410_v58  ;;  %4082 = vmatpush1.bf16.msra.mxu1 %v5478_v22 }
 0x346   :  { %4052 = vmatprep.subr.bf16.mxu0 %v5424_v63  ;;  %4084 = vmatprep.subr.bf16.mxu1 %v5484_v26 }
 0x349   :  { %4054 = vmatpush1.bf16.msra.mxu0 %v5446_v8  ;;  %4086 = vmatpush1.bf16.msra.mxu1 %v5508_v37 }
 0x34a   :  { %4056 = vmatprep.subr.bf16.mxu0 %v5460_v14  ;;  %4088 = vmatprep.subr.bf16.mxu1 %v5514_v40 }
 0x34d   :  { %4058 = vmatpush1.bf16.msra.mxu0 %v5482_v25  ;;  %4090 = vmatpush1.bf16.msra.mxu1 %v5530_v48 }
 0x34e   :  { %4060 = vmatprep.subr.bf16.mxu0 %v5496_v30  ;;  %4092 = vmatprep.subr.bf16.mxu1 %v5534_v49 }
 0x351   :  { %4062 = vmatpush1.bf16.msra.mxu0 %v5512_v38  ;;  %4094 = vmatpush1.bf16.msra.mxu1 %v5545_v53 }
 0x352   :  { %4096 = vmatprep.subr.bf16.mxu0 %v5246_v7  ;;  %4128 = vmatprep.subr.bf16.mxu1 %v5298_v23 }
 0x407   :  { %v906_v43 = vpop.f32.mrb[6].mxu0  ;;  %v977_v52 = vpop.f32.mrb[14].mxu1 }
 0x408   :  { %v986_v20 = vrot.slane %v906_v43, 2  ;;  %v908_v16 = vpop.f32.mrb[7].mxu0  ;;  %v979_v10 = vpop.f32.mrb[15].mxu1  ;;  %v988_v60 = vrot.slane %v977_v52, 2 }
 0x409   :  { %v987_v4 = vrot.slane %v908_v16, 2  ;;  %v989_v27 = vrot.slane %v979_v10, 2  ;;  %v1018_v10 = vrot.slane %v5706_v18, 6 }
 0x40a   :  { %v994_v1 = vadd.f32 %v986_v20, %v5610_v33  ;;  %v996_v0 = vadd.f32 %v988_v60, %v5619_v61 }
 0x40b   :  { %v995_v29 = vadd.f32 %v987_v4, %v5612_v36  ;;  %v997_v42 = vadd.f32 %v989_v27, %v5616_v54 }
 0x40c   :  { %v3661_v2 = vmul.f32 -1.442695, %v994_v1 }
 0x40d   :  { %v3662_v41 = vmul.f32 -1.442695, %v995_v29  ;;  %v3663_v21 = vmul.f32 -1.442695, %v997_v42 }
 0x40e   :  { %4894 = vpow2.f32 %v3661_v2 }
 0x40f   :  { %4896 = vpow2.f32 %v3662_v41 }
 0x410   :  { %4898 = vpow2.f32 %v3663_v21 }
 0x411   :  { %4900 = vtanh.f32 %v996_v0 }
 0x418   :  { %v4895_v44 = vpop.eup %4894 }
 0x419   :  { %v4897_v50 = vpop.eup %4896  ;;  %v1001_v43 = vadd.f32 1.0, %v4895_v44 }
 0x41a   :  { %v1007_v16 = vadd.f32 1.0, %v4897_v50  ;;  %v4899_v33 = vpop.eup %4898 }
 0x41b   :  { %4902 = vrcp.f32 %v1001_v43  ;;  %v4901_v36 = vpop.eup %4900  ;;  %v1014_v54 = vadd.f32 1.0, %v4899_v33 }
 0x41c   :  { %4904 = vrcp.f32 %v1007_v16 }
 0x41d   :  { %4906 = vrcp.f32 %v1014_v54 }
 0x425   :  { %v4903_v20 = vpop.eup %4902 }
 0x426   :  { %v4905_v4 = vpop.eup %4904  ;;  %v1021_v1 = vmul.f32 %v4903_v20, %v4901_v36 }
 0x427   :  { %v1020_v52 = vmul.f32 %v4905_v4, %v1018_v10  ;;  %v4907_v61 = vpop.eup %4906 }
 0x429   :  { %v5748_v29 = vadd.f32 %v1021_v1, %v1020_v52 }
 0x42b   :  { %4908 = vtanh.f32 %v5748_v29 }
 0x435   :  { %v4909_v2 = vpop.eup %4908 }
 0x436   :  { %v1024_v41 = vmul.f32 %v4909_v2, %v4907_v61  ;;  %v1194_v2 = vrot.slane %v5748_v29, 6 }
 0x438   :  { %v1026_v27 = vrot.slane %v1024_v41, 6 }
 0x43a   :  { %1093 = vmatmul.mubr.f32.vlgmr.msra.gmra.mrb[8].mxu0 %v1026_v27  ;;  %1164 = vmatmul.mubr.f32.vlgmr.msra.gmra.mrb[16].mxu1 %v1026_v27 }
 0x43b   :  { %4098 = vmatpush1.bf16.msra.mxu0 %v5261_v11  ;;  %4130 = vmatpush1.bf16.msra.mxu1 %v5324_v31 }
 0x43c   :  { %4100 = vmatprep.subr.bf16.mxu0 %v5274_v15  ;;  %4132 = vmatprep.subr.bf16.mxu1 %v5335_v35 }
 0x43d   :  { %1265 = vmatprep.mubr.f32.mxu0 %v5158_v3  ;;  %1336 = vmatprep.mubr.f32.mxu1 %v5158_v3 }
 0x43f   :  { %4102 = vmatpush1.bf16.msra.mxu0 %v5286_v19  ;;  %4134 = vmatpush1.bf16.msra.mxu1 %v5366_v45 }
 0x440   :  { %4104 = vmatprep.subr.bf16.mxu0 %v5300_v24  ;;  %4136 = vmatprep.subr.bf16.mxu1 %v5373_v47 }
 0x443   :  { %4106 = vmatpush1.bf16.msra.mxu0 %v5333_v34  ;;  %4138 = vmatpush1.bf16.msra.mxu1 %v5405_v57 }
 0x444   :  { %4108 = vmatprep.subr.bf16.mxu0 %v5347_v39  ;;  %4140 = vmatprep.subr.bf16.mxu1 %v5412_v59 }
 0x447   :  { %4110 = vmatpush1.bf16.msra.mxu0 %v5371_v46  ;;  %4142 = vmatpush1.bf16.msra.mxu1 %v5442_v6 }
 0x448   :  { %4112 = vmatprep.subr.bf16.mxu0 %v5385_v51  ;;  %4144 = vmatprep.subr.bf16.mxu1 %v5448_v9 }
 0x44b   :  { %4114 = vmatpush1.bf16.msra.mxu0 %v5410_v58  ;;  %4146 = vmatpush1.bf16.msra.mxu1 %v5478_v22 }
 0x44c   :  { %4116 = vmatprep.subr.bf16.mxu0 %v5424_v63  ;;  %4148 = vmatprep.subr.bf16.mxu1 %v5484_v26 }
 0x44f   :  { %4118 = vmatpush1.bf16.msra.mxu0 %v5446_v8  ;;  %4150 = vmatpush1.bf16.msra.mxu1 %v5508_v37 }
 0x450   :  { %4120 = vmatprep.subr.bf16.mxu0 %v5460_v14  ;;  %4152 = vmatprep.subr.bf16.mxu1 %v5514_v40 }
 0x453   :  { %4122 = vmatpush1.bf16.msra.mxu0 %v5482_v25  ;;  %4154 = vmatpush1.bf16.msra.mxu1 %v5530_v48 }
 0x454   :  { %4124 = vmatprep.subr.bf16.mxu0 %v5496_v30  ;;  %4156 = vmatprep.subr.bf16.mxu1 %v5534_v49 }
 0x457   :  { %4126 = vmatpush1.bf16.msra.mxu0 %v5512_v38  ;;  %4158 = vmatpush1.bf16.msra.mxu1 %v5545_v53 }
 0x458   :  { %4160 = vmatprep.subr.bf16.mxu0 %v5246_v7  ;;  %4192 = vmatprep.subr.bf16.mxu1 %v5298_v23 }
 0x50d   :  { %v1094_v18 = vpop.f32.mrb[8].mxu0  ;;  %v1165_v42 = vpop.f32.mrb[16].mxu1 }
 0x50e   :  { %v1170_v60 = vadd.f32 %v1094_v18, %v5596_v5  ;;  %v1096_v21 = vpop.f32.mrb[9].mxu0  ;;  %v1167_v0 = vpop.f32.mrb[17].mxu1  ;;  %v1172_v36 = vadd.f32 %v1165_v42, %v5606_v28 }
 0x50f   :  { %v1171_v44 = vadd.f32 %v1096_v21, %v5598_v12  ;;  %v1173_v16 = vadd.f32 %v1167_v0, %v5608_v32 }
 0x510   :  { %v3664_v50 = vmul.f32 -1.442695, %v1170_v60 }
 0x511   :  { %v3665_v43 = vmul.f32 -1.442695, %v1171_v44  ;;  %v3666_v33 = vmul.f32 -1.442695, %v1173_v16 }
 0x512   :  { %4910 = vpow2.f32 %v3664_v50 }
 0x513   :  { %4912 = vpow2.f32 %v3665_v43 }
 0x514   :  { %4914 = vpow2.f32 %v3666_v33 }
 0x515   :  { %4916 = vtanh.f32 %v1172_v36 }
 0x51c   :  { %v4911_v20 = vpop.eup %4910 }
 0x51d   :  { %v4913_v10 = vpop.eup %4912  ;;  %v1177_v4 = vadd.f32 1.0, %v4911_v20 }
 0x51e   :  { %v1183_v1 = vadd.f32 1.0, %v4913_v10  ;;  %v4915_v54 = vpop.eup %4914 }
 0x51f   :  { %4918 = vrcp.f32 %v1177_v4  ;;  %v4917_v52 = vpop.eup %4916  ;;  %v1190_v18 = vadd.f32 1.0, %v4915_v54 }
 0x520   :  { %4920 = vrcp.f32 %v1183_v1 }
 0x521   :  { %4922 = vrcp.f32 %v1190_v18 }
 0x529   :  { %v4919_v61 = vpop.eup %4918 }
 0x52a   :  { %v4921_v41 = vpop.eup %4920  ;;  %v1197_v27 = vmul.f32 %v4919_v61, %v4917_v52 }
 0x52b   :  { %v1196_v60 = vmul.f32 %v4921_v41, %v1194_v2  ;;  %v4923_v42 = vpop.eup %4922 }
 0x52d   :  { %v5790_v21 = vadd.f32 %v1197_v27, %v1196_v60 }
 0x52f   :  { %4924 = vtanh.f32 %v5790_v21 }
 0x539   :  { %v4925_v0 = vpop.eup %4924 }
 0x53a   :  { %v1200_v44 = vmul.f32 %v4925_v0, %v4923_v42 }
 0x53c   :  { %1266 = vmatmul.mubr.f32.vlgmr.msra.gmra.mrb[10].mxu0 %v1200_v44  ;;  %1337 = vmatmul.mubr.f32.vlgmr.msra.gmra.mrb[18].mxu1 %v1200_v44  ;;  %v1379_v44 = vrot.slane %v5790_v21, 6 }
 0x53d   :  { %4162 = vmatpush1.bf16.msra.mxu0 %v5261_v11  ;;  %4194 = vmatpush1.bf16.msra.mxu1 %v5324_v31 }
 0x53e   :  { %4164 = vmatprep.subr.bf16.mxu0 %v5274_v15  ;;  %4196 = vmatprep.subr.bf16.mxu1 %v5335_v35 }
 0x53f   :  { %1453 = vmatprep.mubr.f32.mxu0 %v5158_v3  ;;  %1524 = vmatprep.mubr.f32.mxu1 %v5158_v3 }
 0x541   :  { %4166 = vmatpush1.bf16.msra.mxu0 %v5286_v19  ;;  %4198 = vmatpush1.bf16.msra.mxu1 %v5366_v45 }
 0x542   :  { %4168 = vmatprep.subr.bf16.mxu0 %v5300_v24  ;;  %4200 = vmatprep.subr.bf16.mxu1 %v5373_v47 }
 0x545   :  { %4170 = vmatpush1.bf16.msra.mxu0 %v5333_v34  ;;  %4202 = vmatpush1.bf16.msra.mxu1 %v5405_v57 }
 0x546   :  { %4172 = vmatprep.subr.bf16.mxu0 %v5347_v39  ;;  %4204 = vmatprep.subr.bf16.mxu1 %v5412_v59 }
 0x549   :  { %4174 = vmatpush1.bf16.msra.mxu0 %v5371_v46  ;;  %4206 = vmatpush1.bf16.msra.mxu1 %v5442_v6 }
 0x54a   :  { %4176 = vmatprep.subr.bf16.mxu0 %v5385_v51  ;;  %4208 = vmatprep.subr.bf16.mxu1 %v5448_v9 }
 0x54d   :  { %4178 = vmatpush1.bf16.msra.mxu0 %v5410_v58  ;;  %4210 = vmatpush1.bf16.msra.mxu1 %v5478_v22 }
 0x54e   :  { %4180 = vmatprep.subr.bf16.mxu0 %v5424_v63  ;;  %4212 = vmatprep.subr.bf16.mxu1 %v5484_v26 }
 0x551   :  { %4182 = vmatpush1.bf16.msra.mxu0 %v5446_v8  ;;  %4214 = vmatpush1.bf16.msra.mxu1 %v5508_v37 }
 0x552   :  { %4184 = vmatprep.subr.bf16.mxu0 %v5460_v14  ;;  %4216 = vmatprep.subr.bf16.mxu1 %v5514_v40 }
 0x555   :  { %4186 = vmatpush1.bf16.msra.mxu0 %v5482_v25  ;;  %4218 = vmatpush1.bf16.msra.mxu1 %v5530_v48 }
 0x556   :  { %4188 = vmatprep.subr.bf16.mxu0 %v5496_v30  ;;  %4220 = vmatprep.subr.bf16.mxu1 %v5534_v49 }
 0x559   :  { %4190 = vmatpush1.bf16.msra.mxu0 %v5512_v38  ;;  %4222 = vmatpush1.bf16.msra.mxu1 %v5545_v53 }
 0x55a   :  { %4224 = vmatprep.subr.bf16.mxu0 %v5246_v7  ;;  %4256 = vmatprep.subr.bf16.mxu1 %v5298_v23 }
 0x60f   :  { %v1267_v29 = vpop.f32.mrb[10].mxu0  ;;  %v1338_v50 = vpop.f32.mrb[18].mxu1 }
 0x610   :  { %v1347_v43 = vrot.slane %v1267_v29, 6  ;;  %v1269_v16 = vpop.f32.mrb[11].mxu0  ;;  %v1340_v33 = vpop.f32.mrb[19].mxu1  ;;  %v1349_v7 = vrot.slane %v1338_v50, 6 }
 0x611   :  { %v1348_v36 = vrot.slane %v1269_v16, 6  ;;  %v1350_v54 = vrot.slane %v1340_v33, 6 }
 0x612   :  { %v1355_v20 = vadd.f32 %v1347_v43, %v5596_v5  ;;  %v1357_v23 = vadd.f32 %v1349_v7, %v5606_v28 }
 0x613   :  { %v1356_v10 = vadd.f32 %v1348_v36, %v5598_v12  ;;  %v1358_v52 = vadd.f32 %v1350_v54, %v5608_v32  ;;  %v1762_v54 = vld [vmem:[%s6639_s4] sm:$0xff] }
 0x614   :  { %v3667_v4 = vmul.f32 -1.442695, %v1355_v20 }
 0x615   :  { %v3668_v1 = vmul.f32 -1.442695, %v1356_v10  ;;  %v3669_v61 = vmul.f32 -1.442695, %v1358_v52  ;;  %v1763_v52 = vld [vmem:[%s6639_s4 + $0x8] sm:$0xff] }
 0x616   :  { %4926 = vpow2.f32 %v3667_v4  ;;  %v4288_v7 = vpack.c.bf16 %v1763_v52, %v1762_v54 }
 0x617   :  { %4928 = vpow2.f32 %v3668_v1 }
 0x618   :  { %4930 = vpow2.f32 %v3669_v61  ;;  %v5159_v61 = vmov 0.0|0.0  }
 0x619   :  { %4932 = vtanh.f32 %v1357_v23  ;;  %v1764_v23 = vld [vmem:[%s6639_s4 + $0x10] sm:$0xff] }
 0x620   :  { %v4927_v2 = vpop.eup %4926 }
 0x621   :  { %v4929_v41 = vpop.eup %4928  ;;  %v1362_v27 = vadd.f32 1.0, %v4927_v2  ;;  %v1765_v2 = vld [vmem:[%s6639_s4 + $0x18] sm:$0xff] }
 0x622   :  { %v1368_v18 = vadd.f32 1.0, %v4929_v41  ;;  %v4931_v60 = vpop.eup %4930  ;;  %v4291_v41 = vpack.c.bf16 %v1765_v2, %v1764_v23  ;;  %v2129_v23 = vld [vmem:[%s6644_s9 + $0x10] sm:$0xff] }
 0x623   :  { %4934 = vrcp.f32 %v1362_v27  ;;  %v4933_v42 = vpop.eup %4932  ;;  %v1375_v16 = vadd.f32 1.0, %v4931_v60  ;;  %v1766_v27 = vld [vmem:[%s6639_s4 + $0x20] sm:$0xff] }
 0x624   :  { %4936 = vrcp.f32 %v1368_v18  ;;  %v1767_v18 = vld [vmem:[%s6639_s4 + $0x28] sm:$0xff] }
 0x625   :  { %4938 = vrcp.f32 %v1375_v16  ;;  %v4294_v60 = vpack.c.bf16 %v1767_v18, %v1766_v27  ;;  %v2138_v27 = vld [vmem:[%s6644_s9 + $0x58] sm:$0xff] }
 0x626   :  { %v2142_v18 = vld [vmem:[%s6644_s9 + $0x78] sm:$0xff] }
 0x62d   :  { %v4935_v0 = vpop.eup %4934 }
 0x62e   :  { %v4937_v29 = vpop.eup %4936  ;;  %v1382_v43 = vmul.f32 %v4935_v0, %v4933_v42  ;;  %v1768_v42 = vld [vmem:[%s6639_s4 + $0x30] sm:$0xff]  ;;  %v1769_v0 = vld [vmem:[%s6639_s4 + $0x38] sm:$0xff] }
 0x62f   :  { %v1381_v50 = vmul.f32 %v4937_v29, %v1379_v44  ;;  %v4939_v36 = vpop.eup %4938  ;;  %v4297_v44 = vpack.c.bf16 %v1769_v0, %v1768_v42  ;;  %v1770_v29 = vld [vmem:[%s6639_s4 + $0x40] sm:$0xff]  ;;  %v5959_v42 = vpack.c.bf16 %v2142_v18, %v2138_v27  ;;  %v2137_v0 = vld [vmem:[%s6644_s9 + $0x50] sm:$0xff]  ;;  %v2190_v27 = vld [vmem:[%s6644_s9 + $0x1f8] sm:$0xff] }
 0x631   :  { %v5832_v33 = vadd.f32 %v1382_v43, %v1381_v50  ;;  %v1771_v43 = vld [vmem:[%s6639_s4 + $0x48] sm:$0xff]  ;;  %v1772_v50 = vld [vmem:[%s6639_s4 + $0x50] sm:$0xff] }
 0x632   :  { %v4300_v16 = vpack.c.bf16 %v1771_v43, %v1770_v29  ;;  %v2146_v29 = vld [vmem:[%s6644_s9 + $0x98] sm:$0xff] }
 0x633   :  { %4940 = vtanh.f32 %v5832_v33  ;;  %v2150_v43 = vld [vmem:[%s6644_s9 + $0xb8] sm:$0xff] }
 0x63d   :  { %v4941_v20 = vpop.eup %4940 }
 0x63e   :  { %v1385_v10 = vmul.f32 %v4941_v20, %v4939_v36  ;;  %v1774_v20 = vld [vmem:[%s6639_s4 + $0x60] sm:$0xff] }
 0x640   :  { %v1387_v4 = vrot.slane %v1385_v10, 2  ;;  %v1775_v10 = vld [vmem:[%s6639_s4 + $0x68] sm:$0xff] }
 0x642   :  { %1454 = vmatmul.mubr.f32.vlgmr.msra.gmra.mrb[12].mxu0 %v1387_v4  ;;  %1525 = vmatmul.mubr.f32.vlgmr.msra.gmra.mrb[20].mxu1 %v1387_v4  ;;  %v4306_v4 = vpack.c.bf16 %v1775_v10, %v1774_v20  ;;  %v1944_v20 = vld [vmem:[%s6643_s8 + $0x8] sm:$0xff] }
 0x643   :  { %4226 = vmatpush1.bf16.msra.mxu0 %v5261_v11  ;;  %4258 = vmatpush1.bf16.msra.mxu1 %v5324_v31  ;;  %v1948_v10 = vld [vmem:[%s6643_s8 + $0x28] sm:$0xff] }
 0x644   :  { %4228 = vmatprep.subr.bf16.mxu0 %v5274_v15  ;;  %4260 = vmatprep.subr.bf16.mxu1 %v5335_v35 }
 0x645   :  { %1641 = vmatprep.mubr.f32.mxu0 %v5158_v3  ;;  %1712 = vmatprep.mubr.f32.mxu1 %v5158_v3 }
 0x647   :  { %4230 = vmatpush1.bf16.msra.mxu0 %v5286_v19  ;;  %4262 = vmatpush1.bf16.msra.mxu1 %v5366_v45 }
 0x648   :  { %4232 = vmatprep.subr.bf16.mxu0 %v5300_v24  ;;  %4264 = vmatprep.subr.bf16.mxu1 %v5373_v47 }
 0x64b   :  { %4234 = vmatpush1.bf16.msra.mxu0 %v5333_v34  ;;  %4266 = vmatpush1.bf16.msra.mxu1 %v5405_v57 }
 0x64c   :  { %4236 = vmatprep.subr.bf16.mxu0 %v5347_v39  ;;  %4268 = vmatprep.subr.bf16.mxu1 %v5412_v59 }
 0x64f   :  { %4238 = vmatpush1.bf16.msra.mxu0 %v5371_v46  ;;  %4270 = vmatpush1.bf16.msra.mxu1 %v5442_v6 }
 0x650   :  { %4240 = vmatprep.subr.bf16.mxu0 %v5385_v51  ;;  %4272 = vmatprep.subr.bf16.mxu1 %v5448_v9 }
 0x653   :  { %4242 = vmatpush1.bf16.msra.mxu0 %v5410_v58  ;;  %4274 = vmatpush1.bf16.msra.mxu1 %v5478_v22 }
 0x654   :  { %4244 = vmatprep.subr.bf16.mxu0 %v5424_v63  ;;  %4276 = vmatprep.subr.bf16.mxu1 %v5484_v26  ;;  %v1567_v26 = vrot.slane %v5832_v33, 6  ;;  %v1773_v33 = vld [vmem:[%s6639_s4 + $0x58] sm:$0xff] }
 0x655   :  { %v4303_v36 = vpack.c.bf16 %v1773_v33, %v1772_v50  ;;  %v2145_v50 = vld [vmem:[%s6644_s9 + $0x90] sm:$0xff]  ;;  %v5981_v33 = vpack.c.bf16 %v2150_v43, %v2146_v29 }
 0x656   :  { %v1945_v43 = vld [vmem:[%s6643_s8 + $0x10] sm:$0xff] }
 0x657   :  { %4246 = vmatpush1.bf16.msra.mxu0 %v5446_v8  ;;  %4278 = vmatpush1.bf16.msra.mxu1 %v5508_v37 }
 0x658   :  { %4248 = vmatprep.subr.bf16.mxu0 %v5460_v14  ;;  %4280 = vmatprep.subr.bf16.mxu1 %v5514_v40 }
 0x65b   :  { %4250 = vmatpush1.bf16.msra.mxu0 %v5482_v25  ;;  %4282 = vmatpush1.bf16.msra.mxu1 %v5530_v48 }
 0x65c   :  { %4252 = vmatprep.subr.bf16.mxu0 %v5496_v30  ;;  %4284 = vmatprep.subr.bf16.mxu1 %v5534_v49 }
 0x65f   :  { %4254 = vmatpush1.bf16.msra.mxu0 %v5512_v38  ;;  %4286 = vmatpush1.bf16.msra.mxu1 %v5545_v53 }
 0x660   :  { %4287 = vmatprep.subr.bf16.mxu0 %v5159_v61  ;;  %4311 = vmatprep.subr.bf16.mxu1 %v5159_v61 }
 0x715   :  { %v1455_v11 = vpop.f32.mrb[12].mxu0  ;;  %v1526_v15 = vpop.f32.mrb[20].mxu1 }
 0x716   :  { %v1535_v19 = vrot.slane %v1455_v11, 4  ;;  %v1457_v24 = vpop.f32.mrb[13].mxu0  ;;  %v1528_v31 = vpop.f32.mrb[21].mxu1  ;;  %v1537_v57 = vrot.slane %v1526_v15, 4  ;;  %v1776_v11 = vld [vmem:[%s6639_s4 + $0x70] sm:$0xff]  ;;  %v1777_v15 = vld [vmem:[%s6639_s4 + $0x78] sm:$0xff] }
 0x717   :  { %v1536_v34 = vrot.slane %v1457_v24, 4  ;;  %v1538_v47 = vrot.slane %v1528_v31, 4  ;;  %v1860_v24 = vld [vmem:[%s6641_s6] sm:$0xff]  ;;  %v1861_v31 = vld [vmem:[%s6641_s6 + $0x8] sm:$0xff]  ;;  %s3638_s4 = sshll.u32 %s5161_s17, 4  ;;  %s3639_s4 = int_to_ptr.vmem [resolvable:$true] %s3638_s4 }
 0x718   :  { %v1543_v35 = vadd.f32 %v1535_v19, %v5596_v5  ;;  %v1545_v59 = vadd.f32 %v1537_v57, %v5606_v28  ;;  %v4309_v19 = vpack.c.bf16 %v1777_v15, %v1776_v11  ;;  %v2158_v11 = vld [vmem:[%s6644_s9 + $0xf8] sm:$0xff]  ;;  %v4314_v15 = vpack.c.bf16 %v1948_v10, %v1944_v20  ;;  %p5139_p1 = scmp.lt.s32.totalorder %s3639_s4, %s3639_s4 }
 0x719   :  { %v1544_v39 = vadd.f32 %v1536_v34, %v5598_v12  ;;  %v1546_v51 = vadd.f32 %v1538_v47, %v5608_v32  ;;  %v4312_v34 = vpack.c.bf16 %v1861_v31, %v1860_v24  ;;  %v2153_v31 = vld [vmem:[%s6644_s9 + $0xd0] sm:$0xff]  ;;  %v1954_v20 = vld [vmem:[%s6643_s8 + $0x58] sm:$0xff] }
 0x71a   :  { %v3670_v45 = vmul.f32 -1.442695, %v1543_v35  ;;  %v1958_v10 = vld [vmem:[%s6643_s8 + $0x78] sm:$0xff] }
 0x71b   :  { %v3671_v46 = vmul.f32 -1.442695, %v1544_v39  ;;  %v3672_v58 = vmul.f32 -1.442695, %v1546_v51 }
 0x71c   :  { %4942 = vpow2.f32 %v3670_v45 }
 0x71d   :  { %4944 = vpow2.f32 %v3671_v46 }
 0x71e   :  { %4946 = vpow2.f32 %v3672_v58 }
 0x71f   :  { %4948 = vtanh.f32 %v1545_v59 }
 0x726   :  { %v4943_v63 = vpop.eup %4942 }
 0x727   :  { %v4945_v6 = vpop.eup %4944  ;;  %v1550_v8 = vadd.f32 1.0, %v4943_v63 }
 0x728   :  { %v1556_v9 = vadd.f32 1.0, %v4945_v6  ;;  %v4947_v14 = vpop.eup %4946 }
 0x729   :  { %4950 = vrcp.f32 %v1550_v8  ;;  %v4949_v22 = vpop.eup %4948  ;;  %v1563_v38 = vadd.f32 1.0, %v4947_v14 }
 0x72a   :  { %4952 = vrcp.f32 %v1556_v9 }
 0x72b   :  { %4954 = vrcp.f32 %v1563_v38 }
 0x733   :  { %v4951_v25 = vpop.eup %4950 }
 0x734   :  { %v4953_v30 = vpop.eup %4952  ;;  %v1570_v37 = vmul.f32 %v4951_v25, %v4949_v22 }
 0x735   :  { %v1569_v40 = vmul.f32 %v4953_v30, %v1567_v26  ;;  %v4955_v49 = vpop.eup %4954 }
 0x737   :  { %v5872_v48 = vadd.f32 %v1570_v37, %v1569_v40 }
 0x739   :  { %4956 = vtanh.f32 %v5872_v48  ;;  %v1755_v40 = vrot.slane %v5872_v48, 6  ;;  %v2134_v48 = vld [vmem:[%s6644_s9 + $0x38] sm:$0xff] }
 0x743   :  { %v4957_v53 = vpop.eup %4956 }
 0x744   :  { %v1573_v21 = vmul.f32 %v4957_v53, %v4955_v49 }
 0x746   :  { %v1575_v1 = vrot.slane %v1573_v21, 4 }
 0x748   :  { %1642 = vmatmul.mubr.f32.vlgmr.msra.gmra.mrb[14].mxu0 %v1575_v1  ;;  %1713 = vmatmul.mubr.f32.vlgmr.msra.gmra.mrb[22].mxu1 %v1575_v1 }
 0x749   :  { %4289 = vmatpush3.bf16.msra.mxu0 %v4288_v7  ;;  %3765 = vmatprep.mubr.msk.f32.mxu0 %vm5160_vm1, %v5158_v3 }
 0x74a   :  { %4290 = vmatprep.subr.bf16.mxu0 %v5159_v61  ;;  %3772 = vmatprep.mubr.msk.f32.mxu1 %vm5160_vm1, %v5158_v3 }
 0x74b   :  { %4313 = vmatpush3.bf16.msra.mxu1 %v4312_v34  ;;  %v2157_v34 = vld [vmem:[%s6644_s9 + $0xf0] sm:$0xff] }
 0x74c   :  { %4315 = vmatprep.subr.bf16.mxu1 %v4314_v15 }
 0x74d   :  { %4292 = vmatpush3.bf16.msra.mxu0 %v4291_v41  ;;  %v2133_v41 = vld [vmem:[%s6644_s9 + $0x30] sm:$0xff] }
 0x74e   :  { %4293 = vmatprep.subr.bf16.mxu0 %v5159_v61 }
 0x751   :  { %4295 = vmatpush3.bf16.msra.mxu0 %v4294_v60  ;;  %v5957_v60 = vpack.c.bf16 %v2133_v41, %v2129_v23  ;;  %v2186_v41 = vld [vmem:[%s6644_s9 + $0x1d8] sm:$0xff] }
 0x752   :  { %4296 = vmatprep.subr.bf16.mxu0 %v5159_v61  ;;  %v6103_v18 = vpack.c.bf16 %v2190_v27, %v2186_v41 }
 0x755   :  { %4298 = vmatpush3.bf16.msra.mxu0 %v4297_v44  ;;  %v2141_v44 = vld [vmem:[%s6644_s9 + $0x70] sm:$0xff] }
 0x756   :  { %4299 = vmatprep.subr.bf16.mxu0 %v5159_v61 }
 0x759   :  { %4301 = vmatpush3.bf16.msra.mxu0 %v4300_v16  ;;  %v5975_v16 = vpack.c.bf16 %v2141_v44, %v2137_v0  ;;  %v2185_v0 = vld [vmem:[%s6644_s9 + $0x1d0] sm:$0xff] }
 0x75a   :  { %4302 = vmatprep.subr.bf16.mxu0 %v5159_v61  ;;  %v2189_v44 = vld [vmem:[%s6644_s9 + $0x1f0] sm:$0xff] }
 0x75b   :  { %v6111_v29 = vpack.c.bf16 %v2189_v44, %v2185_v0  ;;  %v2159_v0 = vld [vmem:[%s6644_s9 + $0x100] sm:$0xff] }
 0x75c   :  { %v2163_v44 = vld [vmem:[%s6644_s9 + $0x120] sm:$0xff] }
 0x75d   :  { %4304 = vmatpush3.bf16.msra.mxu0 %v4303_v36  ;;  %v2149_v36 = vld [vmem:[%s6644_s9 + $0xb0] sm:$0xff] }
 0x75e   :  { %4305 = vmatprep.subr.bf16.mxu0 %v5159_v61 }
 0x761   :  { %4307 = vmatpush3.bf16.msra.mxu0 %v4306_v4  ;;  %v2154_v4 = vld [vmem:[%s6644_s9 + $0xd8] sm:$0xff] }
 0x762   :  { %4308 = vmatprep.subr.bf16.mxu0 %v5159_v61  ;;  %v2130_v61 = vld [vmem:[%s6644_s9 + $0x18] sm:$0xff]  ;;  %v6002_v24 = vpack.c.bf16 %v2158_v11, %v2154_v4 }
 0x763   :  { %v5946_v2 = vpack.c.bf16 %v2134_v48, %v2130_v61  ;;  %v2177_v61 = vld [vmem:[%s6644_s9 + $0x190] sm:$0xff] }
 0x764   :  { %v2181_v48 = vld [vmem:[%s6644_s9 + $0x1b0] sm:$0xff] }
 0x765   :  { %4310 = vmatpush3.bf16.msra.mxu0 %v4309_v19  ;;  %v5999_v19 = vpack.c.bf16 %v2149_v36, %v2145_v50  ;;  %v6093_v23 = vpack.c.bf16 %v2181_v48, %v2177_v61  ;;  %v1949_v50 = vld [vmem:[%s6643_s8 + $0x30] sm:$0xff]  ;;  %v3677_v36 = vld [vmem:[%s6642_s7] ss:$0 sm:$0xff]  ;;  %v2160_v61 = vld [vmem:[%s6644_s9 + $0x108] sm:$0xff]  ;;  %s5134_s7 = scalar_lea.vmem %s3639_s4, 32 }
 0x766   :  { %4363 = vmatprep.subr.bf16.mxu0 %v5946_v2  ;;  %v4324_v11 = vpack.c.bf16 %v1949_v50, %v1945_v43  ;;  %v2164_v48 = vld [vmem:[%s6644_s9 + $0x128] sm:$0xff]  ;;  %p5135_p0 = scmp.ne.s32.totalorder %s3639_s4, %s5134_s7  ;;  %p5140_p2 = scmp.lt.s32.totalorder %s5134_s7, %s5134_s7 }
 0x767   :  { %v6236_v27 = vpack.c.bf16 %v2164_v48, %v2160_v61  ;;  %v2168_v43 = vld [vmem:[%s6644_s9 + $0x148] sm:$0xff] }
 0x768   :  { %v2172_v50 = vld [vmem:[%s6644_s9 + $0x168] sm:$0xff]  ;;  %p5141_p3 = por %p5140_p2, %p5139_p1 }
 0x76a   :  { %p5142_p4 = pnand %p5141_p3, %p5135_p0 }
 0x81b   :  { %v1643_v35 = vpop.f32.mrb[14].mxu0  ;;  %v1714_v39 = vpop.f32.mrb[22].mxu1 }
 0x81c   :  { %v1723_v45 = vrot.slane %v1643_v35, 2  ;;  %v1645_v46 = vpop.f32.mrb[15].mxu0  ;;  %v1716_v47 = vpop.f32.mrb[23].mxu1  ;;  %v1725_v9 = vrot.slane %v1714_v39, 2  ;;  %v2162_v35 = vld [vmem:[%s6644_s9 + $0x118] sm:$0xff] }
 0x81d   :  { %v1724_v51 = vrot.slane %v1645_v46, 2  ;;  %v1726_v6 = vrot.slane %v1716_v47, 2  ;;  %v2166_v39 = vld [vmem:[%s6644_s9 + $0x138] sm:$0xff]  ;;  %v2161_v47 = vld [vmem:[%s6644_s9 + $0x110] sm:$0xff] }
 0x81e   :  { %v1731_v57 = vadd.f32 %v1723_v45, %v5596_v5  ;;  %v1733_v22 = vadd.f32 %v1725_v9, %v5606_v28  ;;  %v6017_v45 = vpack.c.bf16 %v2157_v34, %v2153_v31  ;;  %v6020_v46 = vpack.c.bf16 %v2166_v39, %v2162_v35  ;;  %v1953_v35 = vld [vmem:[%s6643_s8 + $0x50] sm:$0xff] }
 0x81f   :  { %v1732_v58 = vadd.f32 %v1724_v51, %v5598_v12  ;;  %v1734_v8 = vadd.f32 %v1726_v6, %v5608_v32  ;;  %v2165_v51 = vld [vmem:[%s6644_s9 + $0x130] sm:$0xff]  ;;  %v1952_v6 = vld [vmem:[%s6643_s8 + $0x48] sm:$0xff]  ;;  %v4326_v34 = vpack.c.bf16 %v1958_v10, %v1954_v20  ;;  %v6254_v20 = vpack.c.bf16 %v2172_v50, %v2168_v43  ;;  %v2167_v10 = vld [vmem:[%s6644_s9 + $0x140] sm:$0xff] }
 0x820   :  { %v3673_v59 = vmul.f32 -1.442695, %v1731_v57  ;;  %v6029_v57 = vpack.c.bf16 %v2165_v51, %v2161_v47  ;;  %v1957_v39 = vld [vmem:[%s6643_s8 + $0x70] sm:$0xff]  ;;  %v2128_v47 = vld [vmem:[%s6644_s9 + $0x8] sm:$0xff] }
 0x821   :  { %v3674_v63 = vmul.f32 -1.442695, %v1732_v58  ;;  %v3675_v14 = vmul.f32 -1.442695, %v1734_v8  ;;  %v1943_v58 = vld [vmem:[%s6643_s8] sm:$0xff]  ;;  %v1956_v8 = vld [vmem:[%s6643_s8 + $0x68] sm:$0xff] }
 0x822   :  { %4958 = vpow2.f32 %v3673_v59  ;;  %v1947_v59 = vld [vmem:[%s6643_s8 + $0x20] sm:$0xff]  ;;  %v2132_v51 = vld [vmem:[%s6644_s9 + $0x28] sm:$0xff] }
 0x823   :  { %4960 = vpow2.f32 %v3674_v63  ;;  %v3676_v63 = vld [vmem:[%s6640_s5] ss:$0 sm:$0xff] }
 0x824   :  { %4962 = vpow2.f32 %v3675_v14  ;;  %v4316_v14 = vpack.c.bf16 %v1947_v59, %v1943_v58  ;;  %v4328_v58 = vpack.c.bf16 %v1957_v39, %v1953_v35  ;;  %v6163_v59 = vpack.c.bf16 %v2132_v51, %v2128_v47  ;;  %v2175_v35 = vld [vmem:[%s6644_s9 + $0x180] sm:$0xff]  ;;  %v2184_v47 = vld [vmem:[%s6644_s9 + $0x1c8] sm:$0xff] }
 0x825   :  { %4964 = vtanh.f32 %v1733_v22  ;;  %v2179_v39 = vld [vmem:[%s6644_s9 + $0x1a0] sm:$0xff]  ;;  %v2188_v51 = vld [vmem:[%s6644_s9 + $0x1e8] sm:$0xff] }
 0x82c   :  { %v4959_v25 = vpop.eup %4958 }
 0x82d   :  { %v4961_v26 = vpop.eup %4960  ;;  %v1738_v30 = vadd.f32 1.0, %v4959_v25 }
 0x82e   :  { %v1744_v37 = vadd.f32 1.0, %v4961_v26  ;;  %v4963_v5 = vpop.eup %4962  ;;  %v4318_v26 = vpack.c.bf16 %v1956_v8, %v1952_v6  ;;  %v2131_v6 = vld [vmem:[%s6644_s9 + $0x20] sm:$0xff]  ;;  %v2136_v8 = vld [vmem:[%s6644_s9 + $0x48] sm:$0xff] }
 0x82f   :  { %4966 = vrcp.f32 %v1738_v30  ;;  %v4965_v12 = vpop.eup %4964  ;;  %v1751_v32 = vadd.f32 1.0, %v4963_v5  ;;  %v1951_v30 = vld [vmem:[%s6643_s8 + $0x40] sm:$0xff] }
 0x830   :  { %4968 = vrcp.f32 %v1744_v37  ;;  %v1955_v37 = vld [vmem:[%s6643_s8 + $0x60] sm:$0xff] }
 0x831   :  { %4970 = vrcp.f32 %v1751_v32  ;;  %v4320_v5 = vpack.c.bf16 %v1955_v37, %v1951_v30  ;;  %v2144_v30 = vld [vmem:[%s6644_s9 + $0x88] sm:$0xff] }
 0x832   :  { %v2148_v37 = vld [vmem:[%s6644_s9 + $0xa8] sm:$0xff] }
 0x839   :  { %v4967_v38 = vpop.eup %4966 }
 0x83a   :  { %v4969_v49 = vpop.eup %4968  ;;  %v1758_v53 = vmul.f32 %v4967_v38, %v4965_v12  ;;  %v2170_v12 = vld [vmem:[%s6644_s9 + $0x158] sm:$0xff] }
 0x83b   :  { %v1757_v21 = vmul.f32 %v4969_v49, %v1755_v40  ;;  %v4971_v28 = vpop.eup %4970  ;;  %v2174_v38 = vld [vmem:[%s6644_s9 + $0x178] sm:$0xff]  ;;  %v2169_v49 = vld [vmem:[%s6644_s9 + $0x150] sm:$0xff] }
 0x83c   :  { %v6061_v40 = vpack.c.bf16 %v2174_v38, %v2170_v12  ;;  %v6200_v12 = vpack.c.bf16 %v2148_v37, %v2144_v30  ;;  %v2143_v38 = vld [vmem:[%s6644_s9 + $0x80] sm:$0xff] }
 0x83d   :  { %v1759_v1 = vadd.f32 %v1758_v53, %v1757_v21  ;;  %v2173_v53 = vld [vmem:[%s6644_s9 + $0x170] sm:$0xff]  ;;  %v1946_v21 = vld [vmem:[%s6643_s8 + $0x18] sm:$0xff] }
 0x83e   :  { %v6069_v32 = vpack.c.bf16 %v2173_v53, %v2169_v49  ;;  %v2147_v49 = vld [vmem:[%s6644_s9 + $0xa0] sm:$0xff]  ;;  %v2152_v53 = vld [vmem:[%s6644_s9 + $0xc8] sm:$0xff] }
 0x83f   :  { %4972 = vtanh.f32 %v1759_v1  ;;  %v1950_v1 = vld [vmem:[%s6643_s8 + $0x38] sm:$0xff] }
 0x849   :  { %v4973_v54 = vpop.eup %4972 }
 0x84a   :  { %v1761_v52 = vmul.f32 %v4973_v54, %v4971_v28  ;;  %v4322_v28 = vpack.c.bf16 %v1950_v1, %v1946_v21  ;;  %v2178_v54 = vld [vmem:[%s6644_s9 + $0x198] sm:$0xff]  ;;  %v2156_v21 = vld [vmem:[%s6644_s9 + $0xe8] sm:$0xff]  ;;  %v6215_v1 = vpack.c.bf16 %v2147_v49, %v2143_v38 }
 0x84c   :  { %v1786_v7 = vrot.slane %v1761_v52, 6  ;;  %v2182_v52 = vld [vmem:[%s6644_s9 + $0x1b8] sm:$0xff] }
 0x84e   :  { %3766 = vmatmul.mubr.f32.vlgmr.msra.gmra.mrb[16].mxu0 %v1786_v7  ;;  %v6085_v7 = vpack.c.bf16 %v2182_v52, %v2178_v54  ;;  %v2151_v54 = vld [vmem:[%s6644_s9 + $0xc0] sm:$0xff] }
 0x84f   :  { %2326 = vmatprep.mubr.f32.mxu0 %v5158_v3  ;;  %4365 = vmatpush1.bf16.msra.mxu0 %v5957_v60  ;;  %v2155_v52 = vld [vmem:[%s6644_s9 + $0xe0] sm:$0xff] }
 0x850   :  { %4367 = vmatprep.subr.bf16.mxu0 %v5959_v42  ;;  %v6233_v41 = vpack.c.bf16 %v2155_v52, %v2151_v54 }
 0x853   :  { %4369 = vmatpush1.bf16.msra.mxu0 %v5975_v16 }
 0x854   :  { %4371 = vmatprep.subr.bf16.mxu0 %v5981_v33 }
 0x857   :  { %4373 = vmatpush1.bf16.msra.mxu0 %v5999_v19 }
 0x858   :  { %4375 = vmatprep.subr.bf16.mxu0 %v6002_v24 }
 0x85b   :  { %4377 = vmatpush1.bf16.msra.mxu0 %v6017_v45 }
 0x85c   :  { %4379 = vmatprep.subr.bf16.mxu0 %v6020_v46 }
 0x85f   :  { %4381 = vmatpush1.bf16.msra.mxu0 %v6029_v57 }
 0x860   :  { %4383 = vmatprep.subr.bf16.mxu0 %v6061_v40 }
 0x863   :  { %4385 = vmatpush1.bf16.msra.mxu0 %v6069_v32 }
 0x864   :  { %4387 = vmatprep.subr.bf16.mxu0 %v6085_v7 }
 0x867   :  { %4389 = vmatpush1.bf16.msra.mxu0 %v6093_v23 }
 0x868   :  { %4391 = vmatprep.subr.bf16.mxu0 %v6103_v18 }
 0x86b   :  { %4393 = vmatpush1.bf16.msra.mxu0 %v6111_v29 }
 0x86c   :  { %4427 = vmatprep.subr.bf16.mxu0 %v5946_v2 }
 0x86e   :  { %2327 = vmatmul.mubr.f32.vlgmr.msra.gmra.mrb[18].mxu0 %v5158_v3 }
 0x86f   :  { %4429 = vmatpush1.bf16.msra.mxu0 %v5957_v60  ;;  %2497 = vmatprep.mubr.f32.mxu0 %v5158_v3 }
 0x870   :  { %4431 = vmatprep.subr.bf16.mxu0 %v5959_v42 }
 0x873   :  { %4433 = vmatpush1.bf16.msra.mxu0 %v5975_v16 }
 0x874   :  { %4435 = vmatprep.subr.bf16.mxu0 %v5981_v33 }
 0x877   :  { %4437 = vmatpush1.bf16.msra.mxu0 %v5999_v19 }
 0x878   :  { %4439 = vmatprep.subr.bf16.mxu0 %v6002_v24 }
 0x87b   :  { %4441 = vmatpush1.bf16.msra.mxu0 %v6017_v45 }
 0x87c   :  { %4443 = vmatprep.subr.bf16.mxu0 %v6020_v46 }
 0x87f   :  { %4445 = vmatpush1.bf16.msra.mxu0 %v6029_v57 }
 0x880   :  { %4447 = vmatprep.subr.bf16.mxu0 %v6061_v40 }
 0x883   :  { %4449 = vmatpush1.bf16.msra.mxu0 %v6069_v32 }
 0x884   :  { %4451 = vmatprep.subr.bf16.mxu0 %v6085_v7 }
 0x887   :  { %4453 = vmatpush1.bf16.msra.mxu0 %v6093_v23 }
 0x888   :  { %4455 = vmatprep.subr.bf16.mxu0 %v6103_v18 }
 0x88b   :  { %4457 = vmatpush1.bf16.msra.mxu0 %v6111_v29 }
 0x88c   :  { %4491 = vmatprep.subr.bf16.mxu0 %v5946_v2 }
 0x921   :  { %v1854_v9 = vpop.f32.mrb[16].mxu0 }
 0x922   :  { %v1855_v22 = vadd.f32 %v3676_v63, %v1854_v9  ;;  %v3767_v25 = vpop.f32.mrb[17].mxu0  ;;  %v2127_v63 = vld [vmem:[%s6644_s9] sm:$0xff]  ;;  %v2140_v9 = vld [vmem:[%s6644_s9 + $0x68] sm:$0xff] }
 0x923   :  { %v2135_v25 = vld [vmem:[%s6644_s9 + $0x40] sm:$0xff] }
 0x924   :  { %3773 = vmatmul.mubr.msk.f32.vlgmr.msra.gmra.mrb[24].mxu1 %vm1869_vm2, %v1855_v22  ;;  %1859 = vst.msk [vmem:[#allocation3] sm:$0x3] %vm1858_vm3, %v1855_v22  ;;  %v6180_v22 = vpack.c.bf16 %v2140_v9, %v2136_v8  ;;  %v2187_v8 = vld [vmem:[%s6644_s9 + $0x1e0] sm:$0xff] }
 0x925   :  { %4317 = vmatpush1.bf16.msra.mxu1 %v4316_v14  ;;  %2049 = vmatprep.mubr.f32.mxu1 %v5158_v3  ;;  %v6177_v14 = vpack.c.bf16 %v2131_v6, %v2127_v63  ;;  %v6290_v63 = vpack.c.bf16 %v2188_v51, %v2184_v47  ;;  %v2183_v6 = vld [vmem:[%s6644_s9 + $0x1c0] sm:$0xff] }
 0x926   :  { %4319 = vmatprep.subr.bf16.mxu1 %v4318_v26  ;;  %v2139_v26 = vld [vmem:[%s6644_s9 + $0x60] sm:$0xff]  ;;  %v6299_v9 = vpack.c.bf16 %v2187_v8, %v2183_v6 }
 0x929   :  { %4321 = vmatpush1.bf16.msra.mxu1 %v4320_v5  ;;  %v6196_v5 = vpack.c.bf16 %v2139_v26, %v2135_v25 }
 0x92a   :  { %4323 = vmatprep.subr.bf16.mxu1 %v4322_v28  ;;  %v6218_v28 = vpack.c.bf16 %v2156_v21, %v2152_v53  ;;  %v1959_v53 = vld [vmem:[%s6645_s10] sm:$0xf] }
 0x92b   :  { %v1964_v21 = vrot.slane %v1959_v53, %v51_v56  ;;  %v1968_v54 = vrot.slane %v1959_v53, %v55_v62  ;;  %v1976_v48 = vrot.slane %v1959_v53, %v63_v17  ;;  %v1972_v62 = vrot.slane %v1959_v53, %v59_v13 }
 0x941   :  { %v2328_v25 = vpop.f32.mrb[18].mxu0 }
 0x942   :  { %v2330_v26 = vpop.f32.mrb[19].mxu0 }
 0x9f7   :  { %v1939_v4 = vpop.f32.mrb[24].mxu1 }
 0x9f8   :  { %v1940_v15 = vadd.f32 %v3677_v36, %v1939_v4  ;;  %v3774_v31 = vpop.f32.mrb[25].mxu1  ;;  %v6251_v36 = vpack.c.bf16 %v2163_v44, %v2159_v0  ;;  %v2171_v4 = vld [vmem:[%s6644_s9 + $0x160] sm:$0xff] }
 0x9f9   :  { %v6269_v31 = vpack.c.bf16 %v2171_v4, %v2167_v10 }
 0x9fa   :  { %3679 = vmatmul.mubr.msk.f32.vlgmr.msra.gmra.mrb[26].mxu1 %vm1981_vm4, %v1940_v15 }
 0x9fb   :  { %4325 = vmatpush1.bf16.msra.mxu1 %v4324_v11  ;;  %2120 = vmatprep.mubr.f32.mxu1 %v5158_v3  ;;  %v2176_v11 = vld [vmem:[%s6644_s9 + $0x188] sm:$0xff] }
 0x9fc   :  { %4327 = vmatprep.subr.bf16.mxu1 %v4326_v34 }
 0x9ff   :  { %4329 = vmatpush1.bf16.msra.mxu1 %v4328_v58  ;;  %v6287_v58 = vpack.c.bf16 %v2179_v39, %v2175_v35 }
 0xa00   :  { %4331 = vmatprep.subr.bf16.mxu1 %v6163_v59 }
 0xa02   :  { %3680 = vmatmul.mubr.msk.f32.vlgmr.msra.gmra.mrb[28].mxu1 %vm1981_vm4, %v1940_v15  ;;  %v2180_v15 = vld [vmem:[%s6644_s9 + $0x1a8] sm:$0xff] }
 0xa03   :  { %4333 = vmatpush1.bf16.msra.mxu1 %v6177_v14  ;;  %2255 = vmatprep.mubr.f32.mxu1 %v5158_v3  ;;  %v6272_v34 = vpack.c.bf16 %v2180_v15, %v2176_v11 }
 0xa04   :  { %4335 = vmatprep.subr.bf16.mxu1 %v6180_v22 }
 0xa07   :  { %4337 = vmatpush1.bf16.msra.mxu1 %v6196_v5 }
 0xa08   :  { %4339 = vmatprep.subr.bf16.mxu1 %v6200_v12 }
 0xa0b   :  { %4341 = vmatpush1.bf16.msra.mxu1 %v6215_v1 }
 0xa0c   :  { %4343 = vmatprep.subr.bf16.mxu1 %v6218_v28 }
 0xa0f   :  { %4345 = vmatpush1.bf16.msra.mxu1 %v6233_v41 }
 0xa10   :  { %4347 = vmatprep.subr.bf16.mxu1 %v6236_v27 }
 0xa13   :  { %4349 = vmatpush1.bf16.msra.mxu1 %v6251_v36 }
 0xa14   :  { %4351 = vmatprep.subr.bf16.mxu1 %v6254_v20 }
 0xa17   :  { %4353 = vmatpush1.bf16.msra.mxu1 %v6269_v31 }
 0xa18   :  { %4355 = vmatprep.subr.bf16.mxu1 %v6272_v34 }
 0xa1b   :  { %4357 = vmatpush1.bf16.msra.mxu1 %v6287_v58 }
 0xa1c   :  { %4359 = vmatprep.subr.bf16.mxu1 %v6290_v63 }
 0xa1f   :  { %4361 = vmatpush1.bf16.msra.mxu1 %v6299_v9 }
 0xa20   :  { %4395 = vmatprep.subr.bf16.mxu1 %v6163_v59 }
 0xa22   :  { %2256 = vmatmul.mubr.f32.vlgmr.msra.gmra.mrb[30].mxu1 %v5158_v3 }
 0xa23   :  { %4397 = vmatpush1.bf16.msra.mxu1 %v6177_v14  ;;  %2426 = vmatprep.mubr.f32.mxu1 %v5158_v3 }
 0xa24   :  { %4399 = vmatprep.subr.bf16.mxu1 %v6180_v22 }
 0xa27   :  { %4401 = vmatpush1.bf16.msra.mxu1 %v6196_v5 }
 0xa28   :  { %4403 = vmatprep.subr.bf16.mxu1 %v6200_v12 }
 0xa2b   :  { %4405 = vmatpush1.bf16.msra.mxu1 %v6215_v1 }
 0xa2c   :  { %4407 = vmatprep.subr.bf16.mxu1 %v6218_v28 }
 0xa2f   :  { %4409 = vmatpush1.bf16.msra.mxu1 %v6233_v41 }
 0xa30   :  { %4411 = vmatprep.subr.bf16.mxu1 %v6236_v27 }
 0xa33   :  { %4413 = vmatpush1.bf16.msra.mxu1 %v6251_v36 }
 0xa34   :  { %4415 = vmatprep.subr.bf16.mxu1 %v6254_v20 }
 0xa37   :  { %4417 = vmatpush1.bf16.msra.mxu1 %v6269_v31 }
 0xa38   :  { %4419 = vmatprep.subr.bf16.mxu1 %v6272_v34 }
 0xa3b   :  { %4421 = vmatpush1.bf16.msra.mxu1 %v6287_v58 }
 0xa3c   :  { %4423 = vmatprep.subr.bf16.mxu1 %v6290_v63 }
 0xa3f   :  { %4425 = vmatpush1.bf16.msra.mxu1 %v6299_v9 }
 0xa40   :  { %4459 = vmatprep.subr.bf16.mxu1 %v6163_v59 }
 0xacd   :  { %v2051_v30 = vpop.f32.mrb[26].mxu1 }
 0xace   :  { %v2053_v37 = vpop.f32.mrb[27].mxu1  ;;  %v6329_v52 = vadd.f32 %v2051_v30, %v1964_v21 }
 0xacf   :  { %v6331_v61 = vadd.f32 %v2053_v37, %v1968_v54 }
 0xad5   :  { %v2122_v38 = vpop.f32.mrb[28].mxu1 }
 0xad6   :  { %v2124_v49 = vpop.f32.mrb[29].mxu1  ;;  %v6342_v15 = vadd.f32 %v2122_v38, %v1972_v62 }
 0xad7   :  { %v6337_v4 = vadd.f32 %v2124_v49, %v1976_v48 }
 0xad8   :  { %v2335_v35 = vadd.f32 %v2328_v25, %v6342_v15 }
 0xad9   :  { %v2336_v11 = vadd.f32 %v2330_v26, %v6337_v4 }
 0xadb   :  { %v3683_v17 = vmul.f32 -1.442695, %v2336_v11 }
 0xaf5   :  { %v2257_v0 = vpop.f32.mrb[30].mxu1 }
 0xaf6   :  { %v2333_v44 = vadd.f32 %v2257_v0, %v6329_v52  ;;  %v2259_v43 = vpop.f32.mrb[31].mxu1 }
 0xaf7   :  { %v2334_v50 = vadd.f32 %v2259_v43, %v6331_v61 }
 0xaf8   :  { %v3681_v10 = vmul.f32 -1.442695, %v2333_v44 }
 0xaf9   :  { %v3682_v56 = vmul.f32 -1.442695, %v2334_v50 }
 0xafa   :  { %4974 = vpow2.f32 %v3681_v10 }
 0xafb   :  { %4976 = vpow2.f32 %v3682_v56 }
 0xafc   :  { %4978 = vpow2.f32 %v3683_v17 }
 0xafd   :  { %4980 = vtanh.f32 %v2335_v35 }
 0xb04   :  { %v4975_v39 = vpop.eup %4974 }
 0xb05   :  { %v4977_v47 = vpop.eup %4976  ;;  %v2340_v51 = vadd.f32 1.0, %v4975_v39 }
 0xb06   :  { %v2346_v6 = vadd.f32 1.0, %v4977_v47  ;;  %v4979_v8 = vpop.eup %4978 }
 0xb07   :  { %4982 = vrcp.f32 %v2340_v51  ;;  %v4981_v55 = vpop.eup %4980  ;;  %v2353_v37 = vadd.f32 1.0, %v4979_v8 }
 0xb08   :  { %4984 = vrcp.f32 %v2346_v6 }
 0xb09   :  { %4986 = vrcp.f32 %v2353_v37 }
 0xb11   :  { %v4983_v13 = vpop.eup %4982 }
 0xb12   :  { %v4985_v30 = vpop.eup %4984  ;;  %v2357_v49 = vmul.f32 %v4983_v13, %v4981_v55 }
 0xb13   :  { %v2356_v26 = vmul.f32 0.0, %v4985_v30  ;;  %v4987_v25 = vpop.eup %4986 }
 0xb15   :  { %v6345_v38 = vadd.f32 %v2357_v49, %v2356_v26 }
 0xb17   :  { %4988 = vtanh.f32 %v6345_v38 }
 0xb21   :  { %v4989_v53 = vpop.eup %4988 }
 0xb22   :  { %v2360_v21 = vmul.f32 %v4989_v53, %v4987_v25 }
 0xb24   :  { %2361 = vst [vmem:[#allocation2] sm:$0x3] %v2360_v21  ;;  %2427 = vmatmul.mubr.f32.vlgmr.msra.gmra.mrb[32].mxu1 %v2360_v21  ;;  %2498 = vmatmul.mubr.f32.vlgmr.msra.gmra.mrb[20].mxu0 %v2360_v21 }
 0xb25   :  { %4461 = vmatpush1.bf16.msra.mxu1 %v6177_v14  ;;  %4493 = vmatpush1.bf16.msra.mxu0 %v5957_v60 }
 0xb26   :  { %4463 = vmatprep.subr.bf16.mxu1 %v6180_v22  ;;  %4495 = vmatprep.subr.bf16.mxu0 %v5959_v42 }
 0xb27   :  { %2598 = vmatprep.mubr.f32.mxu1 %v5158_v3  ;;  %2669 = vmatprep.mubr.f32.mxu0 %v5158_v3 }
 0xb29   :  { %4465 = vmatpush1.bf16.msra.mxu1 %v6196_v5  ;;  %4497 = vmatpush1.bf16.msra.mxu0 %v5975_v16 }
 0xb2a   :  { %4467 = vmatprep.subr.bf16.mxu1 %v6200_v12  ;;  %4499 = vmatprep.subr.bf16.mxu0 %v5981_v33 }
 0xb2b   :  { %v3566_v54 = vld [vmem:[#allocation2] sm:$0x3] }
 0xb2c   :  { %v3705_v48 = vmul.f32 -1.442695, %v3566_v54 }
 0xb2d   :  { %4469 = vmatpush1.bf16.msra.mxu1 %v6215_v1  ;;  %4501 = vmatpush1.bf16.msra.mxu0 %v5999_v19 }
 0xb2e   :  { %4990 = vpow2.f32 %v3705_v48  ;;  %4471 = vmatprep.subr.bf16.mxu1 %v6218_v28  ;;  %4503 = vmatprep.subr.bf16.mxu0 %v6002_v24 }
 0xb31   :  { %4473 = vmatpush1.bf16.msra.mxu1 %v6233_v41  ;;  %4505 = vmatpush1.bf16.msra.mxu0 %v6017_v45 }
 0xb32   :  { %4475 = vmatprep.subr.bf16.mxu1 %v6236_v27  ;;  %4507 = vmatprep.subr.bf16.mxu0 %v6020_v46 }
 0xb35   :  { %4477 = vmatpush1.bf16.msra.mxu1 %v6251_v36  ;;  %4509 = vmatpush1.bf16.msra.mxu0 %v6029_v57 }
 0xb36   :  { %4479 = vmatprep.subr.bf16.mxu1 %v6254_v20  ;;  %4511 = vmatprep.subr.bf16.mxu0 %v6061_v40 }
 0xb38   :  { %v4991_v0 = vpop.eup %4990 }
 0xb39   :  { %v3598_v44 = vadd.f32 1.0, %v4991_v0  ;;  %4481 = vmatpush1.bf16.msra.mxu1 %v6269_v31  ;;  %4513 = vmatpush1.bf16.msra.mxu0 %v6069_v32 }
 0xb3a   :  { %4483 = vmatprep.subr.bf16.mxu1 %v6272_v34  ;;  %4515 = vmatprep.subr.bf16.mxu0 %v6085_v7 }
 0xb3b   :  { %4992 = vrcp.f32 %v3598_v44 }
 0xb3d   :  { %4485 = vmatpush1.bf16.msra.mxu1 %v6287_v58  ;;  %4517 = vmatpush1.bf16.msra.mxu0 %v6093_v23 }
 0xb3e   :  { %4487 = vmatprep.subr.bf16.mxu1 %v6290_v63  ;;  %4519 = vmatprep.subr.bf16.mxu0 %v6103_v18 }
 0xb41   :  { %4489 = vmatpush1.bf16.msra.mxu1 %v6299_v9  ;;  %4521 = vmatpush1.bf16.msra.mxu0 %v6111_v29 }
 0xb42   :  { %4523 = vmatprep.subr.bf16.mxu1 %v6163_v59  ;;  %4555 = vmatprep.subr.bf16.mxu0 %v5946_v2 }
 0xb45   :  { %v4993_v43 = vpop.eup %4992 }
 0xb46   :  { %3622 = vst [vmem:[%s6646_s11] sm:$0x3] %v4993_v43 }
 0xbf7   :  { %v2428_v50 = vpop.f32.mrb[32].mxu1  ;;  %v2499_v10 = vpop.f32.mrb[20].mxu0 }
 0xbf8   :  { %v2504_v56 = vadd.f32 %v2428_v50, %v6329_v52  ;;  %v2430_v62 = vpop.f32.mrb[33].mxu1  ;;  %v2501_v11 = vpop.f32.mrb[21].mxu0  ;;  %v2506_v6 = vadd.f32 %v2499_v10, %v6342_v15 }
 0xbf9   :  { %v2505_v17 = vadd.f32 %v2430_v62, %v6331_v61  ;;  %v2507_v47 = vadd.f32 %v2501_v11, %v6337_v4 }
 0xbfa   :  { %v3684_v35 = vmul.f32 -1.442695, %v2504_v56 }
 0xbfb   :  { %v3685_v39 = vmul.f32 -1.442695, %v2505_v17  ;;  %v3686_v51 = vmul.f32 -1.442695, %v2507_v47 }
 0xbfc   :  { %4994 = vpow2.f32 %v3684_v35 }
 0xbfd   :  { %4996 = vpow2.f32 %v3685_v39 }
 0xbfe   :  { %4998 = vpow2.f32 %v3686_v51 }
 0xbff   :  { %5000 = vtanh.f32 %v2506_v6 }
 0xc06   :  { %v4995_v8 = vpop.eup %4994 }
 0xc07   :  { %v4997_v55 = vpop.eup %4996  ;;  %v2511_v13 = vadd.f32 1.0, %v4995_v8 }
 0xc08   :  { %v2517_v30 = vadd.f32 1.0, %v4997_v55  ;;  %v4999_v37 = vpop.eup %4998 }
 0xc09   :  { %5002 = vrcp.f32 %v2511_v13  ;;  %v5001_v49 = vpop.eup %5000  ;;  %v2524_v21 = vadd.f32 1.0, %v4999_v37 }
 0xc0a   :  { %5004 = vrcp.f32 %v2517_v30 }
 0xc0b   :  { %5006 = vrcp.f32 %v2524_v21 }
 0xc13   :  { %v5003_v26 = vpop.eup %5002 }
 0xc14   :  { %v5005_v25 = vpop.eup %5004  ;;  %v2528_v53 = vmul.f32 %v5003_v26, %v5001_v49 }
 0xc15   :  { %v2527_v54 = vmul.f32 %v5005_v25, %v6345_v38  ;;  %v5007_v0 = vpop.eup %5006 }
 0xc17   :  { %v6390_v48 = vadd.f32 %v2528_v53, %v2527_v54 }
 0xc19   :  { %5008 = vtanh.f32 %v6390_v48 }
 0xc23   :  { %v5009_v44 = vpop.eup %5008 }
 0xc24   :  { %v2531_v43 = vmul.f32 %v5009_v44, %v5007_v0 }
 0xc26   :  { %2533 = vst [vmem:[#allocation2 + $0x2] sm:$0x3] %v2531_v43  ;;  %2599 = vmatmul.mubr.f32.vlgmr.msra.gmra.mrb[34].mxu1 %v2531_v43  ;;  %2670 = vmatmul.mubr.f32.vlgmr.msra.gmra.mrb[22].mxu0 %v2531_v43 }
 0xc27   :  { %4525 = vmatpush1.bf16.msra.mxu1 %v6177_v14  ;;  %4557 = vmatpush1.bf16.msra.mxu0 %v5957_v60 }
 0xc28   :  { %4527 = vmatprep.subr.bf16.mxu1 %v6180_v22  ;;  %4559 = vmatprep.subr.bf16.mxu0 %v5959_v42 }
 0xc29   :  { %2770 = vmatprep.mubr.f32.mxu1 %v5158_v3  ;;  %2841 = vmatprep.mubr.f32.mxu0 %v5158_v3 }
 0xc2b   :  { %4529 = vmatpush1.bf16.msra.mxu1 %v6196_v5  ;;  %4561 = vmatpush1.bf16.msra.mxu0 %v5975_v16 }
 0xc2c   :  { %4531 = vmatprep.subr.bf16.mxu1 %v6200_v12  ;;  %4563 = vmatprep.subr.bf16.mxu0 %v5981_v33 }
 0xc2d   :  { %v3567_v38 = vld [vmem:[#allocation2 + $0x2] sm:$0x3] }
 0xc2e   :  { %v3706_v50 = vmul.f32 -1.442695, %v3567_v38 }
 0xc2f   :  { %4533 = vmatpush1.bf16.msra.mxu1 %v6215_v1  ;;  %4565 = vmatpush1.bf16.msra.mxu0 %v5999_v19 }
 0xc30   :  { %5010 = vpow2.f32 %v3706_v50  ;;  %4535 = vmatprep.subr.bf16.mxu1 %v6218_v28  ;;  %4567 = vmatprep.subr.bf16.mxu0 %v6002_v24 }
 0xc33   :  { %4537 = vmatpush1.bf16.msra.mxu1 %v6233_v41  ;;  %4569 = vmatpush1.bf16.msra.mxu0 %v6017_v45 }
 0xc34   :  { %4539 = vmatprep.subr.bf16.mxu1 %v6236_v27  ;;  %4571 = vmatprep.subr.bf16.mxu0 %v6020_v46 }
 0xc37   :  { %4541 = vmatpush1.bf16.msra.mxu1 %v6251_v36  ;;  %4573 = vmatpush1.bf16.msra.mxu0 %v6029_v57 }
 0xc38   :  { %4543 = vmatprep.subr.bf16.mxu1 %v6254_v20  ;;  %4575 = vmatprep.subr.bf16.mxu0 %v6061_v40 }
 0xc3a   :  { %v5011_v10 = vpop.eup %5010 }
 0xc3b   :  { %v3599_v56 = vadd.f32 1.0, %v5011_v10  ;;  %4545 = vmatpush1.bf16.msra.mxu1 %v6269_v31  ;;  %4577 = vmatpush1.bf16.msra.mxu0 %v6069_v32 }
 0xc3c   :  { %4547 = vmatprep.subr.bf16.mxu1 %v6272_v34  ;;  %4579 = vmatprep.subr.bf16.mxu0 %v6085_v7 }
 0xc3d   :  { %5012 = vrcp.f32 %v3599_v56 }
 0xc3f   :  { %4549 = vmatpush1.bf16.msra.mxu1 %v6287_v58  ;;  %4581 = vmatpush1.bf16.msra.mxu0 %v6093_v23 }
 0xc40   :  { %4551 = vmatprep.subr.bf16.mxu1 %v6290_v63  ;;  %4583 = vmatprep.subr.bf16.mxu0 %v6103_v18 }
 0xc43   :  { %4553 = vmatpush1.bf16.msra.mxu1 %v6299_v9  ;;  %4585 = vmatpush1.bf16.msra.mxu0 %v6111_v29 }
 0xc44   :  { %4587 = vmatprep.subr.bf16.mxu1 %v6163_v59  ;;  %4619 = vmatprep.subr.bf16.mxu0 %v5946_v2 }
 0xc47   :  { %v5013_v62 = vpop.eup %5012 }
 0xc48   :  { %3623 = vst [vmem:[%s6646_s11 + $0x2] sm:$0x3] %v5013_v62 }
 0xcf9   :  { %v2600_v11 = vpop.f32.mrb[34].mxu1  ;;  %v2671_v17 = vpop.f32.mrb[22].mxu0 }
 0xcfa   :  { %v2676_v35 = vadd.f32 %v2600_v11, %v6329_v52  ;;  %v2602_v39 = vpop.f32.mrb[35].mxu1  ;;  %v2673_v47 = vpop.f32.mrb[23].mxu0  ;;  %v2678_v30 = vadd.f32 %v2671_v17, %v6342_v15 }
 0xcfb   :  { %v2677_v51 = vadd.f32 %v2602_v39, %v6331_v61  ;;  %v2679_v55 = vadd.f32 %v2673_v47, %v6337_v4 }
 0xcfc   :  { %v3687_v6 = vmul.f32 -1.442695, %v2676_v35 }
 0xcfd   :  { %v3688_v8 = vmul.f32 -1.442695, %v2677_v51  ;;  %v3689_v13 = vmul.f32 -1.442695, %v2679_v55 }
 0xcfe   :  { %5014 = vpow2.f32 %v3687_v6 }
 0xcff   :  { %5016 = vpow2.f32 %v3688_v8 }
 0xd00   :  { %5018 = vpow2.f32 %v3689_v13 }
 0xd01   :  { %5020 = vtanh.f32 %v2678_v30 }
 0xd08   :  { %v5015_v37 = vpop.eup %5014 }
 0xd09   :  { %v5017_v49 = vpop.eup %5016  ;;  %v2683_v26 = vadd.f32 1.0, %v5015_v37 }
 0xd0a   :  { %v2689_v25 = vadd.f32 1.0, %v5017_v49  ;;  %v5019_v53 = vpop.eup %5018 }
 0xd0b   :  { %5022 = vrcp.f32 %v2683_v26  ;;  %v5021_v21 = vpop.eup %5020  ;;  %v2696_v43 = vadd.f32 1.0, %v5019_v53 }
 0xd0c   :  { %5024 = vrcp.f32 %v2689_v25 }
 0xd0d   :  { %5026 = vrcp.f32 %v2696_v43 }
 0xd15   :  { %v5023_v54 = vpop.eup %5022 }
 0xd16   :  { %v5025_v0 = vpop.eup %5024  ;;  %v2700_v44 = vmul.f32 %v5023_v54, %v5021_v21 }
 0xd17   :  { %v2699_v38 = vmul.f32 %v5025_v0, %v6390_v48  ;;  %v5027_v10 = vpop.eup %5026 }
 0xd19   :  { %v6435_v50 = vadd.f32 %v2700_v44, %v2699_v38 }
 0xd1b   :  { %5028 = vtanh.f32 %v6435_v50 }
 0xd25   :  { %v5029_v56 = vpop.eup %5028 }
 0xd26   :  { %v2703_v62 = vmul.f32 %v5029_v56, %v5027_v10 }
 0xd28   :  { %2705 = vst [vmem:[#allocation2 + $0x4] sm:$0x3] %v2703_v62  ;;  %2771 = vmatmul.mubr.f32.vlgmr.msra.gmra.mrb[36].mxu1 %v2703_v62  ;;  %2842 = vmatmul.mubr.f32.vlgmr.msra.gmra.mrb[24].mxu0 %v2703_v62 }
 0xd29   :  { %4589 = vmatpush1.bf16.msra.mxu1 %v6177_v14  ;;  %4621 = vmatpush1.bf16.msra.mxu0 %v5957_v60 }
 0xd2a   :  { %4591 = vmatprep.subr.bf16.mxu1 %v6180_v22  ;;  %4623 = vmatprep.subr.bf16.mxu0 %v5959_v42 }
 0xd2b   :  { %2942 = vmatprep.mubr.f32.mxu1 %v5158_v3  ;;  %3013 = vmatprep.mubr.f32.mxu0 %v5158_v3 }
 0xd2d   :  { %4593 = vmatpush1.bf16.msra.mxu1 %v6196_v5  ;;  %4625 = vmatpush1.bf16.msra.mxu0 %v5975_v16 }
 0xd2e   :  { %4595 = vmatprep.subr.bf16.mxu1 %v6200_v12  ;;  %4627 = vmatprep.subr.bf16.mxu0 %v5981_v33 }
 0xd2f   :  { %v3568_v48 = vld [vmem:[#allocation2 + $0x4] sm:$0x3] }
 0xd30   :  { %v3707_v11 = vmul.f32 -1.442695, %v3568_v48 }
 0xd31   :  { %4597 = vmatpush1.bf16.msra.mxu1 %v6215_v1  ;;  %4629 = vmatpush1.bf16.msra.mxu0 %v5999_v19 }
 0xd32   :  { %5030 = vpow2.f32 %v3707_v11  ;;  %4599 = vmatprep.subr.bf16.mxu1 %v6218_v28  ;;  %4631 = vmatprep.subr.bf16.mxu0 %v6002_v24 }
 0xd35   :  { %4601 = vmatpush1.bf16.msra.mxu1 %v6233_v41  ;;  %4633 = vmatpush1.bf16.msra.mxu0 %v6017_v45 }
 0xd36   :  { %4603 = vmatprep.subr.bf16.mxu1 %v6236_v27  ;;  %4635 = vmatprep.subr.bf16.mxu0 %v6020_v46 }
 0xd39   :  { %4605 = vmatpush1.bf16.msra.mxu1 %v6251_v36  ;;  %4637 = vmatpush1.bf16.msra.mxu0 %v6029_v57 }
 0xd3a   :  { %4607 = vmatprep.subr.bf16.mxu1 %v6254_v20  ;;  %4639 = vmatprep.subr.bf16.mxu0 %v6061_v40 }
 0xd3c   :  { %v5031_v17 = vpop.eup %5030 }
 0xd3d   :  { %v3600_v35 = vadd.f32 1.0, %v5031_v17  ;;  %4609 = vmatpush1.bf16.msra.mxu1 %v6269_v31  ;;  %4641 = vmatpush1.bf16.msra.mxu0 %v6069_v32 }
 0xd3e   :  { %4611 = vmatprep.subr.bf16.mxu1 %v6272_v34  ;;  %4643 = vmatprep.subr.bf16.mxu0 %v6085_v7 }
 0xd3f   :  { %5032 = vrcp.f32 %v3600_v35 }
 0xd41   :  { %4613 = vmatpush1.bf16.msra.mxu1 %v6287_v58  ;;  %4645 = vmatpush1.bf16.msra.mxu0 %v6093_v23 }
 0xd42   :  { %4615 = vmatprep.subr.bf16.mxu1 %v6290_v63  ;;  %4647 = vmatprep.subr.bf16.mxu0 %v6103_v18 }
 0xd45   :  { %4617 = vmatpush1.bf16.msra.mxu1 %v6299_v9  ;;  %4649 = vmatpush1.bf16.msra.mxu0 %v6111_v29 }
 0xd46   :  { %4651 = vmatprep.subr.bf16.mxu1 %v6163_v59  ;;  %4683 = vmatprep.subr.bf16.mxu0 %v5946_v2 }
 0xd49   :  { %v5033_v39 = vpop.eup %5032 }
 0xd4a   :  { %3624 = vst [vmem:[%s6646_s11 + $0x4] sm:$0x3] %v5033_v39 }
 0xdfb   :  { %v2772_v47 = vpop.f32.mrb[36].mxu1  ;;  %v2843_v51 = vpop.f32.mrb[24].mxu0 }
 0xdfc   :  { %v2848_v6 = vadd.f32 %v2772_v47, %v6329_v52  ;;  %v2774_v8 = vpop.f32.mrb[37].mxu1  ;;  %v2845_v55 = vpop.f32.mrb[25].mxu0  ;;  %v2850_v25 = vadd.f32 %v2843_v51, %v6342_v15 }
 0xdfd   :  { %v2849_v13 = vadd.f32 %v2774_v8, %v6331_v61  ;;  %v2851_v49 = vadd.f32 %v2845_v55, %v6337_v4 }
 0xdfe   :  { %v3690_v30 = vmul.f32 -1.442695, %v2848_v6 }
 0xdff   :  { %v3691_v37 = vmul.f32 -1.442695, %v2849_v13  ;;  %v3692_v26 = vmul.f32 -1.442695, %v2851_v49 }
 0xe00   :  { %5034 = vpow2.f32 %v3690_v30 }
 0xe01   :  { %5036 = vpow2.f32 %v3691_v37 }
 0xe02   :  { %5038 = vpow2.f32 %v3692_v26 }
 0xe03   :  { %5040 = vtanh.f32 %v2850_v25 }
 0xe0a   :  { %v5035_v53 = vpop.eup %5034 }
 0xe0b   :  { %v5037_v21 = vpop.eup %5036  ;;  %v2855_v54 = vadd.f32 1.0, %v5035_v53 }
 0xe0c   :  { %v2861_v0 = vadd.f32 1.0, %v5037_v21  ;;  %v5039_v44 = vpop.eup %5038 }
 0xe0d   :  { %5042 = vrcp.f32 %v2855_v54  ;;  %v5041_v43 = vpop.eup %5040  ;;  %v2868_v62 = vadd.f32 1.0, %v5039_v44 }
 0xe0e   :  { %5044 = vrcp.f32 %v2861_v0 }
 0xe0f   :  { %5046 = vrcp.f32 %v2868_v62 }
 0xe17   :  { %v5043_v38 = vpop.eup %5042 }
 0xe18   :  { %v5045_v10 = vpop.eup %5044  ;;  %v2872_v56 = vmul.f32 %v5043_v38, %v5041_v43 }
 0xe19   :  { %v2871_v48 = vmul.f32 %v5045_v10, %v6435_v50  ;;  %v5047_v17 = vpop.eup %5046 }
 0xe1b   :  { %v6480_v11 = vadd.f32 %v2872_v56, %v2871_v48 }
 0xe1d   :  { %5048 = vtanh.f32 %v6480_v11 }
 0xe27   :  { %v5049_v35 = vpop.eup %5048 }
 0xe28   :  { %v2875_v39 = vmul.f32 %v5049_v35, %v5047_v17 }
 0xe2a   :  { %2877 = vst [vmem:[#allocation2 + $0x6] sm:$0x3] %v2875_v39  ;;  %2943 = vmatmul.mubr.f32.vlgmr.msra.gmra.mrb[38].mxu1 %v2875_v39  ;;  %3014 = vmatmul.mubr.f32.vlgmr.msra.gmra.mrb[26].mxu0 %v2875_v39 }
 0xe2b   :  { %4653 = vmatpush1.bf16.msra.mxu1 %v6177_v14  ;;  %4685 = vmatpush1.bf16.msra.mxu0 %v5957_v60 }
 0xe2c   :  { %4655 = vmatprep.subr.bf16.mxu1 %v6180_v22  ;;  %4687 = vmatprep.subr.bf16.mxu0 %v5959_v42 }
 0xe2d   :  { %3114 = vmatprep.mubr.f32.mxu1 %v5158_v3  ;;  %3185 = vmatprep.mubr.f32.mxu0 %v5158_v3 }
 0xe2f   :  { %4657 = vmatpush1.bf16.msra.mxu1 %v6196_v5  ;;  %4689 = vmatpush1.bf16.msra.mxu0 %v5975_v16 }
 0xe30   :  { %4659 = vmatprep.subr.bf16.mxu1 %v6200_v12  ;;  %4691 = vmatprep.subr.bf16.mxu0 %v5981_v33 }
 0xe31   :  { %v3569_v50 = vld [vmem:[#allocation2 + $0x6] sm:$0x3] }
 0xe32   :  { %v3708_v47 = vmul.f32 -1.442695, %v3569_v50 }
 0xe33   :  { %4661 = vmatpush1.bf16.msra.mxu1 %v6215_v1  ;;  %4693 = vmatpush1.bf16.msra.mxu0 %v5999_v19 }
 0xe34   :  { %5050 = vpow2.f32 %v3708_v47  ;;  %4663 = vmatprep.subr.bf16.mxu1 %v6218_v28  ;;  %4695 = vmatprep.subr.bf16.mxu0 %v6002_v24 }
 0xe37   :  { %4665 = vmatpush1.bf16.msra.mxu1 %v6233_v41  ;;  %4697 = vmatpush1.bf16.msra.mxu0 %v6017_v45 }
 0xe38   :  { %4667 = vmatprep.subr.bf16.mxu1 %v6236_v27  ;;  %4699 = vmatprep.subr.bf16.mxu0 %v6020_v46 }
 0xe3b   :  { %4669 = vmatpush1.bf16.msra.mxu1 %v6251_v36  ;;  %4701 = vmatpush1.bf16.msra.mxu0 %v6029_v57 }
 0xe3c   :  { %4671 = vmatprep.subr.bf16.mxu1 %v6254_v20  ;;  %4703 = vmatprep.subr.bf16.mxu0 %v6061_v40 }
 0xe3e   :  { %v5051_v51 = vpop.eup %5050 }
 0xe3f   :  { %v3601_v6 = vadd.f32 1.0, %v5051_v51  ;;  %4673 = vmatpush1.bf16.msra.mxu1 %v6269_v31  ;;  %4705 = vmatpush1.bf16.msra.mxu0 %v6069_v32 }
 0xe40   :  { %4675 = vmatprep.subr.bf16.mxu1 %v6272_v34  ;;  %4707 = vmatprep.subr.bf16.mxu0 %v6085_v7 }
 0xe41   :  { %5052 = vrcp.f32 %v3601_v6 }
 0xe43   :  { %4677 = vmatpush1.bf16.msra.mxu1 %v6287_v58  ;;  %4709 = vmatpush1.bf16.msra.mxu0 %v6093_v23 }
 0xe44   :  { %4679 = vmatprep.subr.bf16.mxu1 %v6290_v63  ;;  %4711 = vmatprep.subr.bf16.mxu0 %v6103_v18 }
 0xe47   :  { %4681 = vmatpush1.bf16.msra.mxu1 %v6299_v9  ;;  %4713 = vmatpush1.bf16.msra.mxu0 %v6111_v29 }
 0xe48   :  { %4715 = vmatprep.subr.bf16.mxu1 %v6163_v59  ;;  %4747 = vmatprep.subr.bf16.mxu0 %v5946_v2 }
 0xe4b   :  { %v5053_v8 = vpop.eup %5052 }
 0xe4c   :  { %3625 = vst [vmem:[%s6646_s11 + $0x6] sm:$0x3] %v5053_v8 }
 0xefd   :  { %v2944_v55 = vpop.f32.mrb[38].mxu1  ;;  %v3015_v13 = vpop.f32.mrb[26].mxu0 }
 0xefe   :  { %v3020_v30 = vadd.f32 %v2944_v55, %v6329_v52  ;;  %v2946_v37 = vpop.f32.mrb[39].mxu1  ;;  %v3017_v49 = vpop.f32.mrb[27].mxu0  ;;  %v3022_v0 = vadd.f32 %v3015_v13, %v6342_v15 }
 0xeff   :  { %v3021_v26 = vadd.f32 %v2946_v37, %v6331_v61  ;;  %v3023_v21 = vadd.f32 %v3017_v49, %v6337_v4 }
 0xf00   :  { %v3693_v25 = vmul.f32 -1.442695, %v3020_v30 }
 0xf01   :  { %v3694_v53 = vmul.f32 -1.442695, %v3021_v26  ;;  %v3695_v54 = vmul.f32 -1.442695, %v3023_v21 }
 0xf02   :  { %5054 = vpow2.f32 %v3693_v25 }
 0xf03   :  { %5056 = vpow2.f32 %v3694_v53 }
 0xf04   :  { %5058 = vpow2.f32 %v3695_v54 }
 0xf05   :  { %5060 = vtanh.f32 %v3022_v0 }
 0xf0c   :  { %v5055_v44 = vpop.eup %5054 }
 0xf0d   :  { %v5057_v43 = vpop.eup %5056  ;;  %v3027_v38 = vadd.f32 1.0, %v5055_v44 }
 0xf0e   :  { %v3033_v10 = vadd.f32 1.0, %v5057_v43  ;;  %v5059_v56 = vpop.eup %5058 }
 0xf0f   :  { %5062 = vrcp.f32 %v3027_v38  ;;  %v5061_v62 = vpop.eup %5060  ;;  %v3040_v39 = vadd.f32 1.0, %v5059_v56 }
 0xf10   :  { %5064 = vrcp.f32 %v3033_v10 }
 0xf11   :  { %5066 = vrcp.f32 %v3040_v39 }
 0xf19   :  { %v5063_v48 = vpop.eup %5062 }
 0xf1a   :  { %v5065_v17 = vpop.eup %5064  ;;  %v3044_v35 = vmul.f32 %v5063_v48, %v5061_v62 }
 0xf1b   :  { %v3043_v50 = vmul.f32 %v5065_v17, %v6480_v11  ;;  %v5067_v51 = vpop.eup %5066 }
 0xf1d   :  { %v6525_v47 = vadd.f32 %v3044_v35, %v3043_v50 }
 0xf1f   :  { %5068 = vtanh.f32 %v6525_v47 }
 0xf29   :  { %v5069_v6 = vpop.eup %5068 }
 0xf2a   :  { %v3047_v8 = vmul.f32 %v5069_v6, %v5067_v51 }
 0xf2c   :  { %3049 = vst [vmem:[#allocation2 + $0x8] sm:$0x3] %v3047_v8  ;;  %3115 = vmatmul.mubr.f32.vlgmr.msra.gmra.mrb[40].mxu1 %v3047_v8  ;;  %3186 = vmatmul.mubr.f32.vlgmr.msra.gmra.mrb[28].mxu0 %v3047_v8 }
 0xf2d   :  { %4717 = vmatpush1.bf16.msra.mxu1 %v6177_v14  ;;  %4749 = vmatpush1.bf16.msra.mxu0 %v5957_v60 }
 0xf2e   :  { %4719 = vmatprep.subr.bf16.mxu1 %v6180_v22  ;;  %4751 = vmatprep.subr.bf16.mxu0 %v5959_v42 }
 0xf2f   :  { %3286 = vmatprep.mubr.f32.mxu1 %v5158_v3  ;;  %3357 = vmatprep.mubr.f32.mxu0 %v5158_v3 }
 0xf31   :  { %4721 = vmatpush1.bf16.msra.mxu1 %v6196_v5  ;;  %4753 = vmatpush1.bf16.msra.mxu0 %v5975_v16 }
 0xf32   :  { %4723 = vmatprep.subr.bf16.mxu1 %v6200_v12  ;;  %4755 = vmatprep.subr.bf16.mxu0 %v5981_v33 }
 0xf33   :  { %v3570_v11 = vld [vmem:[#allocation2 + $0x8] sm:$0x3] }
 0xf34   :  { %v3709_v55 = vmul.f32 -1.442695, %v3570_v11 }
 0xf35   :  { %4725 = vmatpush1.bf16.msra.mxu1 %v6215_v1  ;;  %4757 = vmatpush1.bf16.msra.mxu0 %v5999_v19 }
 0xf36   :  { %5070 = vpow2.f32 %v3709_v55  ;;  %4727 = vmatprep.subr.bf16.mxu1 %v6218_v28  ;;  %4759 = vmatprep.subr.bf16.mxu0 %v6002_v24 }
 0xf39   :  { %4729 = vmatpush1.bf16.msra.mxu1 %v6233_v41  ;;  %4761 = vmatpush1.bf16.msra.mxu0 %v6017_v45 }
 0xf3a   :  { %4731 = vmatprep.subr.bf16.mxu1 %v6236_v27  ;;  %4763 = vmatprep.subr.bf16.mxu0 %v6020_v46 }
 0xf3d   :  { %4733 = vmatpush1.bf16.msra.mxu1 %v6251_v36  ;;  %4765 = vmatpush1.bf16.msra.mxu0 %v6029_v57 }
 0xf3e   :  { %4735 = vmatprep.subr.bf16.mxu1 %v6254_v20  ;;  %4767 = vmatprep.subr.bf16.mxu0 %v6061_v40 }
 0xf40   :  { %v5071_v13 = vpop.eup %5070 }
 0xf41   :  { %v3602_v30 = vadd.f32 1.0, %v5071_v13  ;;  %4737 = vmatpush1.bf16.msra.mxu1 %v6269_v31  ;;  %4769 = vmatpush1.bf16.msra.mxu0 %v6069_v32 }
 0xf42   :  { %4739 = vmatprep.subr.bf16.mxu1 %v6272_v34  ;;  %4771 = vmatprep.subr.bf16.mxu0 %v6085_v7 }
 0xf43   :  { %5072 = vrcp.f32 %v3602_v30 }
 0xf45   :  { %4741 = vmatpush1.bf16.msra.mxu1 %v6287_v58  ;;  %4773 = vmatpush1.bf16.msra.mxu0 %v6093_v23 }
 0xf46   :  { %4743 = vmatprep.subr.bf16.mxu1 %v6290_v63  ;;  %4775 = vmatprep.subr.bf16.mxu0 %v6103_v18 }
 0xf49   :  { %4745 = vmatpush1.bf16.msra.mxu1 %v6299_v9  ;;  %4777 = vmatpush1.bf16.msra.mxu0 %v6111_v29 }
 0xf4a   :  { %4779 = vmatprep.subr.bf16.mxu1 %v6163_v59  ;;  %4811 = vmatprep.subr.bf16.mxu0 %v5946_v2 }
 0xf4d   :  { %v5073_v37 = vpop.eup %5072 }
 0xf4e   :  { %3626 = vst [vmem:[%s6646_s11 + $0x8] sm:$0x3] %v5073_v37 }
 0xfff   :  { %v3116_v49 = vpop.f32.mrb[40].mxu1  ;;  %v3187_v26 = vpop.f32.mrb[28].mxu0 }
0x1000   :  { %v3192_v25 = vadd.f32 %v3116_v49, %v6329_v52  ;;  %v3118_v53 = vpop.f32.mrb[41].mxu1  ;;  %v3189_v21 = vpop.f32.mrb[29].mxu0  ;;  %v3194_v43 = vadd.f32 %v3187_v26, %v6342_v15 }
0x1001   :  { %v3193_v54 = vadd.f32 %v3118_v53, %v6331_v61  ;;  %v3195_v59 = vadd.f32 %v3189_v21, %v6337_v4 }
0x1002   :  { %v3696_v0 = vmul.f32 -1.442695, %v3192_v25 }
0x1003   :  { %v3697_v44 = vmul.f32 -1.442695, %v3193_v54  ;;  %v3698_v2 = vmul.f32 -1.442695, %v3195_v59 }
0x1004   :  { %5074 = vpow2.f32 %v3696_v0 }
0x1005   :  { %5076 = vpow2.f32 %v3697_v44 }
0x1006   :  { %5078 = vpow2.f32 %v3698_v2 }
0x1007   :  { %5080 = vtanh.f32 %v3194_v43 }
0x100e   :  { %v5075_v38 = vpop.eup %5074 }
0x100f   :  { %v5077_v10 = vpop.eup %5076  ;;  %v3199_v56 = vadd.f32 1.0, %v5075_v38 }
0x1010   :  { %v3205_v62 = vadd.f32 1.0, %v5077_v10  ;;  %v5079_v48 = vpop.eup %5078 }
0x1011   :  { %5082 = vrcp.f32 %v3199_v56  ;;  %v5081_v17 = vpop.eup %5080  ;;  %v3212_v51 = vadd.f32 1.0, %v5079_v48 }
0x1012   :  { %5084 = vrcp.f32 %v3205_v62 }
0x1013   :  { %5086 = vrcp.f32 %v3212_v51 }
0x101b   :  { %v5083_v35 = vpop.eup %5082 }
0x101c   :  { %v5085_v39 = vpop.eup %5084  ;;  %v3216_v50 = vmul.f32 %v5083_v35, %v5081_v17 }
0x101d   :  { %v3215_v6 = vmul.f32 %v5085_v39, %v6525_v47  ;;  %v5087_v11 = vpop.eup %5086 }
0x101f   :  { %v6570_v8 = vadd.f32 %v3216_v50, %v3215_v6 }
0x1021   :  { %5088 = vtanh.f32 %v6570_v8 }
0x102b   :  { %v5089_v55 = vpop.eup %5088 }
0x102c   :  { %v3219_v13 = vmul.f32 %v5089_v55, %v5087_v11 }
0x102e   :  { %3221 = vst [vmem:[#allocation2 + $0xa] sm:$0x3] %v3219_v13  ;;  %3287 = vmatmul.mubr.f32.vlgmr.msra.gmra.mrb[42].mxu1 %v3219_v13  ;;  %3358 = vmatmul.mubr.f32.vlgmr.msra.gmra.mrb[30].mxu0 %v3219_v13 }
0x102f   :  { %4781 = vmatpush1.bf16.msra.mxu1 %v6177_v14  ;;  %4813 = vmatpush1.bf16.msra.mxu0 %v5957_v60 }
0x1030   :  { %4783 = vmatprep.subr.bf16.mxu1 %v6180_v22  ;;  %4815 = vmatprep.subr.bf16.mxu0 %v5959_v42 }
0x1031   :  { %3458 = vmatprep.mubr.f32.mxu1 %v5158_v3  ;;  %3529 = vmatprep.mubr.f32.mxu0 %v5158_v3 }
0x1033   :  { %4785 = vmatpush1.bf16.msra.mxu1 %v6196_v5  ;;  %4817 = vmatpush1.bf16.msra.mxu0 %v5975_v16 }
0x1034   :  { %4787 = vmatprep.subr.bf16.mxu1 %v6200_v12  ;;  %4819 = vmatprep.subr.bf16.mxu0 %v5981_v33 }
0x1035   :  { %v3571_v47 = vld [vmem:[#allocation2 + $0xa] sm:$0x3] }
0x1036   :  { %v3710_v14 = vmul.f32 -1.442695, %v3571_v47 }
0x1037   :  { %4789 = vmatpush1.bf16.msra.mxu1 %v6215_v1  ;;  %4821 = vmatpush1.bf16.msra.mxu0 %v5999_v19 }
0x1038   :  { %5090 = vpow2.f32 %v3710_v14  ;;  %4791 = vmatprep.subr.bf16.mxu1 %v6218_v28  ;;  %4823 = vmatprep.subr.bf16.mxu0 %v6002_v24 }
0x103b   :  { %4793 = vmatpush1.bf16.msra.mxu1 %v6233_v41  ;;  %4825 = vmatpush1.bf16.msra.mxu0 %v6017_v45 }
0x103c   :  { %4795 = vmatprep.subr.bf16.mxu1 %v6236_v27  ;;  %4827 = vmatprep.subr.bf16.mxu0 %v6020_v46 }
0x103f   :  { %4797 = vmatpush1.bf16.msra.mxu1 %v6251_v36  ;;  %4829 = vmatpush1.bf16.msra.mxu0 %v6029_v57 }
0x1040   :  { %4799 = vmatprep.subr.bf16.mxu1 %v6254_v20  ;;  %4831 = vmatprep.subr.bf16.mxu0 %v6061_v40 }
0x1042   :  { %v5091_v3 = vpop.eup %5090 }
0x1043   :  { %v3603_v60 = vadd.f32 1.0, %v5091_v3  ;;  %4801 = vmatpush1.bf16.msra.mxu1 %v6269_v31  ;;  %4833 = vmatpush1.bf16.msra.mxu0 %v6069_v32 }
0x1044   :  { %4803 = vmatprep.subr.bf16.mxu1 %v6272_v34  ;;  %4835 = vmatprep.subr.bf16.mxu0 %v6085_v7 }
0x1045   :  { %5092 = vrcp.f32 %v3603_v60 }
0x1047   :  { %4805 = vmatpush1.bf16.msra.mxu1 %v6287_v58  ;;  %4837 = vmatpush1.bf16.msra.mxu0 %v6093_v23 }
0x1048   :  { %4807 = vmatprep.subr.bf16.mxu1 %v6290_v63  ;;  %4839 = vmatprep.subr.bf16.mxu0 %v6103_v18 }
0x104b   :  { %4809 = vmatpush1.bf16.msra.mxu1 %v6299_v9  ;;  %4841 = vmatpush1.bf16.msra.mxu0 %v6111_v29 }
0x104f   :  { %v5093_v42 = vpop.eup %5092 }
0x1050   :  { %3627 = vst [vmem:[%s6646_s11 + $0xa] sm:$0x3] %v5093_v42 }
0x1101   :  { %v3288_v16 = vpop.f32.mrb[42].mxu1  ;;  %v3359_v33 = vpop.f32.mrb[30].mxu0 }
0x1102   :  { %v3364_v19 = vadd.f32 %v3288_v16, %v6329_v52  ;;  %v3290_v24 = vpop.f32.mrb[43].mxu1  ;;  %v3361_v45 = vpop.f32.mrb[31].mxu0  ;;  %v3366_v23 = vadd.f32 %v3359_v33, %v6342_v15 }
0x1103   :  { %v3365_v46 = vadd.f32 %v3290_v24, %v6331_v61  ;;  %v3367_v32 = vadd.f32 %v3361_v45, %v6337_v4 }
0x1104   :  { %v3699_v57 = vmul.f32 -1.442695, %v3364_v19 }
0x1105   :  { %v3700_v40 = vmul.f32 -1.442695, %v3365_v46  ;;  %v3701_v7 = vmul.f32 -1.442695, %v3367_v32 }
0x1106   :  { %5094 = vpow2.f32 %v3699_v57 }
0x1107   :  { %5096 = vpow2.f32 %v3700_v40 }
0x1108   :  { %5098 = vpow2.f32 %v3701_v7 }
0x1109   :  { %5100 = vtanh.f32 %v3366_v23 }
0x1110   :  { %v5095_v18 = vpop.eup %5094 }
0x1111   :  { %v5097_v29 = vpop.eup %5096  ;;  %v3371_v22 = vadd.f32 1.0, %v5095_v18 }
0x1112   :  { %v3377_v5 = vadd.f32 1.0, %v5097_v29  ;;  %v5099_v12 = vpop.eup %5098 }
0x1113   :  { %5102 = vrcp.f32 %v3371_v22  ;;  %v5101_v1 = vpop.eup %5100  ;;  %v3384_v36 = vadd.f32 1.0, %v5099_v12 }
0x1114   :  { %5104 = vrcp.f32 %v3377_v5 }
0x1115   :  { %5106 = vrcp.f32 %v3384_v36 }
0x111d   :  { %v5103_v28 = vpop.eup %5102 }
0x111e   :  { %v5105_v41 = vpop.eup %5104  ;;  %v3388_v27 = vmul.f32 %v5103_v28, %v5101_v1 }
0x111f   :  { %v3387_v20 = vmul.f32 %v5105_v41, %v6570_v8  ;;  %v5107_v34 = vpop.eup %5106 }
0x1121   :  { %v3389_v31 = vadd.f32 %v3388_v27, %v3387_v20 }
0x1123   :  { %5108 = vtanh.f32 %v3389_v31 }
0x112d   :  { %v5109_v58 = vpop.eup %5108 }
0x112e   :  { %v3391_v63 = vmul.f32 %v5109_v58, %v5107_v34 }
0x1130   :  { %3393 = vst [vmem:[#allocation2 + $0xc] sm:$0x3] %v3391_v63  ;;  %3459 = vmatmul.mubr.f32.vlgmr.msra.gmra.mrb[44].mxu1 %v3391_v63  ;;  %3530 = vmatmul.mubr.f32.vlgmr.msra.gmra.mrb[32].mxu0 %v3391_v63 }
0x1137   :  { %v3572_v9 = vld [vmem:[#allocation2 + $0xc] sm:$0x3] }
0x1138   :  { %v3711_v30 = vmul.f32 -1.442695, %v3572_v9 }
0x113a   :  { %5110 = vpow2.f32 %v3711_v30 }
0x1144   :  { %v5111_v37 = vpop.eup %5110 }
0x1145   :  { %v3604_v49 = vadd.f32 1.0, %v5111_v37 }
0x1147   :  { %5112 = vrcp.f32 %v3604_v49 }
0x1151   :  { %v5113_v26 = vpop.eup %5112 }
0x1152   :  { %3628 = vst [vmem:[%s6646_s11 + $0xc] sm:$0x3] %v5113_v26 }
0x1153   :  { %5145 = shalt.err (!%p5142_p4)
}
0x1154   :  { %s5146_s19 = scalar_lea.hbm %s6647_s12, 32 }
0x1155   :  { %p5147_p5 = scmp.ne.s32.totalorder %s6647_s12, %s5146_s19  ;;  %p5150_p6 = scmp.lt.u32.totalorder %s5146_s19, %s6647_s12 }
0x1157   :  { %p5152_p7 = pnand %p5150_p6, %p5147_p5 }
0x1159   :  { %5155 = shalt.err (!%p5152_p7)
}
0x115a   :  { %3641 = dma.vmem_to_hbm [thread:$0]  %s3639_s4, 32, %s6647_s12, [#allocation4]  }
0x1203   :  { %v3460_v25 = vpop.f32.mrb[44].mxu1  ;;  %v3531_v53 = vpop.f32.mrb[32].mxu0 }
0x1204   :  { %v3536_v21 = vadd.f32 %v3460_v25, %v6329_v52  ;;  %v3462_v54 = vpop.f32.mrb[45].mxu1  ;;  %v3533_v0 = vpop.f32.mrb[33].mxu0  ;;  %v3538_v10 = vadd.f32 %v3531_v53, %v6342_v15 }
0x1205   :  { %v3537_v44 = vadd.f32 %v3462_v54, %v6331_v61  ;;  %v3539_v43 = vadd.f32 %v3533_v0, %v6337_v4 }
0x1206   :  { %v3702_v59 = vmul.f32 -1.442695, %v3536_v21 }
0x1207   :  { %v3703_v2 = vmul.f32 -1.442695, %v3537_v44  ;;  %v3704_v38 = vmul.f32 -1.442695, %v3539_v43 }
0x1208   :  { %5114 = vpow2.f32 %v3702_v59 }
0x1209   :  { %5116 = vpow2.f32 %v3703_v2 }
0x120a   :  { %5118 = vpow2.f32 %v3704_v38 }
0x120b   :  { %5120 = vtanh.f32 %v3538_v10 }
0x1212   :  { %v5115_v56 = vpop.eup %5114 }
0x1213   :  { %v5117_v62 = vpop.eup %5116  ;;  %v3543_v48 = vadd.f32 1.0, %v5115_v56 }
0x1214   :  { %v3549_v17 = vadd.f32 1.0, %v5117_v62  ;;  %v5119_v52 = vpop.eup %5118 }
0x1215   :  { %5122 = vrcp.f32 %v3543_v48  ;;  %v5121_v35 = vpop.eup %5120  ;;  %v3556_v51 = vadd.f32 1.0, %v5119_v52 }
0x1216   :  { %5124 = vrcp.f32 %v3549_v17 }
0x1217   :  { %5126 = vrcp.f32 %v3556_v51 }
0x121f   :  { %v5123_v61 = vpop.eup %5122 }
0x1220   :  { %v5125_v39 = vpop.eup %5124  ;;  %v3560_v50 = vmul.f32 %v5123_v61, %v5121_v35 }
0x1221   :  { %v3559_v6 = vmul.f32 %v5125_v39, %v3389_v31  ;;  %v5127_v4 = vpop.eup %5126 }
0x1223   :  { %v3561_v8 = vadd.f32 %v3560_v50, %v3559_v6 }
0x1225   :  { %5128 = vtanh.f32 %v3561_v8 }
0x122f   :  { %v5129_v15 = vpop.eup %5128 }
0x1230   :  { %v3563_v11 = vmul.f32 %v5129_v15, %v5127_v4 }
0x1232   :  { %3565 = vst [vmem:[#allocation2 + $0xe] sm:$0x3] %v3563_v11 }
0x1239   :  { %v3573_v55 = vld [vmem:[#allocation2 + $0xe] sm:$0x3] }
0x123a   :  { %v3712_v13 = vmul.f32 -1.442695, %v3573_v55 }
0x123c   :  { %5130 = vpow2.f32 %v3712_v13 }
0x1246   :  { %v5131_v47 = vpop.eup %5130 }
0x1247   :  { %v3605_v14 = vadd.f32 1.0, %v5131_v47 }
0x1249   :  { %5132 = vrcp.f32 %v3605_v14 }
0x1253   :  { %v5133_v3 = vpop.eup %5132 }
0x1254   :  { %3629 = vst [vmem:[%s6646_s11 + $0xe] sm:$0x3] %v5133_v3 }
0x1255   :  { %5156 = dma.done.wait [#allocation4], 32  }
0x1256   :  { %5157 = vsyncadd [#allocation4], 4294967264 }
0x1257   :  { %3647 = vsyncpa [#allocation4], 1 }

</bundles_post_ra>
